<compile_context>
chip_gen: v5e
topology: v5e:2x2
jax: 0.10.0
libtpu: 0.0.40
codegen_flags: <defaults>
</compile_context>

<pallas_src>
import functools

import jax
import jax.numpy as jnp
from jax.experimental import pallas as pl
from jax.experimental.pallas import tpu as pltpu

LANE = 128              # TPU lane width; every activation slab is (rows, 128).
ONES_LANE = LANE - 1    # constant-1.0 lane used to fold biases into matmuls.


# -----------------------------------------------------------------------------
# Fused Pallas kernel
# -----------------------------------------------------------------------------
def fused_kernel(t_ref, in_ref, ttab_ref, ew1_ref, ew2_ref, w_in_ref,
                 wr_ref, w_out_ref, bias_ref, out_ref, *, diff_lanes):
    """One batch tile of the full forward pass.

    in_ref lanes  : [ x | eps | y | 0 ... 0 | 1.0 ]              (packed slab)
    ttab_ref cols : [ sqrt(a)*dx | sqrt(1-a)*dx | t_emb | eb2 | 0 | 1.0 ]
    xin lanes     : [ sqrt(a)x | sqrt(1-a)eps | t_emb | y_emb(+eb2) | 0 | 1.0 ]
    """
    f32, bf16 = jnp.float32, jnp.bfloat16
    bt = in_ref.shape[0]
    ts_sub = ttab_ref.shape[0]

    t_i = t_ref[...]                    # (bt, 1) int32
    x_in = in_ref[...]                  # (bt, 128) f32

    # ---- single one-hot MXU gather over the merged time table ---------------
    step = jax.lax.broadcasted_iota(jnp.int32, (bt, ts_sub), 1)
    onehot = jnp.where(step == t_i, 1.0, 0.0).astype(f32)
    g = jnp.dot(onehot, ttab_ref[...], preferred_element_type=f32)   # (bt,128)

    # ---- forward diffusion + fused backbone-input layout (pure VPU) ---------
    # lanes <  diff_lanes : slab * per-lane scale  (= sqrt(a)*x | sqrt(1-a)*eps)
    # lanes >= diff_lanes : table content          (= t_emb | eb2 | 0 | 1.0)
    lane = jax.lax.broadcasted_iota(jnp.int32, (bt, LANE), 1)
    xin = jnp.where(lane < diff_lanes, x_in * g, g)

    # ---- context encoder: Linear(dy,2048)+ReLU -> Linear(2048,E) ------------
    # ew1 nonzero rows = y lanes of the slab, row 127 = eb1 (via the 1.0 lane);
    # ew2 nonzero cols = the y_emb lane range of xin.
    h_enc = jnp.maximum(
        jnp.dot(x_in.astype(bf16), ew1_ref[...], preferred_element_type=f32),
        0.0)
    y_part = jnp.dot(h_enc.astype(bf16), ew2_ref[...],
                     preferred_element_type=f32)
    xin = xin + y_part

    # ---- backbone: input proj (+b_in via 1.0 lane) + 2 residual ReLU blocks -
    h = jnp.maximum(
        jnp.dot(xin.astype(bf16), w_in_ref[...], preferred_element_type=f32),
        0.0)
    h = h + jnp.maximum(
        jnp.dot(h.astype(bf16), wr_ref[0], preferred_element_type=f32)
        + bias_ref[0:1, :], 0.0)
    h = h + jnp.maximum(
        jnp.dot(h.astype(bf16), wr_ref[1], preferred_element_type=f32)
        + bias_ref[1:2, :], 0.0)

    # ---- output projection into a lane-dense (bt, 128) slab -----------------
    out_ref[...] = (jnp.dot(h.astype(bf16), w_out_ref[...],
                            preferred_element_type=f32)
                    + bias_ref[2:3, 0:LANE])


def run_fused(t, in_slab, time_tab, params, *, batch_tile, diff_lanes):
    b_pad = in_slab.shape[0]
    grid = (b_pad // batch_tile,)

    def act(last):
        return pl.BlockSpec((batch_tile, last), lambda i: (i, 0))

    def resident(a):
        nd = a.ndim                 # same block every step -> DMA'd only once
        return pl.BlockSpec(a.shape, lambda i: (0,) * nd)

    weights = (params["ew1"], params["ew2"], params["w_in"],
               params["wr"], params["w_out"], params["biases"])

    return pl.pallas_call(
        functools.partial(fused_kernel, diff_lanes=diff_lanes),
        out_shape=jax.ShapeDtypeStruct((b_pad, LANE), jnp.float32),
        grid=grid,
        in_specs=([act(1), act(LANE), resident(time_tab)]
                  + [resident(w) for w in weights]),
        out_specs=pl.BlockSpec((batch_tile, LANE), lambda i: (i, 0)),
        compiler_params=pltpu.CompilerParams(
            dimension_semantics=("parallel",),
            vmem_limit_bytes=32 * 1024 * 1024),
    )(t, in_slab, time_tab, *weights)


# -----------------------------------------------------------------------------
# Parameter / table construction (plain JAX, host-side)
# -----------------------------------------------------------------------------
def make_schedules(beta_1, beta_T, time_steps):
    beta = jnp.linspace(beta_1, beta_T, time_steps).astype(jnp.float32)
    tril = jnp.tril(jnp.ones((time_steps, time_steps), jnp.float32))
    alpha = jnp.exp(tril @ jnp.log(1.0 - beta))       # == cumprod(1 - beta)
    sigma = jnp.sqrt(beta)
    return beta, alpha, sigma


def init_model(key, *, n_hand_kp, y_input_kp, temporal_dim, y_embed_dim,
               time_steps, alpha, hidden_dim=512, enc_hidden_dim=2048):
    dx = n_hand_kp * 3
    dy = y_input_kp * 3
    diff_lanes = 2 * dx                  # [sqrt(a)*x | sqrt(1-a)*eps] lanes
    y_in_off = 2 * dx                    # y position in the packed input slab
    t_off = diff_lanes                   # t_emb lanes in the fused xin layout
    ye_off = t_off + temporal_dim        # y_emb lanes in the fused xin layout
    assert y_in_off + dy <= ONES_LANE, "packed input slab must fit 128 lanes"
    assert ye_off + y_embed_dim <= ONES_LANE, "fused xin layout must fit 128 lanes"
    assert temporal_dim % 2 == 0, "sinusoidal encoder needs even temporal_dim"

    ks = jax.random.split(key, 14)

    def lin(k, din, dout):
        return (1.0 / jnp.sqrt(jnp.float32(din))) * jax.random.normal(
            k, (din, dout), jnp.float32)

    def bias(k, d):
        return 0.01 * jax.random.normal(k, (d,), jnp.float32)

    # ---- context encoder: Linear(dy, 2048) -> ReLU -> Linear(2048, E) -------
    ew1 = jnp.zeros((LANE, enc_hidden_dim), jnp.float32)
    ew1 = ew1.at[y_in_off:y_in_off + dy].set(lin(ks[0], dy, enc_hidden_dim))
    ew1 = ew1.at[ONES_LANE].set(bias(ks[1], enc_hidden_dim))    # eb1 folded in

    eb2 = bias(ks[2], y_embed_dim)                              # folded in table
    ew2 = jnp.zeros((enc_hidden_dim, LANE), jnp.float32)
    ew2 = ew2.at[:, ye_off:ye_off + y_embed_dim].set(
        lin(ks[3], enc_hidden_dim, y_embed_dim))

    # ---- backbone input projection over the fused 128-lane xin layout -------
    w_x = lin(ks[4], dx, hidden_dim)
    w_in = jnp.zeros((LANE, hidden_dim), jnp.float32)
    w_in = w_in.at[0:dx].set(w_x)               # sqrt(a) * x contribution
    w_in = w_in.at[dx:2 * dx].set(w_x)          # sqrt(1-a) * eps -> same units
    w_in = w_in.at[t_off:t_off + temporal_dim].set(
        lin(ks[5], temporal_dim, hidden_dim))
    w_in = w_in.at[ye_off:ye_off + y_embed_dim].set(
        lin(ks[6], y_embed_dim, hidden_dim))
    w_in = w_in.at[ONES_LANE].set(bias(ks[7], hidden_dim))      # b_in folded in

    # ---- residual blocks stacked into ONE (2, 512, 512) operand -------------
    wr = jnp.stack([lin(ks[8], hidden_dim, hidden_dim),
                    lin(ks[9], hidden_dim, hidden_dim)])

    # ---- output projection into a lane-dense (*, 128) slab ------------------
    w_out = jnp.zeros((hidden_dim, LANE), jnp.float32)
    w_out = w_out.at[:, :dx].set(lin(ks[10], hidden_dim, dx))

    # ---- remaining biases in ONE resident f32 buffer ------------------------
    biases = jnp.zeros((8, hidden_dim), jnp.float32)
    biases = biases.at[0].set(bias(ks[11], hidden_dim))         # b_r1
    biases = biases.at[1].set(bias(ks[12], hidden_dim))         # b_r2
    biases = biases.at[2, :dx].set(bias(ks[13], dx))            # b_out

    # ---- merged time table: alpha scales + sinusoid + eb2 + bias-ones -------
    # TODO(synk): SinusoidalPosEncoder source not provided; standard sin/cos assumed.
    half = temporal_dim // 2
    freqs = jnp.exp(-jnp.log(10000.0)
                    * jnp.arange(half, dtype=jnp.float32) / half)
    args = jnp.arange(time_steps, dtype=jnp.float32)[:, None] * freqs[None, :]
    temb = jnp.concatenate([jnp.sin(args), jnp.cos(args)], axis=-1)

    ts_sub = ((time_steps + 7) // 8) * 8
    tab = jnp.zeros((ts_sub, LANE), jnp.float32)
    tab = tab.at[:time_steps, 0:dx].set(
        jnp.broadcast_to(jnp.sqrt(alpha)[:, None], (time_steps, dx)))
    tab = tab.at[:time_steps, dx:2 * dx].set(
        jnp.broadcast_to(jnp.sqrt(1.0 - alpha)[:, None], (time_steps, dx)))
    tab = tab.at[:time_steps, t_off:t_off + temporal_dim].set(temb)
    tab = tab.at[:time_steps, ye_off:ye_off + y_embed_dim].set(
        jnp.broadcast_to(eb2[None, :], (time_steps, y_embed_dim)))
    tab = tab.at[:time_steps, ONES_LANE].set(1.0)

    bf = lambda a: a.astype(jnp.bfloat16)
    params = dict(ew1=bf(ew1), ew2=bf(ew2), w_in=bf(w_in), wr=bf(wr),
                  w_out=bf(w_out), biases=biases)
    layout = dict(dx=dx, dy=dy, diff_lanes=diff_lanes)
    return params, tab, layout


def standardize(v, mean, std):
    return (v - mean) / std


def choose_batch_tile(batch, cap=256):
    """Batch rows per grid step.

    Small batches: a single tile (each grid step costs ~0.35us of overhead).
    Large batches: capped tiles sized so the grid has >=2 steps, letting the
    "parallel" batch axis be sharded across both v7x TensorCores while staying
    inside VMEM (per-tile encoder intermediate is bt * 8 KiB f32).
    """
    b8 = max(8, ((batch + 7) // 8) * 8)
    if b8 <= 128:
        return b8
    if b8 <= 2 * cap:
        return ((b8 // 2 + 7) // 8) * 8
    return cap


# -----------------------------------------------------------------------------
# Forward pass (mirrors KPDiffusionModel.forward, object_in_encoder=False)
# -----------------------------------------------------------------------------
@functools.partial(jax.jit,
                   static_argnames=("time_steps", "batch_tile", "diff_lanes"))
def kp_diffusion_forward(x, y, rng, *, time_tab, stats, params, time_steps,
                         batch_tile, diff_lanes):
    """x: (B, n_hand_kp, 3), y: (B, y_input_kp, 3) -> (eps_hat, eps)."""
    B, K, _ = x.shape
    dx = K * 3
    dy = y.shape[1] * 3
    assert 2 * dx + dy <= ONES_LANE

    # Standardization (object_in_encoder=False -> n_obj_keypoints == 0,
    # so all of x / y use the hand statistics).
    x = standardize(x, stats["x_hand_mean"], stats["x_hand_std"])
    y = standardize(y, stats["y_hand_mean"], stats["y_hand_std"])

    k_t, k_eps = jax.random.split(rng)
    t = jax.random.randint(k_t, (B, 1), 0, time_steps, dtype=jnp.int32)
    # TODO(synk): eps drawn with jax.random (host graph) instead of in-kernel
    # pltpu PRNG, so the returned eps is exactly the one the kernel consumed.
    eps = jax.random.normal(k_eps, x.shape, jnp.float32)

    # ONE packed lane-dense (b_pad, 128) input slab: [ x | eps | y | 0.. | 1 ].
    b_pad = ((B + batch_tile - 1) // batch_tile) * batch_tile
    slab = jnp.zeros((b_pad, LANE), jnp.float32)
    slab = slab.at[:B, 0:dx].set(x.reshape(B, dx))
    slab = slab.at[:B, dx:2 * dx].set(eps.reshape(B, dx))
    slab = slab.at[:B, 2 * dx:2 * dx + dy].set(y.reshape(B, dy))
    slab = slab.at[:, ONES_LANE].set(1.0)
    t_pad = jnp.zeros((b_pad, 1), jnp.int32).at[:B].set(t)

    out_slab = run_fused(t_pad, slab, time_tab, params,
                         batch_tile=batch_tile, diff_lanes=diff_lanes)

    eps_hat = out_slab[:B, :dx].reshape(B, K, 3)
    return eps_hat, eps


# -----------------------------------------------------------------------------
if __name__ == "__main__":
    B = 2
    n_hand_keypoints = 8
    n_obj_keypoints = 4          # unused: object_in_encoder=False -> 0
    y_input_keypoints = 8
    temporal_dim = 32
    y_embed_dim = 32
    time_steps = 16
    beta_1, beta_T = 1e-4, 2e-2

    key = jax.random.PRNGKey(0)
    k_params, k_x, k_y, k_fwd = jax.random.split(key, 4)

    beta, alpha, sigma = make_schedules(beta_1, beta_T, time_steps)
    assert bool(jnp.all(jnp.isfinite(alpha))), "Alphas contains nan"
    assert bool(jnp.all(alpha >= 0)), "Alphas contain neg"

    params, time_tab, layout = init_model(
        k_params,
        n_hand_kp=n_hand_keypoints,
        y_input_kp=y_input_keypoints,
        temporal_dim=temporal_dim,
        y_embed_dim=y_embed_dim,
        time_steps=time_steps,
        alpha=alpha,
    )

    # Deterministic synthetic dataset statistics (set_dataset_stats stand-in).
    stats = {
        "x_hand_mean": 0.1 * jnp.arange(3, dtype=jnp.float32),
        "x_hand_std": 1.0 + 0.05 * jnp.arange(3, dtype=jnp.float32),
        "y_hand_mean": -0.05 * jnp.arange(3, dtype=jnp.float32),
        "y_hand_std": 1.0 + 0.1 * jnp.arange(3, dtype=jnp.float32),
    }

    x = jax.random.normal(k_x, (B, n_hand_keypoints, 3), jnp.float32)
    y = jax.random.normal(k_y, (B, y_input_keypoints, 3), jnp.float32)

    eps_hat, eps = kp_diffusion_forward(
        x, y, k_fwd,
        time_tab=time_tab, stats=stats, params=params,
        time_steps=time_steps,
        batch_tile=choose_batch_tile(B),
        diff_lanes=layout["diff_lanes"],
    )
    jax.block_until_ready((eps_hat, eps))

    assert eps_hat.shape == (B, n_hand_keypoints, 3)
    assert eps.shape == (B, n_hand_keypoints, 3)
    assert bool(jnp.all(jnp.isfinite(eps_hat))) and bool(jnp.all(jnp.isfinite(eps)))
    print("KERNEL_OK")
</pallas_src>

<mosaic_0001>
module attributes {stable_mosaic.version = 11 : i64} {
  func.func @fused_kernel(%arg0: i32, %arg1: memref<8x1xi32, #tpu.memory_space<vmem>>, %arg2: memref<8x128xf32, #tpu.memory_space<vmem>>, %arg3: memref<16x128xf32, #tpu.memory_space<vmem>>, %arg4: memref<128x2048xbf16, #tpu.memory_space<vmem>>, %arg5: memref<2048x128xbf16, #tpu.memory_space<vmem>>, %arg6: memref<128x512xbf16, #tpu.memory_space<vmem>>, %arg7: memref<2x512x512xbf16, #tpu.memory_space<vmem>>, %arg8: memref<512x128xbf16, #tpu.memory_space<vmem>>, %arg9: memref<8x512xf32, #tpu.memory_space<vmem>>, %arg10: memref<8x128xf32, #tpu.memory_space<vmem>>) attributes {dimension_semantics = [#tpu.dimension_semantics<parallel>], iteration_bounds = array<i64: 1>, scalar_prefetch = 0 : i64, scratch_operands = 0 : i64, tpu.core_type = #tpu.core_type<tc>, window_params = [{transform_indices = @transform_0, window_bounds = array<i64: 8, 1>}, {transform_indices = @transform_1, window_bounds = array<i64: 8, 128>}, {pipeline_mode = #tpu.pipeline_mode<synchronous>, transform_indices = @transform_2, window_bounds = array<i64: 16, 128>}, {pipeline_mode = #tpu.pipeline_mode<synchronous>, transform_indices = @transform_3, window_bounds = array<i64: 128, 2048>}, {pipeline_mode = #tpu.pipeline_mode<synchronous>, transform_indices = @transform_4, window_bounds = array<i64: 2048, 128>}, {pipeline_mode = #tpu.pipeline_mode<synchronous>, transform_indices = @transform_5, window_bounds = array<i64: 128, 512>}, {pipeline_mode = #tpu.pipeline_mode<synchronous>, transform_indices = @transform_6, window_bounds = array<i64: 2, 512, 512>}, {pipeline_mode = #tpu.pipeline_mode<synchronous>, transform_indices = @transform_7, window_bounds = array<i64: 512, 128>}, {pipeline_mode = #tpu.pipeline_mode<synchronous>, transform_indices = @transform_8, window_bounds = array<i64: 8, 512>}, {transform_indices = @transform_9, window_bounds = array<i64: 8, 128>}]} {
    %c0 = arith.constant 0 : index
    %c0_0 = arith.constant 0 : index
    %0 = vector.load %arg1[%c0, %c0_0] : memref<8x1xi32, #tpu.memory_space<vmem>>, vector<8x1xi32>
    %c0_1 = arith.constant 0 : index
    %c0_2 = arith.constant 0 : index
    %1 = vector.load %arg2[%c0_1, %c0_2] : memref<8x128xf32, #tpu.memory_space<vmem>>, vector<8x128xf32>
    %2 = tpu.iota {dimensions = array<i32: 1>} : vector<8x16xi32>
    %3 = vector.broadcast %0 : vector<8x1xi32> to vector<8x16xi32>
    %4 = arith.cmpi eq, %2, %3 : vector<8x16xi32>
    %cst = arith.constant 1.000000e+00 : f32
    %cst_3 = arith.constant 0.000000e+00 : f32
    %5 = vector.broadcast %cst : f32 to vector<8x16xf32>
    %6 = vector.broadcast %cst_3 : f32 to vector<8x16xf32>
    %7 = arith.select %4, %5, %6 : vector<8x16xi1>, vector<8x16xf32>
    %c0_4 = arith.constant 0 : index
    %c0_5 = arith.constant 0 : index
    %8 = vector.load %arg3[%c0_4, %c0_5] : memref<16x128xf32, #tpu.memory_space<vmem>>, vector<16x128xf32>
    %cst_6 = arith.constant dense<0.000000e+00> : vector<8x128xf32>
    %9 = tpu.matmul %7, %8, %cst_6 {dimension_numbers = #tpu.dot_dimension_numbers<[1], [0], [0], [1], [0, 0, 1, 1], [], []>} : vector<8x16xf32>, vector<16x128xf32>, vector<8x128xf32> -> vector<8x128xf32>
    %10 = tpu.iota {dimensions = array<i32: 1>} : vector<8x128xi32>
    %c48_i32 = arith.constant 48 : i32
    %11 = vector.broadcast %c48_i32 : i32 to vector<8x128xi32>
    %12 = arith.cmpi slt, %10, %11 : vector<8x128xi32>
    %13 = arith.mulf %1, %9 : vector<8x128xf32>
    %14 = arith.select %12, %13, %9 : vector<8x128xi1>, vector<8x128xf32>
    %15 = arith.truncf %1 : vector<8x128xf32> to vector<8x128xbf16>
    %c0_7 = arith.constant 0 : index
    %c0_8 = arith.constant 0 : index
    %16 = vector.load %arg4[%c0_7, %c0_8] : memref<128x2048xbf16, #tpu.memory_space<vmem>>, vector<128x2048xbf16>
    %cst_9 = arith.constant dense<0.000000e+00> : vector<8x2048xf32>
    %17 = tpu.matmul %15, %16, %cst_9 {dimension_numbers = #tpu.dot_dimension_numbers<[1], [0], [0], [1], [0, 0, 1, 1], [], []>} : vector<8x128xbf16>, vector<128x2048xbf16>, vector<8x2048xf32> -> vector<8x2048xf32>
    %cst_10 = arith.constant 0.000000e+00 : f32
    %18 = vector.broadcast %cst_10 : f32 to vector<8x2048xf32>
    %19 = arith.maximumf %17, %18 : vector<8x2048xf32>
    %20 = arith.truncf %19 : vector<8x2048xf32> to vector<8x2048xbf16>
    %c0_11 = arith.constant 0 : index
    %c0_12 = arith.constant 0 : index
    %21 = vector.load %arg5[%c0_11, %c0_12] : memref<2048x128xbf16, #tpu.memory_space<vmem>>, vector<2048x128xbf16>
    %cst_13 = arith.constant dense<0.000000e+00> : vector<8x128xf32>
    %22 = tpu.matmul %20, %21, %cst_13 {dimension_numbers = #tpu.dot_dimension_numbers<[1], [0], [0], [1], [0, 0, 1, 1], [], []>} : vector<8x2048xbf16>, vector<2048x128xbf16>, vector<8x128xf32> -> vector<8x128xf32>
    %23 = arith.addf %14, %22 : vector<8x128xf32>
    %24 = arith.truncf %23 : vector<8x128xf32> to vector<8x128xbf16>
    %c0_14 = arith.constant 0 : index
    %c0_15 = arith.constant 0 : index
    %25 = vector.load %arg6[%c0_14, %c0_15] : memref<128x512xbf16, #tpu.memory_space<vmem>>, vector<128x512xbf16>
    %cst_16 = arith.constant dense<0.000000e+00> : vector<8x512xf32>
    %26 = tpu.matmul %24, %25, %cst_16 {dimension_numbers = #tpu.dot_dimension_numbers<[1], [0], [0], [1], [0, 0, 1, 1], [], []>} : vector<8x128xbf16>, vector<128x512xbf16>, vector<8x512xf32> -> vector<8x512xf32>
    %cst_17 = arith.constant 0.000000e+00 : f32
    %27 = vector.broadcast %cst_17 : f32 to vector<8x512xf32>
    %28 = arith.maximumf %26, %27 : vector<8x512xf32>
    %29 = arith.truncf %28 : vector<8x512xf32> to vector<8x512xbf16>
    %c0_18 = arith.constant 0 : index
    %c0_19 = arith.constant 0 : index
    %c0_20 = arith.constant 0 : index
    %30 = vector.load %arg7[%c0_18, %c0_19, %c0_20] : memref<2x512x512xbf16, #tpu.memory_space<vmem>>, vector<1x512x512xbf16>
    %31 = vector.shape_cast %30 : vector<1x512x512xbf16> to vector<512x512xbf16>
    %cst_21 = arith.constant dense<0.000000e+00> : vector<8x512xf32>
    %32 = tpu.matmul %29, %31, %cst_21 {dimension_numbers = #tpu.dot_dimension_numbers<[1], [0], [0], [1], [0, 0, 1, 1], [], []>} : vector<8x512xbf16>, vector<512x512xbf16>, vector<8x512xf32> -> vector<8x512xf32>
    %c0_22 = arith.constant 0 : index
    %c0_23 = arith.constant 0 : index
    %33 = vector.load %arg9[%c0_22, %c0_23] : memref<8x512xf32, #tpu.memory_space<vmem>>, vector<1x512xf32>
    %34 = vector.broadcast %33 : vector<1x512xf32> to vector<8x512xf32>
    %35 = arith.addf %32, %34 : vector<8x512xf32>
    %cst_24 = arith.constant 0.000000e+00 : f32
    %36 = vector.broadcast %cst_24 : f32 to vector<8x512xf32>
    %37 = arith.maximumf %35, %36 : vector<8x512xf32>
    %38 = arith.addf %28, %37 : vector<8x512xf32>
    %39 = arith.truncf %38 : vector<8x512xf32> to vector<8x512xbf16>
    %c1 = arith.constant 1 : index
    %c0_25 = arith.constant 0 : index
    %c0_26 = arith.constant 0 : index
    %40 = vector.load %arg7[%c1, %c0_25, %c0_26] : memref<2x512x512xbf16, #tpu.memory_space<vmem>>, vector<1x512x512xbf16>
    %41 = vector.shape_cast %40 : vector<1x512x512xbf16> to vector<512x512xbf16>
    %cst_27 = arith.constant dense<0.000000e+00> : vector<8x512xf32>
    %42 = tpu.matmul %39, %41, %cst_27 {dimension_numbers = #tpu.dot_dimension_numbers<[1], [0], [0], [1], [0, 0, 1, 1], [], []>} : vector<8x512xbf16>, vector<512x512xbf16>, vector<8x512xf32> -> vector<8x512xf32>
    %c1_28 = arith.constant 1 : index
    %c0_29 = arith.constant 0 : index
    %43 = vector.load %arg9[%c1_28, %c0_29] : memref<8x512xf32, #tpu.memory_space<vmem>>, vector<1x512xf32>
    %44 = vector.broadcast %43 : vector<1x512xf32> to vector<8x512xf32>
    %45 = arith.addf %42, %44 : vector<8x512xf32>
    %cst_30 = arith.constant 0.000000e+00 : f32
    %46 = vector.broadcast %cst_30 : f32 to vector<8x512xf32>
    %47 = arith.maximumf %45, %46 : vector<8x512xf32>
    %48 = arith.addf %38, %47 : vector<8x512xf32>
    %49 = arith.truncf %48 : vector<8x512xf32> to vector<8x512xbf16>
    %c0_31 = arith.constant 0 : index
    %c0_32 = arith.constant 0 : index
    %50 = vector.load %arg8[%c0_31, %c0_32] : memref<512x128xbf16, #tpu.memory_space<vmem>>, vector<512x128xbf16>
    %cst_33 = arith.constant dense<0.000000e+00> : vector<8x128xf32>
    %51 = tpu.matmul %49, %50, %cst_33 {dimension_numbers = #tpu.dot_dimension_numbers<[1], [0], [0], [1], [0, 0, 1, 1], [], []>} : vector<8x512xbf16>, vector<512x128xbf16>, vector<8x128xf32> -> vector<8x128xf32>
    %c2 = arith.constant 2 : index
    %c0_34 = arith.constant 0 : index
    %52 = vector.load %arg9[%c2, %c0_34] : memref<8x512xf32, #tpu.memory_space<vmem>>, vector<1x128xf32>
    %53 = vector.broadcast %52 : vector<1x128xf32> to vector<8x128xf32>
    %54 = arith.addf %51, %53 : vector<8x128xf32>
    %c0_35 = arith.constant 0 : index
    %c0_36 = arith.constant 0 : index
    %55 = vector.load %arg10[%c0_35, %c0_36] : memref<8x128xf32, #tpu.memory_space<vmem>>, vector<8x128xf32>
    tpu.vector_store %arg10[%c0_35, %c0_36], %54 {strides = array<i32>} : memref<8x128xf32, #tpu.memory_space<vmem>>, vector<8x128xf32>,
    return
  }
  func.func @transform_0(%arg0: i32) -> (i32, i32) {
    %c0_i32 = arith.constant 0 : i32
    %c0_i32_0 = arith.constant 0 : i32
    return %arg0, %c0_i32 : i32, i32
  }
  func.func @transform_1(%arg0: i32) -> (i32, i32) {
    %c0_i32 = arith.constant 0 : i32
    %c0_i32_0 = arith.constant 0 : i32
    return %arg0, %c0_i32 : i32, i32
  }
  func.func @transform_2(%arg0: i32) -> (i32, i32) {
    %c0_i32 = arith.constant 0 : i32
    %c0_i32_0 = arith.constant 0 : i32
    %c0_i32_1 = arith.constant 0 : i32
    return %c0_i32, %c0_i32_0 : i32, i32
  }
  func.func @transform_3(%arg0: i32) -> (i32, i32) {
    %c0_i32 = arith.constant 0 : i32
    %c0_i32_0 = arith.constant 0 : i32
    %c0_i32_1 = arith.constant 0 : i32
    return %c0_i32, %c0_i32_0 : i32, i32
  }
  func.func @transform_4(%arg0: i32) -> (i32, i32) {
    %c0_i32 = arith.constant 0 : i32
    %c0_i32_0 = arith.constant 0 : i32
    %c0_i32_1 = arith.constant 0 : i32
    return %c0_i32, %c0_i32_0 : i32, i32
  }
  func.func @transform_5(%arg0: i32) -> (i32, i32) {
    %c0_i32 = arith.constant 0 : i32
    %c0_i32_0 = arith.constant 0 : i32
    %c0_i32_1 = arith.constant 0 : i32
    return %c0_i32, %c0_i32_0 : i32, i32
  }
  func.func @transform_6(%arg0: i32) -> (i32, i32, i32) {
    %c0_i32 = arith.constant 0 : i32
    %c0_i32_0 = arith.constant 0 : i32
    %c0_i32_1 = arith.constant 0 : i32
    %c0_i32_2 = arith.constant 0 : i32
    return %c0_i32, %c0_i32_0, %c0_i32_1 : i32, i32, i32
  }
  func.func @transform_7(%arg0: i32) -> (i32, i32) {
    %c0_i32 = arith.constant 0 : i32
    %c0_i32_0 = arith.constant 0 : i32
    %c0_i32_1 = arith.constant 0 : i32
    return %c0_i32, %c0_i32_0 : i32, i32
  }
  func.func @transform_8(%arg0: i32) -> (i32, i32) {
    %c0_i32 = arith.constant 0 : i32
    %c0_i32_0 = arith.constant 0 : i32
    %c0_i32_1 = arith.constant 0 : i32
    return %c0_i32, %c0_i32_0 : i32, i32
  }
  func.func @transform_9(%arg0: i32) -> (i32, i32) {
    %c0_i32 = arith.constant 0 : i32
    %c0_i32_0 = arith.constant 0 : i32
    return %arg0, %c0_i32 : i32, i32
  }
}

</mosaic_0001>

<bundles_post_ra>
// kernel: kp_diffusion_forward.1
= control target key start
LH: loop header
LB: loop body
LE: loop exit
PB: predicated region body
PF: predicated region fallthrough
CT: control target
= control target key end

     0   :  { %14 = vsyncpa [#allocation3], 0  ;;  %s8244_s0 = inlined_call_operand.vmem [shape: s32[8,1], index: 0, kind: input, shape index: {}]   ;;  %s8245_s1 = inlined_call_operand.vmem [shape: f32[8,128], index: 1, kind: input, shape index: {}]   ;;  %s8246_s2 = inlined_call_operand.vmem [shape: f32[16,128], index: 2, kind: input, shape index: {}]   ;;  %s8247_s3 = inlined_call_operand.hbm [shape: bf16[128,2048], index: 3, kind: input, shape index: {}]   ;;  %s8248_s4 = inlined_call_operand.hbm [shape: bf16[2048,128], index: 4, kind: input, shape index: {}]   ;;  %s8249_s5 = inlined_call_operand.hbm [shape: bf16[128,512], index: 5, kind: input, shape index: {}]   ;;  %s8250_s6 = inlined_call_operand.hbm [shape: bf16[2,512,512], index: 6, kind: input, shape index: {}]   ;;  %s8251_s7 = inlined_call_operand.hbm [shape: bf16[512,128], index: 7, kind: input, shape index: {}]   ;;  %s8252_s8 = inlined_call_operand.vmem [shape: f32[8,512], index: 8, kind: input, shape index: {}]   ;;  %s8253_s9 = inlined_call_operand.vmem [shape: f32[8,128], index: 9, kind: output, shape index: {}]  }
   0x1   :  { %15 = vsyncpa [#allocation5], 0  ;;  %s40_s11 = sshll.u32 %s8248_s4, 4  ;;  %s41_s11 = int_to_ptr.hbm [resolvable:$true] %s40_s11 }
   0x2   :  { %16 = vsyncpa [#allocation8], 0  ;;  %s7980_s12 = smov [#allocation4]   ;;  %s7981_s14 = smov 64  }
   0x3   :  { %s42_s13 = sshll.u32 %s7980_s12, 4  ;;  %s7982_s15 = smov 4   ;;  %s43_s13 = int_to_ptr.vmem [resolvable:$true] %s42_s13 }
   0x4   :  { %48 = dma.hbm_to_vmem [thread:$0]  %s41_s11, 16384, %s43_s13, [#allocation5], %s7981_s14, %s7981_s14, %s7982_s15  }
   0x5   :  { %s66_s18 = sshll.u32 %s8250_s6, 4  ;;  %s7983_s19 = smov [#allocation7]   ;;  %s67_s18 = int_to_ptr.hbm [resolvable:$true] %s66_s18 }
   0x6   :  { %s68_s20 = sshll.u32 %s7983_s19, 4  ;;  %s27_s22 = sshll.u32 %s8247_s3, 4  ;;  %s69_s20 = int_to_ptr.vmem [resolvable:$true] %s68_s20  ;;  %s28_s22 = int_to_ptr.hbm [resolvable:$true] %s27_s22 }
   0x7   :  { %s7984_s23 = smov 256   ;;  %s7985_s24 = smov 16  }
   0x8   :  { %74 = dma.hbm_to_vmem [thread:$0]  %s67_s18, 32768, %s69_s20, [#allocation8], %s7984_s23, %s7984_s23, %s7985_s24  }
   0x9   :  { %s7986_s25 = smov [#allocation2]   ;;  %s53_s29 = sshll.u32 %s8249_s5, 4  ;;  %s54_s29 = int_to_ptr.hbm [resolvable:$true] %s53_s29 }
   0xa   :  { %s29_s26 = sshll.u32 %s7986_s25, 4  ;;  %s7987_s6 = smov 1024   ;;  %s30_s26 = int_to_ptr.vmem [resolvable:$true] %s29_s26 }
   0xb   :  { %35 = dma.hbm_to_vmem [thread:$0]  %s28_s22, 16384, %s30_s26, [#allocation3], %s7987_s6, %s7987_s6, %s7981_s14  }
   0xc   :  { %s79_s3 = sshll.u32 %s8251_s7, 4  ;;  %s7988_s11 = smov [#allocation6]   ;;  %s80_s3 = int_to_ptr.hbm [resolvable:$true] %s79_s3 }
   0xd   :  { %s55_s12 = sshll.u32 %s7988_s11, 4  ;;  %s7989_s13 = smov [#allocation9]   ;;  %s56_s12 = int_to_ptr.vmem [resolvable:$true] %s55_s12 }
   0xe   :  { %61 = dma.hbm_to_vmem [thread:$0]  %s54_s29, 4096, %s56_s12, [#allocation5], %s7984_s23, %s7984_s23, %s7985_s24  }
   0xf   :  { %s81_s16 = sshll.u32 %s7989_s13, 4  ;;  %s82_s16 = int_to_ptr.vmem [resolvable:$true] %s81_s16 }
  0x10   :  { %87 = dma.hbm_to_vmem [thread:$0]  %s80_s3, 4096, %s82_s16, [#allocation8], %s7981_s14, %s7981_s14, %s7982_s15  }
  0x11   :  { %7974 = dma.done.wait [#allocation3], 16384  }
  0x12   :  { %7975 = vsyncadd [#allocation3], 4294950912 }
  0x13   :  { %7976 = dma.done.wait [#allocation5], 20480  }
  0x14   :  { %7977 = vsyncadd [#allocation5], 4294946816 }
  0x15   :  { %7978 = dma.done.wait [#allocation8], 36864  }
  0x16   :  { %7979 = vsyncadd [#allocation8], 4294930432  ;;  %v7990_v0 = vmov 0   ;;  %v110_v1 = vld [vmem:[%s8244_s0] sm:$0xff]  ;;  %v5417_v5 = vld [vmem:[#allocation2 + $0x388] sm:$0xf] }
  0x17   :  { %7852 = vset.pattern.permute.xlu0 %v7990_v0  ;;  %v7376_v2 = vld [vmem:[#allocation2 + $0x384] sm:$0xf]  ;;  %v7385_v6 = vld [vmem:[#allocation2 + $0x3c4] sm:$0xf0]  ;;  %v5409_v13 = vld [vmem:[#allocation2 + $0x380] sm:$0xf] }
  0x18   :  { %v5411_v3 = vld [vmem:[#allocation2 + $0x3c0] sm:$0xf0]  ;;  %115 = vperm.xlu0 %7852, %v110_v1   ;;  %v5418_v8 = vor.u32 %v7385_v6, %v5417_v5  ;;  %v5353_v10 = vld [vmem:[#allocation2 + $0x308] sm:$0xf]  ;;  %v7384_v17 = vld [vmem:[#allocation2 + $0x3bc] sm:$0xf0] }
  0x19   :  { %v5414_v4 = vor.u32 %v7376_v2, %v5411_v3  ;;  %v7360_v7 = vld [vmem:[#allocation2 + $0x304] sm:$0xf]  ;;  %v7369_v11 = vld [vmem:[#allocation2 + $0x344] sm:$0xf0]  ;;  %v5410_v18 = vor.u32 %v7384_v17, %v5409_v13  ;;  %v5345_v21 = vld [vmem:[#allocation2 + $0x300] sm:$0xf] }
  0x1a   :  { %v5347_v9 = vld [vmem:[#allocation2 + $0x340] sm:$0xf0]  ;;  %943 = vmatpush.bf16.msra.mxu3 %v5418_v8  ;;  %v5354_v14 = vor.u32 %v7369_v11, %v5353_v10  ;;  %v5289_v19 = vld [vmem:[#allocation2 + $0x288] sm:$0xf]  ;;  %v7368_v22 = vld [vmem:[#allocation2 + $0x33c] sm:$0xf0] }
  0x1b   :  { %930 = vmatpush.bf16.msra.mxu2 %v5414_v4  ;;  %v5350_v12 = vor.u32 %v7360_v7, %v5347_v9  ;;  %v7344_v15 = vld [vmem:[#allocation2 + $0x284] sm:$0xf]  ;;  %v7353_v20 = vld [vmem:[#allocation2 + $0x2c4] sm:$0xf0]  ;;  %917 = vmatpush.bf16.msra.mxu1 %v5410_v18  ;;  %v5346_v25 = vor.u32 %v7368_v22, %v5345_v21  ;;  %v5281_v28 = vld [vmem:[#allocation2 + $0x280] sm:$0xf] }
  0x1c   :  { %v5283_v16 = vld [vmem:[#allocation2 + $0x2c0] sm:$0xf0]  ;;  %v5290_v26 = vor.u32 %v7353_v20, %v5289_v19  ;;  %v7352_v29 = vld [vmem:[#allocation2 + $0x2bc] sm:$0xf0]  ;;  %v5225_v30 = vld [vmem:[#allocation2 + $0x208] sm:$0xf] }
  0x1d   :  { %v5286_v23 = vor.u32 %v7344_v15, %v5283_v16  ;;  %v7328_v24 = vld [vmem:[#allocation2 + $0x204] sm:$0xf]  ;;  %v7337_v31 = vld [vmem:[#allocation2 + $0x244] sm:$0xf0]  ;;  %v5282_v34 = vor.u32 %v7352_v29, %v5281_v28  ;;  %v5217_v37 = vld [vmem:[#allocation2 + $0x200] sm:$0xf] }
  0x1e   :  { %944 = vmatpush.bf16.msra.mxu3 %v5354_v14  ;;  %v5219_v27 = vld [vmem:[#allocation2 + $0x240] sm:$0xf0]  ;;  %v5226_v35 = vor.u32 %v7337_v31, %v5225_v30  ;;  %v7336_v38 = vld [vmem:[#allocation2 + $0x23c] sm:$0xf0]  ;;  %v5161_v39 = vld [vmem:[#allocation2 + $0x188] sm:$0xf] }
  0x1f   :  { %931 = vmatpush.bf16.msra.mxu2 %v5350_v12  ;;  %v5222_v32 = vor.u32 %v7328_v24, %v5219_v27  ;;  %918 = vmatpush.bf16.msra.mxu1 %v5346_v25  ;;  %v7312_v33 = vld [vmem:[#allocation2 + $0x184] sm:$0xf]  ;;  %v7321_v40 = vld [vmem:[#allocation2 + $0x1c4] sm:$0xf0]  ;;  %v5218_v43 = vor.u32 %v7336_v38, %v5217_v37  ;;  %v5153_v46 = vld [vmem:[#allocation2 + $0x180] sm:$0xf] }
  0x20   :  { %v5155_v36 = vld [vmem:[#allocation2 + $0x1c0] sm:$0xf0]  ;;  %v5162_v44 = vor.u32 %v7321_v40, %v5161_v39  ;;  %v7320_v47 = vld [vmem:[#allocation2 + $0x1bc] sm:$0xf0]  ;;  %v5097_v48 = vld [vmem:[#allocation2 + $0x108] sm:$0xf] }
  0x21   :  { %v5158_v41 = vor.u32 %v7312_v33, %v5155_v36  ;;  %v7296_v42 = vld [vmem:[#allocation2 + $0x104] sm:$0xf]  ;;  %v7305_v49 = vld [vmem:[#allocation2 + $0x144] sm:$0xf0]  ;;  %v5154_v54 = vor.u32 %v7320_v47, %v5153_v46  ;;  %v7377_v55 = vld [vmem:[#allocation2 + $0x38c] sm:$0xf] }
  0x22   :  { %945 = vmatpush.bf16.msra.mxu3 %v5290_v26  ;;  %v5091_v45 = vld [vmem:[#allocation2 + $0x140] sm:$0xf0]  ;;  %v120_v50 = vld [vmem:[%s8246_s2 + $0x8] sm:$0xff]  ;;  %v5098_v57 = vor.u32 %v7305_v49, %v5097_v48  ;;  %v5089_v59 = vld [vmem:[#allocation2 + $0x100] sm:$0xf]  ;;  %vm121_vm0 = vcmask 130048  }
  0x23   :  { %932 = vmatpush.bf16.msra.mxu2 %v5286_v23  ;;  %919 = vmatpush.bf16.msra.mxu1 %v5282_v34  ;;  %v119_v51 = vld [vmem:[%s8246_s2] sm:$0xff]  ;;  %v5094_v52 = vor.u32 %v7296_v42, %v5091_v45  ;;  %v5419_v56 = vld [vmem:[#allocation2 + $0x3c8] sm:$0xf0]  ;;  %v5033_v62 = vld [vmem:[#allocation2 + $0x88] sm:$0xf] }
  0x24   :  { %139 = vmatpush.msra.mxu0 %v120_v50  ;;  %v7280_v53 = vld [vmem:[#allocation2 + $0x84] sm:$0xf]  ;;  %v7304_v60 = vld [vmem:[#allocation2 + $0x13c] sm:$0xf0]  ;;  %v5422_v61 = vor.u32 %v7377_v55, %v5419_v56  ;;  %v7289_v63 = vld [vmem:[#allocation2 + $0xc4] sm:$0xf0] }
  0x25   :  { %v5027_v58 = vld [vmem:[#allocation2 + $0xc0] sm:$0xf0]  ;;  %v7361_v1 = vld [vmem:[#allocation2 + $0x30c] sm:$0xf]  ;;  %v7378_v5 = vld [vmem:[#allocation2 + $0x394] sm:$0xf]  ;;  %v5090_v7 = vor.u32 %v7304_v60, %v5089_v59  ;;  %v5034_v9 = vor.u32 %v7289_v63, %v5033_v62 }
  0x26   :  { %946 = vmatpush.bf16.msra.mxu3 %v5226_v35  ;;  %140 = vmatpush.msra.mxu0 %v119_v51  ;;  %v7264_v0 = vld [vmem:[#allocation2 + $0x4] sm:$0xf]  ;;  %v5355_v2 = vld [vmem:[#allocation2 + $0x348] sm:$0xf0]  ;;  %v5030_v3 = vor.u32 %v7280_v53, %v5027_v58  ;;  %v5427_v6 = vld [vmem:[#allocation2 + $0x3d0] sm:$0xf0] }
  0x27   :  { %933 = vmatpush.bf16.msra.mxu2 %v5222_v32  ;;  %920 = vmatpush.bf16.msra.mxu1 %v5218_v43  ;;  %v4963_v4 = vld [vmem:[#allocation2 + $0x40] sm:$0xf0]  ;;  %v5358_v8 = vor.u32 %v7361_v1, %v5355_v2  ;;  %v4969_v10 = vld [vmem:[#allocation2 + $0x8] sm:$0xf]  ;;  %v5025_v11 = vld [vmem:[#allocation2 + $0x80] sm:$0xf]  ;;  %v5430_v23 = vor.u32 %v7378_v5, %v5427_v6 }
  0x28   :  { %956 = vmatpush.bf16.msrb.mxu0 %v5422_v61  ;;  %v7288_v12 = vld [vmem:[#allocation2 + $0xbc] sm:$0xf0]  ;;  %v7273_v13 = vld [vmem:[#allocation2 + $0x44] sm:$0xf0]  ;;  %v7345_v14 = vld [vmem:[#allocation2 + $0x28c] sm:$0xf]  ;;  %v4966_v19 = vor.u32 %v7264_v0, %v4963_v4 }
  0x29   :  { %v5291_v15 = vld [vmem:[#allocation2 + $0x2c8] sm:$0xf0]  ;;  %v5433_v16 = vld [vmem:[#allocation2 + $0x398] sm:$0xf]  ;;  %v7362_v20 = vld [vmem:[#allocation2 + $0x314] sm:$0xf]  ;;  %v5026_v21 = vor.u32 %v7288_v12, %v5025_v11  ;;  %v4970_v24 = vor.u32 %v7273_v13, %v4969_v10 }
  0x2a   :  { %947 = vmatpush.bf16.msra.mxu3 %v5162_v44  ;;  %v7387_v17 = vld [vmem:[#allocation2 + $0x3d4] sm:$0xf0]  ;;  %v5294_v18 = vor.u32 %v7345_v14, %v5291_v15  ;;  %v7329_v22 = vld [vmem:[#allocation2 + $0x20c] sm:$0xf]  ;;  %v4961_v25 = vld [vmem:[#allocation2] sm:$0xf] }
  0x2b   :  { %934 = vmatpush.bf16.msra.mxu2 %v5158_v41  ;;  %921 = vmatpush.bf16.msra.mxu1 %v5154_v54  ;;  %v7272_v26 = vld [vmem:[#allocation2 + $0x3c] sm:$0xf0]  ;;  %v5227_v27 = vld [vmem:[#allocation2 + $0x248] sm:$0xf0]  ;;  %v5434_v28 = vor.u32 %v7387_v17, %v5433_v16  ;;  %v5363_v29 = vld [vmem:[#allocation2 + $0x350] sm:$0xf0] }
  0x2c   :  { %957 = vmatpush.bf16.msrb.mxu0 %v5358_v8  ;;  %v5425_v30 = vld [vmem:[#allocation2 + $0x390] sm:$0xf]  ;;  %v5369_v32 = vld [vmem:[#allocation2 + $0x318] sm:$0xf]  ;;  %v5230_v34 = vor.u32 %v7329_v22, %v5227_v27  ;;  %v4962_v35 = vor.u32 %v7272_v26, %v4961_v25  ;;  %v7313_v36 = vld [vmem:[#allocation2 + $0x18c] sm:$0xf]  ;;  %v5366_v38 = vor.u32 %v7362_v20, %v5363_v29 }
  0x2d   :  { %v7386_v31 = vld [vmem:[#allocation2 + $0x3cc] sm:$0xf0]  ;;  %v7371_v33 = vld [vmem:[#allocation2 + $0x354] sm:$0xf0]  ;;  %v5163_v37 = vld [vmem:[#allocation2 + $0x1c8] sm:$0xf0] }
  0x2e   :  { %948 = vmatpush.bf16.msra.mxu3 %v5098_v57  ;;  %v7346_v39 = vld [vmem:[#allocation2 + $0x294] sm:$0xf]  ;;  %v5426_v40 = vor.u32 %v7386_v31, %v5425_v30  ;;  %v5370_v41 = vor.u32 %v7371_v33, %v5369_v32  ;;  %v5361_v43 = vld [vmem:[#allocation2 + $0x310] sm:$0xf]  ;;  %v5305_v45 = vld [vmem:[#allocation2 + $0x298] sm:$0xf]  ;;  %v5166_v47 = vor.u32 %v7313_v36, %v5163_v37 }
  0x2f   :  { %935 = vmatpush.bf16.msra.mxu2 %v5094_v52  ;;  %922 = vmatpush.bf16.msra.mxu1 %v5090_v7  ;;  %v5299_v42 = vld [vmem:[#allocation2 + $0x2d0] sm:$0xf0]  ;;  %v7370_v44 = vld [vmem:[#allocation2 + $0x34c] sm:$0xf0]  ;;  %v7355_v46 = vld [vmem:[#allocation2 + $0x2d4] sm:$0xf0] }
  0x30   :  { %958 = vmatpush.bf16.msrb.mxu0 %v5294_v18  ;;  %v111_v48 = vld [vmem:[%s8245_s1] sm:$0xff]  ;;  %v7297_v49 = vld [vmem:[#allocation2 + $0x10c] sm:$0xf]  ;;  %v5302_v52 = vor.u32 %v7346_v39, %v5299_v42  ;;  %v7330_v53 = vld [vmem:[#allocation2 + $0x214] sm:$0xf]  ;;  %v5362_v54 = vor.u32 %v7370_v44, %v5361_v43  ;;  %v5306_v55 = vor.u32 %v7355_v46, %v5305_v45 }
  0x31   :  { %v5099_v50 = vld [vmem:[#allocation2 + $0x148] sm:$0xf0]  ;;  %v8076_v51 = vpack.c.bf16 %v111_v48, %v111_v48  ;;  %v5235_v56 = vld [vmem:[#allocation2 + $0x250] sm:$0xf0]  ;;  %v5297_v57 = vld [vmem:[#allocation2 + $0x290] sm:$0xf] }
  0x32   :  { %949 = vmatpush.bf16.msra.mxu3 %v5034_v9  ;;  %v7354_v58 = vld [vmem:[#allocation2 + $0x2cc] sm:$0xf0]  ;;  %v5241_v59 = vld [vmem:[#allocation2 + $0x218] sm:$0xf]  ;;  %v5102_v61 = vor.u32 %v7297_v49, %v5099_v50  ;;  %v7281_v62 = vld [vmem:[#allocation2 + $0x8c] sm:$0xf]  ;;  %v5238_v0 = vor.u32 %v7330_v53, %v5235_v56 }
  0x33   :  { %936 = vmatpush.bf16.msra.mxu2 %v5030_v3  ;;  %923 = vmatpush.bf16.msra.mxu1 %v5026_v21  ;;  %v7339_v60 = vld [vmem:[#allocation2 + $0x254] sm:$0xf0]  ;;  %v5035_v63 = vld [vmem:[#allocation2 + $0xc8] sm:$0xf0]  ;;  %v7314_v1 = vld [vmem:[#allocation2 + $0x194] sm:$0xf]  ;;  %v5298_v2 = vor.u32 %v7354_v58, %v5297_v57 }
  0x34   :  { %959 = vmatpush.bf16.msrb.mxu0 %v5230_v34  ;;  %v5242_v3 = vor.u32 %v7339_v60, %v5241_v59  ;;  %v5171_v4 = vld [vmem:[#allocation2 + $0x1d0] sm:$0xf0]  ;;  %v5233_v5 = vld [vmem:[#allocation2 + $0x210] sm:$0xf]  ;;  %v5177_v7 = vld [vmem:[#allocation2 + $0x198] sm:$0xf]  ;;  %v5038_v9 = vor.u32 %v7281_v62, %v5035_v63 }
  0x35   :  { %v7338_v6 = vld [vmem:[#allocation2 + $0x24c] sm:$0xf0]  ;;  %v7323_v8 = vld [vmem:[#allocation2 + $0x1d4] sm:$0xf0]  ;;  %v5174_v10 = vor.u32 %v7314_v1, %v5171_v4  ;;  %v7298_v11 = vld [vmem:[#allocation2 + $0x114] sm:$0xf] }
  0x36   :  { %950 = vmatpush.bf16.msra.mxu3 %v4970_v24  ;;  %v5234_v12 = vor.u32 %v7338_v6, %v5233_v5  ;;  %v5178_v13 = vor.u32 %v7323_v8, %v5177_v7  ;;  %v5107_v14 = vld [vmem:[#allocation2 + $0x150] sm:$0xf0]  ;;  %v5169_v15 = vld [vmem:[#allocation2 + $0x190] sm:$0xf]  ;;  %v5113_v17 = vld [vmem:[#allocation2 + $0x118] sm:$0xf] }
  0x37   :  { %937 = vmatpush.bf16.msra.mxu2 %v4966_v19  ;;  %924 = vmatpush.bf16.msra.mxu1 %v4962_v35  ;;  %v7322_v16 = vld [vmem:[#allocation2 + $0x1cc] sm:$0xf0]  ;;  %v7307_v18 = vld [vmem:[#allocation2 + $0x154] sm:$0xf0]  ;;  %v5110_v19 = vor.u32 %v7298_v11, %v5107_v14  ;;  %v7282_v20 = vld [vmem:[#allocation2 + $0x94] sm:$0xf] }
  0x38   :  { %960 = vmatpush.bf16.msrb.mxu0 %v5166_v47  ;;  %v5170_v21 = vor.u32 %v7322_v16, %v5169_v15  ;;  %v5114_v22 = vor.u32 %v7307_v18, %v5113_v17  ;;  %v5105_v24 = vld [vmem:[#allocation2 + $0x110] sm:$0xf]  ;;  %v5049_v26 = vld [vmem:[#allocation2 + $0x98] sm:$0xf]  ;;  %v7266_v29 = vld [vmem:[#allocation2 + $0x14] sm:$0xf] }
  0x39   :  { %951 = vmatmul.bf16.vlgmr.msra.gmra.mxu3 %v8076_v51  ;;  %v7306_v25 = vld [vmem:[#allocation2 + $0x14c] sm:$0xf0]  ;;  %v7291_v27 = vld [vmem:[#allocation2 + $0xd4] sm:$0xf0]  ;;  %v4979_v30 = vld [vmem:[#allocation2 + $0x50] sm:$0xf0] }
  0x3a   :  { %995 = vmatpush.bf16.msrb.mxu3 %v5434_v28  ;;  %938 = vmatmul.bf16.vlgmr.msra.gmra.mxu2 %v8076_v51  ;;  %v5106_v31 = vor.u32 %v7306_v25, %v5105_v24  ;;  %v5050_v32 = vor.u32 %v7291_v27, %v5049_v26  ;;  %v7380_v33 = vld [vmem:[#allocation2 + $0x3a4] sm:$0xf]  ;;  %v5041_v34 = vld [vmem:[#allocation2 + $0x90] sm:$0xf]  ;;  %v4985_v37 = vld [vmem:[#allocation2 + $0x18] sm:$0xf] }
  0x3b   :  { %982 = vmatpush.bf16.msrb.mxu2 %v5430_v23  ;;  %969 = vmatpush.bf16.msrb.mxu1 %v5426_v40  ;;  %v5043_v23 = vld [vmem:[#allocation2 + $0xd0] sm:$0xf0]  ;;  %v7290_v35 = vld [vmem:[#allocation2 + $0xcc] sm:$0xf0]  ;;  %v5443_v36 = vld [vmem:[#allocation2 + $0x3e0] sm:$0xf0] }
  0x3c   :  { %925 = vmatmul.bf16.vlgmr.msra.gmra.mxu1 %v8076_v51  ;;  %961 = vmatpush.bf16.msrb.mxu0 %v5102_v61  ;;  %v5046_v28 = vor.u32 %v7282_v20, %v5043_v23  ;;  %v5449_v39 = vld [vmem:[#allocation2 + $0x3a8] sm:$0xf]  ;;  %v5042_v42 = vor.u32 %v7290_v35, %v5041_v34  ;;  %v5446_v43 = vor.u32 %v7380_v33, %v5443_v36  ;;  %v7364_v46 = vld [vmem:[#allocation2 + $0x324] sm:$0xf]  ;;  %v7265_v53 = vld [vmem:[#allocation2 + $0xc] sm:$0xf] }
  0x3d   :  { %v7389_v40 = vld [vmem:[#allocation2 + $0x3e4] sm:$0xf0]  ;;  %v5379_v47 = vld [vmem:[#allocation2 + $0x360] sm:$0xf0]  ;;  %v4977_v59 = vld [vmem:[#allocation2 + $0x10] sm:$0xf] }
  0x3e   :  { %996 = vmatpush.bf16.msrb.mxu3 %v5370_v41  ;;  %v4982_v41 = vor.u32 %v7266_v29, %v4979_v30  ;;  %v5450_v45 = vor.u32 %v7389_v40, %v5449_v39  ;;  %v5382_v48 = vor.u32 %v7364_v46, %v5379_v47  ;;  %v5385_v49 = vld [vmem:[#allocation2 + $0x328] sm:$0xf]  ;;  %v7348_v56 = vld [vmem:[#allocation2 + $0x2a4] sm:$0xf]  ;;  %v7274_v60 = vld [vmem:[#allocation2 + $0x4c] sm:$0xf0] }
  0x3f   :  { %983 = vmatpush.bf16.msrb.mxu2 %v5366_v38  ;;  %970 = vmatpush.bf16.msrb.mxu1 %v5362_v54  ;;  %v7275_v38 = vld [vmem:[#allocation2 + $0x54] sm:$0xf0]  ;;  %v7373_v50 = vld [vmem:[#allocation2 + $0x364] sm:$0xf0]  ;;  %v4971_v54 = vld [vmem:[#allocation2 + $0x48] sm:$0xf0]  ;;  %v4978_v61 = vor.u32 %v7274_v60, %v4977_v59 }
  0x40   :  { %962 = vmatpush.bf16.msrb.mxu0 %v5038_v9  ;;  %v4986_v44 = vor.u32 %v7275_v38, %v4985_v37  ;;  %v5315_v57 = vld [vmem:[#allocation2 + $0x2e0] sm:$0xf0]  ;;  %v5441_v62 = vld [vmem:[#allocation2 + $0x3a0] sm:$0xf]  ;;  %v5257_v9 = vld [vmem:[#allocation2 + $0x228] sm:$0xf] }
  0x41   :  { %v5318_v58 = vor.u32 %v7348_v56, %v5315_v57  ;;  %v7388_v63 = vld [vmem:[#allocation2 + $0x3dc] sm:$0xf0]  ;;  %v7332_v4 = vld [vmem:[#allocation2 + $0x224] sm:$0xf]  ;;  %v7341_v11 = vld [vmem:[#allocation2 + $0x264] sm:$0xf0] }
  0x42   :  { %997 = vmatpush.bf16.msrb.mxu3 %v5306_v55  ;;  %v4974_v55 = vor.u32 %v7265_v53, %v4971_v54  ;;  %v5442_v1 = vor.u32 %v7388_v63, %v5441_v62  ;;  %v5251_v5 = vld [vmem:[#allocation2 + $0x260] sm:$0xf0]  ;;  %v5377_v7 = vld [vmem:[#allocation2 + $0x320] sm:$0xf]  ;;  %v5193_v18 = vld [vmem:[#allocation2 + $0x1a8] sm:$0xf]  ;;  %v112_v54 = vlaneseq }
  0x43   :  { %984 = vmatpush.bf16.msrb.mxu2 %v5302_v52  ;;  %971 = vmatpush.bf16.msrb.mxu1 %v5298_v2  ;;  %v5386_v52 = vor.u32 %v7373_v50, %v5385_v49  ;;  %v7357_v2 = vld [vmem:[#allocation2 + $0x2e4] sm:$0xf0]  ;;  %v5254_v6 = vor.u32 %v7332_v4, %v5251_v5  ;;  %v7372_v8 = vld [vmem:[#allocation2 + $0x35c] sm:$0xf0]  ;;  %v5187_v14 = vld [vmem:[#allocation2 + $0x1e0] sm:$0xf0] }
  0x44   :  { %963 = vmatpush.bf16.msrb.mxu0 %v4974_v55  ;;  %v5313_v16 = vld [vmem:[#allocation2 + $0x2a0] sm:$0xf]  ;;  %v7325_v20 = vld [vmem:[#allocation2 + $0x1e4] sm:$0xf0]  ;;  %v5123_v23 = vld [vmem:[#allocation2 + $0x160] sm:$0xf0] }
  0x45   :  { %v7356_v17 = vld [vmem:[#allocation2 + $0x2dc] sm:$0xf0]  ;;  %v5129_v27 = vld [vmem:[#allocation2 + $0x128] sm:$0xf]  ;;  %v7268_v40 = vld [vmem:[#allocation2 + $0x24] sm:$0xf] }
  0x46   :  { %998 = vmatpush.bf16.msrb.mxu3 %v5242_v3  ;;  %v5249_v25 = vld [vmem:[#allocation2 + $0x220] sm:$0xf]  ;;  %v7309_v29 = vld [vmem:[#allocation2 + $0x164] sm:$0xf0]  ;;  %v7391_v53 = vld [vmem:[#allocation2 + $0x3f4] sm:$0xf0] }
  0x47   :  { %985 = vmatpush.bf16.msrb.mxu2 %v5238_v0  ;;  %972 = vmatpush.bf16.msrb.mxu1 %v5234_v12  ;;  %v5321_v0 = vld [vmem:[#allocation2 + $0x2a8] sm:$0xf]  ;;  %v5258_v12 = vor.u32 %v7341_v11, %v5257_v9  ;;  %v7340_v26 = vld [vmem:[#allocation2 + $0x25c] sm:$0xf0]  ;;  %v5130_v30 = vor.u32 %v7309_v29, %v5129_v27  ;;  %v7366_v57 = vld [vmem:[#allocation2 + $0x334] sm:$0xf] }
  0x48   :  { %v5322_v3 = vor.u32 %v7357_v2, %v5321_v0  ;;  %v5185_v34 = vld [vmem:[#allocation2 + $0x1a0] sm:$0xf]  ;;  %v5065_v36 = vld [vmem:[#allocation2 + $0xa8] sm:$0xf]  ;;  %v5401_v63 = vld [vmem:[#allocation2 + $0x338] sm:$0xf] }
  0x49   :  { %v7324_v35 = vld [vmem:[#allocation2 + $0x1dc] sm:$0xf0]  ;;  %v7293_v38 = vld [vmem:[#allocation2 + $0xe4] sm:$0xf0]  ;;  %v7375_v0 = vld [vmem:[#allocation2 + $0x374] sm:$0xf0] }
  0x4a   :  { %999 = vmatpush.bf16.msrb.mxu3 %v5178_v13  ;;  %v7316_v13 = vld [vmem:[#allocation2 + $0x1a4] sm:$0xf]  ;;  %v5186_v37 = vor.u32 %v7324_v35, %v5185_v34  ;;  %v5066_v39 = vor.u32 %v7293_v38, %v5065_v36  ;;  %v5121_v46 = vld [vmem:[#allocation2 + $0x120] sm:$0xf]  ;;  %v7277_v50 = vld [vmem:[#allocation2 + $0x64] sm:$0xf0]  ;;  %v5402_v4 = vor.u32 %v7375_v0, %v5401_v63 }
  0x4b   :  { %986 = vmatpush.bf16.msrb.mxu2 %v5174_v10  ;;  %973 = vmatpush.bf16.msrb.mxu1 %v5170_v21  ;;  %v5378_v10 = vor.u32 %v7372_v8, %v5377_v7  ;;  %v5190_v15 = vor.u32 %v7316_v13, %v5187_v14  ;;  %v5194_v21 = vor.u32 %v7325_v20, %v5193_v18  ;;  %v7308_v47 = vld [vmem:[#allocation2 + $0x15c] sm:$0xf0]  ;;  %v7379_v2 = vld [vmem:[#allocation2 + $0x39c] sm:$0xf]  ;;  %v7350_v5 = vld [vmem:[#allocation2 + $0x2b4] sm:$0xf] }
  0x4c   :  { %v5122_v49 = vor.u32 %v7308_v47, %v5121_v46  ;;  %v5057_v60 = vld [vmem:[#allocation2 + $0xa0] sm:$0xf]  ;;  %v5457_v13 = vld [vmem:[#allocation2 + $0x3b0] sm:$0xf]  ;;  %v7991_v20 = vmov 0.0  }
  0x4d   :  { %v4993_v7 = vld [vmem:[#allocation2 + $0x20] sm:$0xf]  ;;  %v7390_v14 = vld [vmem:[#allocation2 + $0x3ec] sm:$0xf0]  ;;  %v5273_v29 = vld [vmem:[#allocation2 + $0x238] sm:$0xf] }
  0x4e   :  { %1000 = vmatpush.bf16.msrb.mxu3 %v5114_v22  ;;  %v7300_v22 = vld [vmem:[#allocation2 + $0x124] sm:$0xf]  ;;  %v7276_v8 = vld [vmem:[#allocation2 + $0x5c] sm:$0xf0]  ;;  %v5458_v18 = vor.u32 %v7390_v14, %v5457_v13  ;;  %v5393_v27 = vld [vmem:[#allocation2 + $0x330] sm:$0xf] }
  0x4f   :  { %987 = vmatpush.bf16.msrb.mxu2 %v5110_v19  ;;  %974 = vmatpush.bf16.msrb.mxu1 %v5106_v31  ;;  %v5314_v19 = vor.u32 %v7356_v17, %v5313_v16  ;;  %v5126_v24 = vor.u32 %v7300_v22, %v5123_v23  ;;  %v7284_v31 = vld [vmem:[#allocation2 + $0xa4] sm:$0xf]  ;;  %v7363_v16 = vld [vmem:[#allocation2 + $0x31c] sm:$0xf]  ;;  %v7334_v23 = vld [vmem:[#allocation2 + $0x234] sm:$0xf] }
  0x50   :  { %v5371_v17 = vld [vmem:[#allocation2 + $0x358] sm:$0xf0]  ;;  %v7318_v35 = vld [vmem:[#allocation2 + $0x1b4] sm:$0xf]  ;;  %v5201_v0 = vld [vmem:[#allocation2 + $0x1b0] sm:$0xf] }
  0x51   :  { %v5203_v36 = vld [vmem:[#allocation2 + $0x1f0] sm:$0xf0]  ;;  %v5137_v13 = vld [vmem:[#allocation2 + $0x130] sm:$0xf] }
  0x52   :  { %1001 = vmatpush.bf16.msrb.mxu3 %v5050_v32  ;;  %v5059_v32 = vld [vmem:[#allocation2 + $0xe0] sm:$0xf0]  ;;  %v7302_v47 = vld [vmem:[#allocation2 + $0x134] sm:$0xf]  ;;  %v7310_v14 = vld [vmem:[#allocation2 + $0x16c] sm:$0xf0] }
  0x53   :  { %988 = vmatpush.bf16.msrb.mxu2 %v5046_v28  ;;  %975 = vmatpush.bf16.msrb.mxu1 %v5042_v42  ;;  %v5250_v28 = vor.u32 %v7340_v26, %v5249_v25  ;;  %v5062_v33 = vor.u32 %v7284_v31, %v5059_v32  ;;  %v5374_v26 = vor.u32 %v7363_v16, %v5371_v17  ;;  %v5307_v31 = vld [vmem:[#allocation2 + $0x2d8] sm:$0xf0] }
  0x54   :  { %v7283_v16 = vld [vmem:[#allocation2 + $0x9c] sm:$0xf] }
  0x55   :  { %v5051_v17 = vld [vmem:[#allocation2 + $0xd8] sm:$0xf0] }
  0x56   :  { %1002 = vmatpush.bf16.msrb.mxu3 %v4986_v44  ;;  %v5459_v44 = vld [vmem:[#allocation2 + $0x3f0] sm:$0xf0] }
  0x57   :  { %989 = vmatpush.bf16.msrb.mxu2 %v4982_v41  ;;  %976 = vmatpush.bf16.msrb.mxu1 %v4978_v61  ;;  %v4995_v41 = vld [vmem:[#allocation2 + $0x60] sm:$0xf0]  ;;  %v7292_v61 = vld [vmem:[#allocation2 + $0xdc] sm:$0xf0] }
  0x58   :  { %v4998_v42 = vor.u32 %v7268_v40, %v4995_v41  ;;  %v5058_v62 = vor.u32 %v7292_v61, %v5057_v60  ;;  %v7358_v40 = vld [vmem:[#allocation2 + $0x2ec] sm:$0xf0]  ;;  %v5209_v41 = vld [vmem:[#allocation2 + $0x1b8] sm:$0xf]  ;;  %v7286_v60 = vld [vmem:[#allocation2 + $0xb4] sm:$0xf] }
  0x59   :  { %1003 = vmatmul.bf16.vlgmr.msrb.gmra.mxu3 %v8076_v51  ;;  %v5075_v61 = vld [vmem:[#allocation2 + $0xf0] sm:$0xf0] }
  0x5a   :  { %1047 = vmatpush.bf16.msra.mxu3 %v5450_v45  ;;  %990 = vmatmul.bf16.vlgmr.msrb.gmra.mxu2 %v8076_v51 }
  0x5b   :  { %1034 = vmatpush.bf16.msra.mxu2 %v5446_v43  ;;  %1021 = vmatpush.bf16.msra.mxu1 %v5442_v1  ;;  %v7382_v43 = vld [vmem:[#allocation2 + $0x3b4] sm:$0xf]  ;;  %v8085_v1 = vand.u32 127, %v112_v54  ;;  %v5145_v54 = vld [vmem:[#allocation2 + $0x138] sm:$0xf] }
  0x5c   :  { %977 = vmatmul.bf16.vlgmr.msrb.gmra.mxu1 %v8076_v51  ;;  %v5462_v45 = vor.u32 %v7382_v43, %v5459_v44  ;;  %v5243_v43 = vld [vmem:[#allocation2 + $0x258] sm:$0xf0] }
  0x5d   :  { %vm145_vm2 = vcmp.lt.s32.totalorder %v8085_v1, 48 }
  0x5e   :  { %1048 = vmatpush.bf16.msra.mxu3 %v5386_v52  ;;  %v5465_v52 = vld [vmem:[#allocation2 + $0x3b8] sm:$0xf] }
  0x5f   :  { %1035 = vmatpush.bf16.msra.mxu2 %v5382_v48  ;;  %1022 = vmatpush.bf16.msra.mxu1 %v5378_v10  ;;  %v5001_v48 = vld [vmem:[#allocation2 + $0x28] sm:$0xf]  ;;  %v5466_v56 = vor.u32 %v7391_v53, %v5465_v52  ;;  %v5265_v52 = vld [vmem:[#allocation2 + $0x230] sm:$0xf] }
  0x60   :  { %v5002_v55 = vor.u32 %v7277_v50, %v5001_v48  ;;  %v5139_v48 = vld [vmem:[#allocation2 + $0x170] sm:$0xf0]  ;;  %v7342_v53 = vld [vmem:[#allocation2 + $0x26c] sm:$0xf0] }
  0x62   :  { %1049 = vmatpush.bf16.msra.mxu3 %v5322_v3  ;;  %v5435_v3 = vld [vmem:[#allocation2 + $0x3d8] sm:$0xf0] }
  0x63   :  { %1036 = vmatpush.bf16.msra.mxu2 %v5318_v58  ;;  %1023 = vmatpush.bf16.msra.mxu1 %v5314_v19  ;;  %v5395_v58 = vld [vmem:[#allocation2 + $0x370] sm:$0xf0]  ;;  %v5438_v10 = vor.u32 %v7379_v2, %v5435_v3  ;;  %v7359_v19 = vld [vmem:[#allocation2 + $0x2f4] sm:$0xf0]  ;;  %v7326_v2 = vld [vmem:[#allocation2 + $0x1ec] sm:$0xf0] }
  0x64   :  { %v5398_v59 = vor.u32 %v7366_v57, %v5395_v58  ;;  %v5266_v57 = vor.u32 %v7342_v53, %v5265_v52  ;;  %v7311_v58 = vld [vmem:[#allocation2 + $0x174] sm:$0xf0]  ;;  %v5131_v52 = vld [vmem:[#allocation2 + $0x168] sm:$0xf0]  ;;  %v7414_v53 = vld [vmem:[#allocation4 + $0xb0] sm:$0xff] }
  0x65   :  { %v5081_v3 = vld [vmem:[#allocation2 + $0xb8] sm:$0xf] }
  0x66   :  { %1050 = vmatpush.bf16.msra.mxu3 %v5258_v12  ;;  %v4994_v12 = vor.u32 %v7276_v8, %v4993_v7  ;;  %v7295_v7 = vld [vmem:[#allocation2 + $0xf4] sm:$0xf0] }
  0x67   :  { %1037 = vmatpush.bf16.msra.mxu2 %v5254_v6  ;;  %1024 = vmatpush.bf16.msra.mxu1 %v5250_v28  ;;  %v5331_v6 = vld [vmem:[#allocation2 + $0x2f0] sm:$0xf0]  ;;  %v7374_v28 = vld [vmem:[#allocation2 + $0x36c] sm:$0xf0]  ;;  %v5082_v8 = vor.u32 %v7295_v7, %v5081_v3  ;;  %v7383_v3 = vld [vmem:[#allocation2 + $0x3bc] sm:$0xf] }
  0x68   :  { %v5334_v11 = vor.u32 %v7350_v5, %v5331_v6  ;;  %v5394_v32 = vor.u32 %v7374_v28, %v5393_v27  ;;  %v5115_v5 = vld [vmem:[#allocation2 + $0x158] sm:$0xf0]  ;;  %v5202_v6 = vor.u32 %v7326_v2, %v5201_v0  ;;  %v7381_v27 = vld [vmem:[#allocation2 + $0x3ac] sm:$0xf]  ;;  %v7412_v2 = vld [vmem:[#allocation4 + $0xa0] sm:$0xff] }
  0x69   :  { %v5451_v28 = vld [vmem:[#allocation2 + $0x3e8] sm:$0xf0] }
  0x6a   :  { %1051 = vmatpush.bf16.msra.mxu3 %v5194_v21  ;;  %v5003_v0 = vld [vmem:[#allocation2 + $0x68] sm:$0xf0] }
  0x6b   :  { %1038 = vmatpush.bf16.msra.mxu2 %v5190_v15  ;;  %1025 = vmatpush.bf16.msra.mxu1 %v5186_v37  ;;  %v5337_v15 = vld [vmem:[#allocation2 + $0x2b8] sm:$0xf]  ;;  %v5206_v37 = vor.u32 %v7318_v35, %v5203_v36  ;;  %v5387_v35 = vld [vmem:[#allocation2 + $0x368] sm:$0xf0] }
  0x6c   :  { %v5338_v22 = vor.u32 %v7359_v19, %v5337_v15  ;;  %v5017_v15 = vld [vmem:[#allocation2 + $0x38] sm:$0xf] }
  0x6d   :  { %v7279_v19 = vld [vmem:[#allocation2 + $0x74] sm:$0xf0] }
  0x6e   :  { %1052 = vmatpush.bf16.msra.mxu3 %v5130_v30  ;;  %v7347_v30 = vld [vmem:[#allocation2 + $0x29c] sm:$0xf] }
  0x6f   :  { %1039 = vmatpush.bf16.msra.mxu2 %v5126_v24  ;;  %1026 = vmatpush.bf16.msra.mxu1 %v5122_v49  ;;  %v5267_v24 = vld [vmem:[#allocation2 + $0x270] sm:$0xf0]  ;;  %v5310_v38 = vor.u32 %v7347_v30, %v5307_v31  ;;  %v5142_v49 = vor.u32 %v7302_v47, %v5139_v48  ;;  %v5009_v30 = vld [vmem:[#allocation2 + $0x30] sm:$0xf]  ;;  %v7399_v47 = vld [vmem:[#allocation4 + $0x38] sm:$0xff] }
  0x70   :  { %v5270_v25 = vor.u32 %v7334_v23, %v5267_v24  ;;  %v7294_v23 = vld [vmem:[#allocation2 + $0xec] sm:$0xf0]  ;;  %v7267_v24 = vld [vmem:[#allocation2 + $0x1c] sm:$0xf] }
  0x71   :  { %v7278_v31 = vld [vmem:[#allocation2 + $0x6c] sm:$0xf0] }
  0x72   :  { %1053 = vmatpush.bf16.msra.mxu3 %v5066_v39  ;;  %v5329_v39 = vld [vmem:[#allocation2 + $0x2b0] sm:$0xf] }
  0x73   :  { %1040 = vmatpush.bf16.msra.mxu2 %v5062_v33  ;;  %1027 = vmatpush.bf16.msra.mxu1 %v5058_v62  ;;  %v7343_v33 = vld [vmem:[#allocation2 + $0x274] sm:$0xf0]  ;;  %v5330_v44 = vor.u32 %v7358_v40, %v5329_v39  ;;  %v5078_v62 = vor.u32 %v7286_v60, %v5075_v61  ;;  %v7333_v40 = vld [vmem:[#allocation2 + $0x22c] sm:$0xf]  ;;  %v7406_v48 = vld [vmem:[#allocation4 + $0x70] sm:$0xff] }
  0x74   :  { %v5274_v34 = vor.u32 %v7343_v33, %v5273_v29  ;;  %v5010_v33 = vor.u32 %v7278_v31, %v5009_v30  ;;  %v7397_v60 = vld [vmem:[#allocation4 + $0x28] sm:$0xff]  ;;  %v7404_v61 = vld [vmem:[#allocation4 + $0x60] sm:$0xff]  ;;  %v7319_v31 = vld [vmem:[#allocation2 + $0x1bc] sm:$0xf] }
  0x75   :  { %v7392_v30 = vld [vmem:[#allocation4] sm:$0xff] }
  0x76   :  { %1054 = vmatpush.bf16.msra.mxu3 %v5002_v55  ;;  %v7315_v55 = vld [vmem:[#allocation2 + $0x19c] sm:$0xf] }
  0x77   :  { %1041 = vmatpush.bf16.msra.mxu2 %v4998_v42  ;;  %1028 = vmatpush.bf16.msra.mxu1 %v4994_v12  ;;  %v7331_v42 = vld [vmem:[#allocation2 + $0x21c] sm:$0xf] }
  0x78   :  { %v5246_v50 = vor.u32 %v7331_v42, %v5243_v43  ;;  %v7407_v42 = vld [vmem:[#allocation4 + $0x78] sm:$0xff] }
  0x79   :  { %1055 = vmatmul.bf16.vlgmr.msra.gmra.mxu3 %v8076_v51 }
  0x7a   :  { %1042 = vmatmul.bf16.vlgmr.msra.gmra.mxu2 %v8076_v51  ;;  %1099 = vmatpush.bf16.msrb.mxu3 %v5466_v56  ;;  %v5179_v56 = vld [vmem:[#allocation2 + $0x1d8] sm:$0xf0] }
  0x7b   :  { %1086 = vmatpush.bf16.msrb.mxu2 %v5462_v45  ;;  %1073 = vmatpush.bf16.msrb.mxu1 %v5458_v18  ;;  %v7327_v45 = vld [vmem:[#allocation2 + $0x1f4] sm:$0xf0]  ;;  %v5182_v63 = vor.u32 %v7315_v55, %v5179_v56  ;;  %v5138_v18 = vor.u32 %v7310_v14, %v5137_v13  ;;  %v7405_v55 = vld [vmem:[#allocation4 + $0x68] sm:$0xff]  ;;  %v7402_v13 = vld [vmem:[#allocation4 + $0x50] sm:$0xff] }
  0x7c   :  { %1029 = vmatmul.bf16.vlgmr.msra.gmra.mxu1 %v8076_v51  ;;  %v5210_v46 = vor.u32 %v7327_v45, %v5209_v41  ;;  %v5259_v41 = vld [vmem:[#allocation2 + $0x268] sm:$0xf0]  ;;  %v7410_v14 = vld [vmem:[#allocation4 + $0x90] sm:$0xff] }
  0x7d   :  { %v5262_v43 = vor.u32 %v7333_v40, %v5259_v41  ;;  %v5195_v45 = vld [vmem:[#allocation2 + $0x1e8] sm:$0xf0] }
  0x7e   :  { %1100 = vmatpush.bf16.msrb.mxu3 %v5402_v4  ;;  %v7299_v4 = vld [vmem:[#allocation2 + $0x11c] sm:$0xf]  ;;  %v7437_v40 = vld [vmem:[#allocation4 + $0x168] sm:$0xff] }
  0x7f   :  { %1087 = vmatpush.bf16.msrb.mxu2 %v5398_v59  ;;  %1074 = vmatpush.bf16.msrb.mxu1 %v5394_v32  ;;  %v5146_v59 = vor.u32 %v7311_v58, %v5145_v54  ;;  %v5118_v12 = vor.u32 %v7299_v4, %v5115_v5  ;;  %v5454_v32 = vor.u32 %v7381_v27, %v5451_v28  ;;  %v7398_v54 = vld [vmem:[#allocation4 + $0x30] sm:$0xff]  ;;  %v5067_v58 = vld [vmem:[#allocation2 + $0xe8] sm:$0xf0]  ;;  %v5467_v4 = vld [vmem:[#allocation2 + $0x3f8] sm:$0xf0] }
  0x80   :  { %v7396_v5 = vld [vmem:[#allocation4 + $0x20] sm:$0xff]  ;;  %v7447_v28 = vld [vmem:[#allocation4 + $0x1b8] sm:$0xff]  ;;  %v7445_v41 = vld [vmem:[#allocation4 + $0x1a8] sm:$0xff] }
  0x81   :  { %v7408_v27 = vld [vmem:[#allocation4 + $0x80] sm:$0xff] }
  0x82   :  { %1101 = vmatpush.bf16.msrb.mxu3 %v5338_v22  ;;  %v5073_v22 = vld [vmem:[#allocation2 + $0xb0] sm:$0xf] }
  0x83   :  { %1088 = vmatpush.bf16.msrb.mxu2 %v5334_v11  ;;  %1075 = vmatpush.bf16.msrb.mxu1 %v5330_v44  ;;  %v7317_v44 = vld [vmem:[#allocation2 + $0x1ac] sm:$0xf] }
  0x86   :  { %1102 = vmatpush.bf16.msrb.mxu3 %v5274_v34  ;;  %v7365_v34 = vld [vmem:[#allocation2 + $0x32c] sm:$0xf] }
  0x87   :  { %1089 = vmatpush.bf16.msrb.mxu2 %v5270_v25  ;;  %1076 = vmatpush.bf16.msrb.mxu1 %v5266_v57  ;;  %v4987_v25 = vld [vmem:[#allocation2 + $0x58] sm:$0xf0]  ;;  %v5390_v36 = vor.u32 %v7365_v34, %v5387_v35  ;;  %v7285_v57 = vld [vmem:[#allocation2 + $0xac] sm:$0xf]  ;;  %v7438_v34 = vld [vmem:[#allocation4 + $0x170] sm:$0xff] }
  0x88   :  { %v4990_v29 = vor.u32 %v7267_v24, %v4987_v25  ;;  %v5275_v24 = vld [vmem:[#allocation2 + $0x278] sm:$0xf0]  ;;  %v7400_v25 = vld [vmem:[#allocation4 + $0x40] sm:$0xff]  ;;  %v7446_v35 = vld [vmem:[#allocation4 + $0x1b0] sm:$0xff] }
  0x8a   :  { %v116_v9 = vpop.permute.xlu0 %115  ;;  %1103 = vmatpush.bf16.msrb.mxu3 %v5210_v46  ;;  %v7415_v46 = vld [vmem:[#allocation4 + $0xb8] sm:$0xff] }
  0x8b   :  { %vm117_vm1 = vcmp.eq.s32.totalorder %v8085_v1, %v116_v9  ;;  %1090 = vmatpush.bf16.msrb.mxu2 %v5206_v37  ;;  %v7270_v9 = vld [vmem:[#allocation2 + $0x34] sm:$0xf]  ;;  %1077 = vmatpush.bf16.msrb.mxu1 %v5202_v6  ;;  %v7349_v37 = vld [vmem:[#allocation2 + $0x2ac] sm:$0xf]  ;;  %v7403_v6 = vld [vmem:[#allocation4 + $0x58] sm:$0xff] }
  0x8c   :  { %v118_v21 = vsel %vm117_vm1, 1.0, %v7991_v20  ;;  %v5018_v20 = vor.u32 %v7279_v19, %v5017_v15  ;;  %v7401_v19 = vld [vmem:[#allocation4 + $0x48] sm:$0xff] }
  0x8d   :  { %4958 = vmatmul.msk.f32.vlgmr.msra.gmra.mxu0 %vm121_vm0, %v118_v21  ;;  %v5054_v21 = vor.u32 %v7283_v16, %v5051_v17  ;;  %v7394_v16 = vld [vmem:[#allocation4 + $0x10] sm:$0xff]  ;;  %v7351_v17 = vld [vmem:[#allocation2 + $0x2bc] sm:$0xf] }
  0x8e   :  { %1008 = vmatpush.bf16.msra.mxu0 %v5438_v10  ;;  %1104 = vmatpush.bf16.msrb.mxu3 %v5146_v59  ;;  %v5011_v10 = vld [vmem:[#allocation2 + $0x70] sm:$0xf0]  ;;  %v7413_v59 = vld [vmem:[#allocation4 + $0xa8] sm:$0xff] }
  0x8f   :  { %1091 = vmatpush.bf16.msrb.mxu2 %v5142_v49  ;;  %v5014_v11 = vor.u32 %v7270_v9, %v5011_v10  ;;  %1078 = vmatpush.bf16.msrb.mxu1 %v5138_v18  ;;  %v5198_v49 = vor.u32 %v7317_v44, %v5195_v45  ;;  %v7411_v9 = vld [vmem:[#allocation4 + $0x98] sm:$0xff]  ;;  %v7429_v45 = vld [vmem:[#allocation4 + $0x128] sm:$0xff] }
  0x90   :  { %v7367_v10 = vld [vmem:[#allocation2 + $0x33c] sm:$0xf] }
  0x91   :  { %v5339_v18 = vld [vmem:[#allocation2 + $0x2f8] sm:$0xf0] }
  0x92   :  { %1009 = vmatpush.bf16.msra.mxu0 %v5374_v26  ;;  %1105 = vmatpush.bf16.msrb.mxu3 %v5082_v8  ;;  %v5074_v26 = vor.u32 %v7294_v23, %v5073_v22  ;;  %v5470_v8 = vor.u32 %v7383_v3, %v5467_v4  ;;  %v7393_v22 = vld [vmem:[#allocation4 + $0x8] sm:$0xff]  ;;  %v7335_v23 = vld [vmem:[#allocation2 + $0x23c] sm:$0xf] }
  0x93   :  { %1092 = vmatpush.bf16.msrb.mxu2 %v5078_v62  ;;  %v5070_v62 = vor.u32 %v7285_v57, %v5067_v58  ;;  %v5083_v44 = vld [vmem:[#allocation2 + $0xf8] sm:$0xf0]  ;;  %v7433_v3 = vld [vmem:[#allocation4 + $0x148] sm:$0xff] }
  0x94   :  { %1079 = vmatpush.bf16.msrb.mxu1 %v5074_v26  ;;  %v7439_v26 = vld [vmem:[#allocation4 + $0x178] sm:$0xff]  ;;  %v7421_v4 = vld [vmem:[#allocation4 + $0xe8] sm:$0xff] }
  0x95   :  { %964 = vmatmul.bf16.vlgmr.msrb.gmra.mxu0 %v8076_v51  ;;  %v7443_v57 = vld [vmem:[#allocation4 + $0x198] sm:$0xff] }
  0x96   :  { %1010 = vmatpush.bf16.msra.mxu0 %v5310_v38  ;;  %1106 = vmatpush.bf16.msrb.mxu3 %v5018_v20  ;;  %v5323_v38 = vld [vmem:[#allocation2 + $0x2e8] sm:$0xf0] }
  0x97   :  { %1093 = vmatpush.bf16.msrb.mxu2 %v5014_v11  ;;  %v5326_v39 = vor.u32 %v7349_v37, %v5323_v38  ;;  %v5403_v11 = vld [vmem:[#allocation2 + $0x378] sm:$0xf0]  ;;  %v7409_v20 = vld [vmem:[#allocation4 + $0x88] sm:$0xff] }
  0x98   :  { %1080 = vmatpush.bf16.msrb.mxu1 %v5010_v33  ;;  %v5406_v15 = vor.u32 %v7367_v10, %v5403_v11  ;;  %v7431_v33 = vld [vmem:[#allocation4 + $0x138] sm:$0xff] }
  0x99   :  { %1107 = vmatmul.bf16.vlgmr.msrb.gmra.mxu3 %v8076_v51  ;;  %v7303_v37 = vld [vmem:[#allocation2 + $0x13c] sm:$0xf] }
  0x9a   :  { %1011 = vmatpush.bf16.msra.mxu0 %v5246_v50  ;;  %1094 = vmatmul.bf16.vlgmr.msrb.gmra.mxu2 %v8076_v51  ;;  %v7301_v50 = vld [vmem:[#allocation2 + $0x12c] sm:$0xf]  ;;  %v5147_v38 = vld [vmem:[#allocation2 + $0x178] sm:$0xf0] }
  0x9b   :  { %1081 = vmatmul.bf16.vlgmr.msrb.gmra.mxu1 %v8076_v51  ;;  %2194 = vmatpush.bf16.msra.mxu2 %v7407_v42  ;;  %v5134_v56 = vor.u32 %v7301_v50, %v5131_v52  ;;  %v5150_v42 = vor.u32 %v7303_v37, %v5147_v38  ;;  %v7471_v10 = vld [vmem:[#allocation4 + $0x278] sm:$0xff]  ;;  %v7460_v37 = vld [vmem:[#allocation4 + $0x220] sm:$0xff] }
  0x9c   :  { %2207 = vmatpush.bf16.msra.mxu3 %v7415_v46  ;;  %2181 = vmatpush.bf16.msra.mxu1 %v7399_v47  ;;  %v7436_v47 = vld [vmem:[#allocation4 + $0x160] sm:$0xff]  ;;  %v7467_v38 = vld [vmem:[#allocation4 + $0x258] sm:$0xff] }
  0x9e   :  { %1012 = vmatpush.bf16.msra.mxu0 %v5182_v63  ;;  %v7269_v63 = vld [vmem:[#allocation2 + $0x2c] sm:$0xf] }
  0x9f   :  { %2195 = vmatpush.bf16.msra.mxu2 %v7406_v48  ;;  %v5006_v7 = vor.u32 %v7269_v63, %v5003_v0  ;;  %v7442_v63 = vld [vmem:[#allocation4 + $0x190] sm:$0xff] }
  0xa0   :  { %2208 = vmatpush.bf16.msra.mxu3 %v7414_v53  ;;  %2182 = vmatpush.bf16.msra.mxu1 %v7398_v54  ;;  %v7271_v53 = vld [vmem:[#allocation2 + $0x3c] sm:$0xf]  ;;  %v7422_v0 = vld [vmem:[#allocation4 + $0xf0] sm:$0xff] }
  0xa1   :  { %v5019_v54 = vld [vmem:[#allocation2 + $0x78] sm:$0xf0] }
  0xa2   :  { %1013 = vmatpush.bf16.msra.mxu0 %v5118_v12  ;;  %v7395_v12 = vld [vmem:[#allocation4 + $0x18] sm:$0xff]  ;;  %v5022_v58 = vor.u32 %v7271_v53, %v5019_v54  ;;  %v7458_v53 = vld [vmem:[#allocation4 + $0x210] sm:$0xff]  ;;  %v7465_v54 = vld [vmem:[#allocation4 + $0x248] sm:$0xff] }
  0xa3   :  { %2196 = vmatpush.bf16.msra.mxu2 %v7405_v55  ;;  %v7428_v55 = vld [vmem:[#allocation4 + $0x120] sm:$0xff] }
  0xa4   :  { %2209 = vmatpush.bf16.msra.mxu3 %v7413_v59  ;;  %2183 = vmatpush.bf16.msra.mxu1 %v7397_v60  ;;  %v7423_v59 = vld [vmem:[#allocation4 + $0xf8] sm:$0xff] }
  0xa5   :  { %v7427_v60 = vld [vmem:[#allocation4 + $0x118] sm:$0xff] }
  0xa6   :  { %1014 = vmatpush.bf16.msra.mxu0 %v5054_v21  ;;  %v5342_v21 = vor.u32 %v7351_v17, %v5339_v18 }
  0xa7   :  { %2197 = vmatpush.bf16.msra.mxu2 %v7404_v61 }
  0xa8   :  { %2210 = vmatpush.bf16.msra.mxu3 %v7412_v2  ;;  %2184 = vmatpush.bf16.msra.mxu1 %v7396_v5  ;;  %v7426_v2 = vld [vmem:[#allocation4 + $0x110] sm:$0xff]  ;;  %v7441_v5 = vld [vmem:[#allocation4 + $0x188] sm:$0xff] }
  0xaa   :  { %1015 = vmatpush.bf16.msra.mxu0 %v4990_v29  ;;  %v5278_v29 = vor.u32 %v7335_v23, %v5275_v24  ;;  %v7419_v23 = vld [vmem:[#allocation4 + $0xd8] sm:$0xff]  ;;  %v7478_v24 = vld [vmem:[#allocation4 + $0x2b0] sm:$0xff] }
  0xab   :  { %2198 = vmatpush.bf16.msra.mxu2 %v7403_v6 }
  0xac   :  { %2211 = vmatpush.bf16.msra.mxu3 %v7411_v9  ;;  %2185 = vmatpush.bf16.msra.mxu1 %v7395_v12  ;;  %v7432_v9 = vld [vmem:[#allocation4 + $0x140] sm:$0xff] }
  0xad   :  { %1016 = vmatmul.bf16.vlgmr.msra.gmra.mxu0 %v8076_v51 }
  0xae   :  { %1060 = vmatpush.bf16.msrb.mxu0 %v5454_v32  ;;  %v5211_v32 = vld [vmem:[#allocation2 + $0x1f8] sm:$0xf0] }
  0xaf   :  { %2199 = vmatpush.bf16.msra.mxu2 %v7402_v13  ;;  %v7440_v13 = vld [vmem:[#allocation4 + $0x180] sm:$0xff] }
  0xb0   :  { %2212 = vmatpush.bf16.msra.mxu3 %v7410_v14  ;;  %2186 = vmatpush.bf16.msra.mxu1 %v7394_v16 }
  0xb2   :  { %1061 = vmatpush.bf16.msrb.mxu0 %v5390_v36  ;;  %v5214_v36 = vor.u32 %v7319_v31, %v5211_v32  ;;  %v7477_v31 = vld [vmem:[#allocation4 + $0x2a8] sm:$0xff] }
  0xb3   :  { %2200 = vmatpush.bf16.msra.mxu2 %v7401_v19  ;;  %v7424_v19 = vld [vmem:[#allocation4 + $0x100] sm:$0xff]  ;;  %v7461_v32 = vld [vmem:[#allocation4 + $0x228] sm:$0xff] }
  0xb4   :  { %2213 = vmatpush.bf16.msra.mxu3 %v7409_v20  ;;  %2187 = vmatpush.bf16.msra.mxu1 %v7393_v22  ;;  %v7463_v20 = vld [vmem:[#allocation4 + $0x238] sm:$0xff] }
  0xb6   :  { %1062 = vmatpush.bf16.msrb.mxu0 %v5326_v39  ;;  %v7430_v39 = vld [vmem:[#allocation4 + $0x130] sm:$0xff] }
  0xb7   :  { %2201 = vmatpush.bf16.msra.mxu2 %v7400_v25 }
  0xb8   :  { %2214 = vmatpush.bf16.msra.mxu3 %v7408_v27  ;;  %2188 = vmatpush.bf16.msra.mxu1 %v7392_v30  ;;  %v7469_v27 = vld [vmem:[#allocation4 + $0x268] sm:$0xff]  ;;  %v7418_v30 = vld [vmem:[#allocation4 + $0xd0] sm:$0xff] }
  0xba   :  { %1063 = vmatpush.bf16.msrb.mxu0 %v5262_v43  ;;  %v7287_v43 = vld [vmem:[#allocation2 + $0xbc] sm:$0xf] }
  0xbb   :  { %2246 = vmatpush.bf16.msrb.mxu2 %v7439_v26  ;;  %v5086_v50 = vor.u32 %v7287_v43, %v5083_v44  ;;  %v7462_v26 = vld [vmem:[#allocation4 + $0x230] sm:$0xff]  ;;  %v7475_v43 = vld [vmem:[#allocation4 + $0x298] sm:$0xff] }
  0xbc   :  { %2259 = vmatpush.bf16.msrb.mxu3 %v7447_v28  ;;  %2233 = vmatpush.bf16.msrb.mxu1 %v7431_v33  ;;  %v952_v6 = vpop.f32.mrf.mxu3  ;;  %v7468_v33 = vld [vmem:[#allocation4 + $0x260] sm:$0xff]  ;;  %v7455_v44 = vld [vmem:[#allocation4 + $0x1f8] sm:$0xff] }
  0xbd   :  { %v939_v46 = vpop.f32.mrf.mxu2  ;;  %v1127_v11 = vmax.f32 %v952_v6, 0.0 }
  0xbe   :  { %1064 = vmatpush.bf16.msrb.mxu0 %v5198_v49  ;;  %v1126_v48 = vmax.f32 %v939_v46, 0.0  ;;  %v7444_v49 = vld [vmem:[#allocation4 + $0x1a0] sm:$0xff] }
  0xbf   :  { %2247 = vmatpush.bf16.msrb.mxu2 %v7438_v34  ;;  %v1143_v17 = vpack.c.bf16 %v1127_v11, %v1127_v11  ;;  %v7417_v34 = vld [vmem:[#allocation4 + $0xc8] sm:$0xff] }
  0xc0   :  { %2260 = vmatpush.bf16.msrb.mxu3 %v7446_v35  ;;  %2234 = vmatpush.bf16.msrb.mxu1 %v7430_v39  ;;  %v1142_v52 = vpack.c.bf16 %v1126_v48, %v1126_v48  ;;  %v7476_v35 = vld [vmem:[#allocation4 + $0x2a0] sm:$0xff]  ;;  %v7466_v48 = vld [vmem:[#allocation4 + $0x250] sm:$0xff] }
  0xc1   :  { %2215 = vmatmul.bf16.vlgmr.msra.gmra.mxu3 %v1143_v17 }
  0xc2   :  { %1065 = vmatpush.bf16.msrb.mxu0 %v5134_v56  ;;  %v7435_v56 = vld [vmem:[#allocation4 + $0x158] sm:$0xff]  ;;  %2202 = vmatmul.bf16.vlgmr.msra.gmra.mxu2 %v1142_v52 }
  0xc3   :  { %2248 = vmatpush.bf16.msrb.mxu2 %v7437_v40 }
  0xc4   :  { %2261 = vmatpush.bf16.msrb.mxu3 %v7445_v41  ;;  %2235 = vmatpush.bf16.msrb.mxu1 %v7429_v45  ;;  %v954_v25 = vpop.f32.mrf.mxu3 }
  0xc5   :  { %v941_v61 = vpop.f32.mrf.mxu2 }
  0xc6   :  { %1066 = vmatpush.bf16.msrb.mxu0 %v5070_v62  ;;  %v7434_v62 = vld [vmem:[#allocation4 + $0x150] sm:$0xff] }
  0xc7   :  { %2249 = vmatpush.bf16.msrb.mxu2 %v7436_v47  ;;  %v7459_v47 = vld [vmem:[#allocation4 + $0x218] sm:$0xff] }
  0xc8   :  { %2262 = vmatpush.bf16.msrb.mxu3 %v7444_v49  ;;  %2236 = vmatpush.bf16.msrb.mxu1 %v7428_v55  ;;  %v7474_v49 = vld [vmem:[#allocation4 + $0x290] sm:$0xff] }
  0xca   :  { %1067 = vmatpush.bf16.msrb.mxu0 %v5006_v7  ;;  %v926_v7 = vpop.f32.mrf.mxu1 }
  0xcb   :  { %2250 = vmatpush.bf16.msrb.mxu2 %v7435_v56  ;;  %v1125_v12 = vmax.f32 %v926_v7, 0.0  ;;  %v7473_v56 = vld [vmem:[#allocation4 + $0x288] sm:$0xff]  ;;  %v7495_v7 = vld [vmem:[#allocation4 + $0x338] sm:$0xff] }
  0xcc   :  { %2263 = vmatpush.bf16.msrb.mxu3 %v7443_v57  ;;  %2237 = vmatpush.bf16.msrb.mxu1 %v7427_v60  ;;  %v7453_v57 = vld [vmem:[#allocation4 + $0x1e8] sm:$0xff]  ;;  %v7503_v60 = vld [vmem:[#allocation4 + $0x378] sm:$0xff] }
  0xcd   :  { %1068 = vmatmul.bf16.vlgmr.msrb.gmra.mxu0 %v8076_v51  ;;  %v1141_v18 = vpack.c.bf16 %v1125_v12, %v1125_v12 }
  0xce   :  { %1112 = vmatpush.bf16.msra.mxu0 %v5470_v8  ;;  %v7425_v8 = vld [vmem:[#allocation4 + $0x108] sm:$0xff] }
  0xcf   :  { %2251 = vmatpush.bf16.msrb.mxu2 %v7434_v62  ;;  %2189 = vmatmul.bf16.vlgmr.msra.gmra.mxu1 %v1141_v18 }
  0xd0   :  { %2264 = vmatpush.bf16.msrb.mxu3 %v7442_v63  ;;  %2238 = vmatpush.bf16.msrb.mxu1 %v7426_v2  ;;  %v7472_v63 = vld [vmem:[#allocation4 + $0x280] sm:$0xff] }
  0xd1   :  { %v7452_v2 = vld [vmem:[#allocation4 + $0x1e0] sm:$0xff] }
  0xd2   :  { %1113 = vmatpush.bf16.msra.mxu0 %v5406_v15  ;;  %v7420_v15 = vld [vmem:[#allocation4 + $0xe0] sm:$0xff]  ;;  %v928_v28 = vpop.f32.mrf.mxu1 }
  0xd3   :  { %2252 = vmatpush.bf16.msrb.mxu2 %v7433_v3  ;;  %v7511_v3 = vld [vmem:[#allocation4 + $0x3b8] sm:$0xff]  ;;  %v7508_v28 = vld [vmem:[#allocation4 + $0x3a0] sm:$0xff] }
  0xd4   :  { %2265 = vmatpush.bf16.msrb.mxu3 %v7441_v5  ;;  %2239 = vmatpush.bf16.msrb.mxu1 %v7425_v8  ;;  %v7456_v5 = vld [vmem:[#allocation4 + $0x200] sm:$0xff]  ;;  %v7502_v8 = vld [vmem:[#allocation4 + $0x370] sm:$0xff] }
  0xd6   :  { %1114 = vmatpush.bf16.msra.mxu0 %v5342_v21  ;;  %v7470_v21 = vld [vmem:[#allocation4 + $0x270] sm:$0xff] }
  0xd7   :  { %2253 = vmatpush.bf16.msrb.mxu2 %v7432_v9 }
  0xd8   :  { %2266 = vmatpush.bf16.msrb.mxu3 %v7440_v13  ;;  %2240 = vmatpush.bf16.msrb.mxu1 %v7424_v19  ;;  %v7510_v13 = vld [vmem:[#allocation4 + $0x3b0] sm:$0xff] }
  0xd9   :  { %v7450_v19 = vld [vmem:[#allocation4 + $0x1d0] sm:$0xff] }
  0xda   :  { %1115 = vmatpush.bf16.msra.mxu0 %v5278_v29  ;;  %v978_v39 = vpop.f32.mrf.mxu1 }
  0xdb   :  { %2298 = vmatpush.bf16.msra.mxu2 %v7471_v10  ;;  %v1129_v41 = vmax.f32 %v978_v39, 0.0  ;;  %v7451_v10 = vld [vmem:[#allocation4 + $0x1d8] sm:$0xff]  ;;  %v7490_v39 = vld [vmem:[#allocation4 + $0x310] sm:$0xff] }
  0xdc   :  { %2285 = vmatpush.bf16.msra.mxu1 %v7463_v20  ;;  %v7509_v20 = vld [vmem:[#allocation4 + $0x3a8] sm:$0xff] }
  0xdd   :  { %v991_v14 = vpop.f32.mrf.mxu2  ;;  %v1145_v46 = vpack.c.bf16 %v1129_v41, %v1129_v41  ;;  %v7505_v41 = vld [vmem:[#allocation4 + $0x388] sm:$0xff] }
  0xde   :  { %1116 = vmatpush.bf16.msra.mxu0 %v5214_v36  ;;  %v1130_v16 = vmax.f32 %v991_v14, 0.0  ;;  %v1004_v36 = vpop.f32.mrf.mxu3 }
  0xdf   :  { %2299 = vmatpush.bf16.msra.mxu2 %v7470_v21  ;;  %v1131_v40 = vmax.f32 %v1004_v36, 0.0  ;;  %2241 = vmatmul.bf16.vlgmr.msrb.gmra.mxu1 %v1145_v46  ;;  %v7498_v36 = vld [vmem:[#allocation4 + $0x350] sm:$0xff]  ;;  %v7484_v46 = vld [vmem:[#allocation4 + $0x2e0] sm:$0xff] }
  0xe0   :  { %v1146_v22 = vpack.c.bf16 %v1130_v16, %v1130_v16  ;;  %2286 = vmatpush.bf16.msra.mxu1 %v7462_v26  ;;  %v7501_v16 = vld [vmem:[#allocation4 + $0x368] sm:$0xff] }
  0xe1   :  { %v1147_v45 = vpack.c.bf16 %v1131_v40, %v1131_v40  ;;  %v7497_v40 = vld [vmem:[#allocation4 + $0x348] sm:$0xff] }
  0xe2   :  { %1117 = vmatpush.bf16.msra.mxu0 %v5150_v42  ;;  %2254 = vmatmul.bf16.vlgmr.msrb.gmra.mxu2 %v1146_v22  ;;  %v7416_v42 = vld [vmem:[#allocation4 + $0xc0] sm:$0xff]  ;;  %v980_v55 = vpop.f32.mrf.mxu1  ;;  %v7493_v22 = vld [vmem:[#allocation4 + $0x328] sm:$0xff] }
  0xe3   :  { %2300 = vmatpush.bf16.msra.mxu2 %v7469_v27  ;;  %2267 = vmatmul.bf16.vlgmr.msrb.gmra.mxu3 %v1147_v45  ;;  %v7449_v27 = vld [vmem:[#allocation4 + $0x1c8] sm:$0xff] }
  0xe4   :  { %2287 = vmatpush.bf16.msra.mxu1 %v7461_v32  ;;  %v7448_v32 = vld [vmem:[#allocation4 + $0x1c0] sm:$0xff] }
  0xe5   :  { %v993_v29 = vpop.f32.mrf.mxu2 }
  0xe6   :  { %1118 = vmatpush.bf16.msra.mxu0 %v5086_v50  ;;  %v7454_v50 = vld [vmem:[#allocation4 + $0x1f0] sm:$0xff]  ;;  %v1006_v52 = vpop.f32.mrf.mxu3  ;;  %v7492_v29 = vld [vmem:[#allocation4 + $0x320] sm:$0xff] }
  0xe7   :  { %2301 = vmatpush.bf16.msra.mxu2 %v7468_v33  ;;  %v7507_v33 = vld [vmem:[#allocation4 + $0x398] sm:$0xff] }
  0xe8   :  { %2288 = vmatpush.bf16.msra.mxu1 %v7460_v37  ;;  %v7506_v37 = vld [vmem:[#allocation4 + $0x390] sm:$0xff] }
  0xea   :  { %1119 = vmatpush.bf16.msra.mxu0 %v5022_v58  ;;  %v7457_v58 = vld [vmem:[#allocation4 + $0x208] sm:$0xff] }
  0xeb   :  { %2302 = vmatpush.bf16.msra.mxu2 %v7467_v38  ;;  %v7486_v38 = vld [vmem:[#allocation4 + $0x2f0] sm:$0xff] }
  0xec   :  { %2289 = vmatpush.bf16.msra.mxu1 %v7459_v47 }
  0xed   :  { %1120 = vmatmul.bf16.vlgmr.msra.gmra.mxu0 %v8076_v51  ;;  %v7479_v51 = vld [vmem:[#allocation4 + $0x2b8] sm:$0xff] }
  0xee   :  { %2220 = vmatpush.bf16.msrb.mxu0 %v7423_v59  ;;  %2311 = vmatpush.bf16.msra.mxu3 %v7479_v51  ;;  %v7464_v59 = vld [vmem:[#allocation4 + $0x240] sm:$0xff]  ;;  %v7494_v51 = vld [vmem:[#allocation4 + $0x330] sm:$0xff] }
  0xef   :  { %2303 = vmatpush.bf16.msra.mxu2 %v7466_v48  ;;  %v7504_v48 = vld [vmem:[#allocation4 + $0x380] sm:$0xff] }
  0xf0   :  { %2290 = vmatpush.bf16.msra.mxu1 %v7458_v53 }
  0xf2   :  { %2221 = vmatpush.bf16.msrb.mxu0 %v7422_v0  ;;  %2312 = vmatpush.bf16.msra.mxu3 %v7478_v24 }
  0xf3   :  { %2304 = vmatpush.bf16.msra.mxu2 %v7465_v54  ;;  %v7488_v54 = vld [vmem:[#allocation4 + $0x300] sm:$0xff] }
  0xf4   :  { %2291 = vmatpush.bf16.msra.mxu1 %v7457_v58 }
  0xf6   :  { %2222 = vmatpush.bf16.msrb.mxu0 %v7421_v4  ;;  %2313 = vmatpush.bf16.msra.mxu3 %v7477_v31 }
  0xf7   :  { %2305 = vmatpush.bf16.msra.mxu2 %v7464_v59  ;;  %v7483_v59 = vld [vmem:[#allocation4 + $0x2d8] sm:$0xff] }
  0xf8   :  { %2292 = vmatpush.bf16.msra.mxu1 %v7456_v5  ;;  %v7481_v5 = vld [vmem:[#allocation4 + $0x2c8] sm:$0xff] }
  0xf9   :  { %v1030_v9 = vpop.f32.mrf.mxu1 }
  0xfa   :  { %2223 = vmatpush.bf16.msrb.mxu0 %v7420_v15  ;;  %2314 = vmatpush.bf16.msra.mxu3 %v7476_v35  ;;  %v1133_v12 = vmax.f32 %v1030_v9, 0.0  ;;  %v7491_v35 = vld [vmem:[#allocation4 + $0x318] sm:$0xff]  ;;  %v7517_v9 = vld [vmem:[#allocation4 + $0x3e8] sm:$0xff] }
  0xfb   :  { %2350 = vmatpush.bf16.msrb.mxu2 %v7503_v60 }
  0xfc   :  { %v1056_v6 = vpop.f32.mrf.mxu3  ;;  %2337 = vmatpush.bf16.msrb.mxu1 %v7495_v7  ;;  %v1149_v15 = vpack.c.bf16 %v1133_v12, %v1133_v12  ;;  %v7519_v7 = vld [vmem:[#allocation4 + $0x3f8] sm:$0xff] }
  0xfd   :  { %v1043_v61 = vpop.f32.mrf.mxu2  ;;  %v1135_v11 = vmax.f32 %v1056_v6, 0.0  ;;  %v7480_v6 = vld [vmem:[#allocation4 + $0x2c0] sm:$0xff] }
  0xfe   :  { %2224 = vmatpush.bf16.msrb.mxu0 %v7419_v23  ;;  %2315 = vmatpush.bf16.msra.mxu3 %v7475_v43  ;;  %v1134_v62 = vmax.f32 %v1043_v61, 0.0  ;;  %v7500_v23 = vld [vmem:[#allocation4 + $0x360] sm:$0xff]  ;;  %v7489_v43 = vld [vmem:[#allocation4 + $0x308] sm:$0xff] }
  0xff   :  { %v1151_v14 = vpack.c.bf16 %v1135_v11, %v1135_v11  ;;  %2351 = vmatpush.bf16.msrb.mxu2 %v7502_v8  ;;  %2293 = vmatmul.bf16.vlgmr.msra.gmra.mxu1 %v1149_v15  ;;  %v7518_v8 = vld [vmem:[#allocation4 + $0x3f0] sm:$0xff] }
 0x100   :  { %v1150_v4 = vpack.c.bf16 %v1134_v62, %v1134_v62  ;;  %2338 = vmatpush.bf16.msrb.mxu1 %v7494_v51  ;;  %v7514_v15 = vld [vmem:[#allocation4 + $0x3d0] sm:$0xff] }
 0x101   :  { %v1032_v26 = vpop.f32.mrf.mxu1 }
 0x102   :  { %2225 = vmatpush.bf16.msrb.mxu0 %v7418_v30  ;;  %2316 = vmatpush.bf16.msra.mxu3 %v7474_v49  ;;  %v7499_v30 = vld [vmem:[#allocation4 + $0x358] sm:$0xff] }
 0x103   :  { %2306 = vmatmul.bf16.vlgmr.msra.gmra.mxu2 %v1150_v4 }
 0x104   :  { %2352 = vmatpush.bf16.msrb.mxu2 %v7501_v16  ;;  %v1058_v25 = vpop.f32.mrf.mxu3  ;;  %2339 = vmatpush.bf16.msrb.mxu1 %v7493_v22  ;;  %v7513_v16 = vld [vmem:[#allocation4 + $0x3c8] sm:$0xff] }
 0x105   :  { %v1045_v17 = vpop.f32.mrf.mxu2 }
 0x106   :  { %2226 = vmatpush.bf16.msrb.mxu0 %v7417_v34  ;;  %2317 = vmatpush.bf16.msra.mxu3 %v7473_v56  ;;  %v7487_v34 = vld [vmem:[#allocation4 + $0x2f8] sm:$0xff]  ;;  %v7512_v17 = vld [vmem:[#allocation4 + $0x3c0] sm:$0xff] }
 0x108   :  { %2353 = vmatpush.bf16.msrb.mxu2 %v7500_v23  ;;  %2340 = vmatpush.bf16.msrb.mxu1 %v7492_v29 }
 0x10a   :  { %2227 = vmatpush.bf16.msrb.mxu0 %v7416_v42  ;;  %v8098_v0 = vpop.f32.mrf.mxu0  ;;  %2318 = vmatpush.bf16.msra.mxu3 %v7472_v63  ;;  %v7485_v42 = vld [vmem:[#allocation4 + $0x2e8] sm:$0xff]  ;;  %v7482_v63 = vld [vmem:[#allocation4 + $0x2d0] sm:$0xff] }
 0x10c   :  { %2354 = vmatpush.bf16.msrb.mxu2 %v7499_v30  ;;  %2341 = vmatpush.bf16.msrb.mxu1 %v7491_v35 }
 0x10d   :  { %2319 = vmatmul.bf16.vlgmr.msra.gmra.mxu3 %v1151_v14 }
 0x10e   :  { %2272 = vmatpush.bf16.msra.mxu0 %v7455_v44  ;;  %2363 = vmatpush.bf16.msrb.mxu3 %v7511_v3  ;;  %v7496_v44 = vld [vmem:[#allocation4 + $0x340] sm:$0xff] }
 0x110   :  { %2355 = vmatpush.bf16.msrb.mxu2 %v7498_v36  ;;  %2342 = vmatpush.bf16.msrb.mxu1 %v7490_v39 }
 0x112   :  { %2273 = vmatpush.bf16.msra.mxu0 %v7454_v50  ;;  %v965_v18 = vpop.f32.mrf.mxu0  ;;  %2364 = vmatpush.bf16.msrb.mxu3 %v7510_v13  ;;  %v7515_v13 = vld [vmem:[#allocation4 + $0x3d8] sm:$0xff] }
 0x113   :  { %v1128_v21 = vmax.f32 %v965_v18, 0.0 }
 0x114   :  { %2356 = vmatpush.bf16.msrb.mxu2 %v7497_v40  ;;  %2343 = vmatpush.bf16.msrb.mxu1 %v7489_v43 }
 0x115   :  { %v1144_v24 = vpack.c.bf16 %v1128_v21, %v1128_v21 }
 0x116   :  { %2274 = vmatpush.bf16.msra.mxu0 %v7453_v57  ;;  %2365 = vmatpush.bf16.msrb.mxu3 %v7509_v20 }
 0x117   :  { %2228 = vmatmul.bf16.vlgmr.msrb.gmra.mxu0 %v1144_v24 }
 0x118   :  { %2357 = vmatpush.bf16.msrb.mxu2 %v7496_v44  ;;  %v1082_v53 = vpop.f32.mrf.mxu1  ;;  %2344 = vmatpush.bf16.msrb.mxu1 %v7488_v54 }
 0x119   :  { %v1137_v56 = vmax.f32 %v1082_v53, 0.0 }
 0x11a   :  { %2275 = vmatpush.bf16.msra.mxu0 %v7452_v2  ;;  %v967_v31 = vpop.f32.mrf.mxu0  ;;  %2366 = vmatpush.bf16.msrb.mxu3 %v7508_v28 }
 0x11b   :  { %v1153_v60 = vpack.c.bf16 %v1137_v56, %v1137_v56  ;;  %v6105_v56 = vld [vmem:[#allocation6 + $0xe8] sm:$0xf] }
 0x11c   :  { %v1108_v49 = vpop.f32.mrf.mxu3 }
 0x11d   :  { %v1095_v45 = vpop.f32.mrf.mxu2  ;;  %v1139_v52 = vmax.f32 %v1108_v49, 0.0  ;;  %2345 = vmatmul.bf16.vlgmr.msrb.gmra.mxu1 %v1153_v60  ;;  %v7550_v49 = vld [vmem:[#allocation6 + $0xec] sm:$0xf0] }
 0x11e   :  { %2276 = vmatpush.bf16.msra.mxu0 %v7451_v10  ;;  %2367 = vmatpush.bf16.msrb.mxu3 %v7507_v33  ;;  %v1138_v47 = vmax.f32 %v1095_v45, 0.0  ;;  %v7516_v10 = vld [vmem:[#allocation4 + $0x3e0] sm:$0xff] }
 0x11f   :  { %v1155_v58 = vpack.c.bf16 %v1139_v52, %v1139_v52 }
 0x120   :  { %v1154_v50 = vpack.c.bf16 %v1138_v47, %v1138_v47  ;;  %v1084_v3 = vpop.f32.mrf.mxu1 }
 0x122   :  { %2277 = vmatpush.bf16.msra.mxu0 %v7450_v19  ;;  %2368 = vmatpush.bf16.msrb.mxu3 %v7506_v37 }
 0x123   :  { %2358 = vmatmul.bf16.vlgmr.msrb.gmra.mxu2 %v1154_v50  ;;  %v7548_v50 = vld [vmem:[#allocation6 + $0xe4] sm:$0xf] }
 0x124   :  { %v1110_v2 = vpop.f32.mrf.mxu3 }
 0x125   :  { %v1097_v62 = vpop.f32.mrf.mxu2 }
 0x126   :  { %2278 = vmatpush.bf16.msra.mxu0 %v7449_v27  ;;  %2369 = vmatpush.bf16.msrb.mxu3 %v7505_v41  ;;  %v6107_v62 = vld [vmem:[#allocation6 + $0xf8] sm:$0xf0] }
 0x12a   :  { %2279 = vmatpush.bf16.msra.mxu0 %v7448_v32  ;;  %v1017_v55 = vpop.f32.mrf.mxu0  ;;  %2370 = vmatpush.bf16.msrb.mxu3 %v7504_v48  ;;  %v6097_v48 = vld [vmem:[#allocation6 + $0xe0] sm:$0xf] }
 0x12b   :  { %v1132_v57 = vmax.f32 %v1017_v55, 0.0  ;;  %v6098_v54 = vor.u32 %v7550_v49, %v6097_v48  ;;  %v6099_v55 = vld [vmem:[#allocation6 + $0xf0] sm:$0xf0]  ;;  %v6041_v49 = vld [vmem:[#allocation6 + $0x68] sm:$0xf] }
 0x12c   :  { %v6035_v48 = vld [vmem:[#allocation6 + $0x70] sm:$0xf0] }
 0x12d   :  { %v1148_v61 = vpack.c.bf16 %v1132_v57, %v1132_v57  ;;  %2371 = vmatmul.bf16.vlgmr.msrb.gmra.mxu3 %v1155_v58  ;;  %v7551_v57 = vld [vmem:[#allocation6 + $0xf4] sm:$0xf0]  ;;  %2583 = vmatpush.bf16.msra.mxu1 %v6098_v54  ;;  %v7533_v54 = vld [vmem:[#allocation6 + $0x6c] sm:$0xf] }
 0x12e   :  { %2324 = vmatpush.bf16.msrb.mxu0 %v7487_v34  ;;  %v6106_v60 = vor.u32 %v7551_v57, %v6105_v56 }
 0x12f   :  { %2280 = vmatmul.bf16.vlgmr.msra.gmra.mxu0 %v1148_v61  ;;  %v7549_v61 = vld [vmem:[#allocation6 + $0xec] sm:$0xf] }
 0x130   :  { %v6110_v2 = vor.u32 %v7549_v61, %v6107_v62  ;;  %2609 = vmatpush.bf16.msra.mxu3 %v6106_v60  ;;  %v7530_v60 = vld [vmem:[#allocation6 + $0x4c] sm:$0xf0]  ;;  %v7528_v61 = vld [vmem:[#allocation6 + $0x44] sm:$0xf] }
 0x132   :  { %2325 = vmatpush.bf16.msrb.mxu0 %v7486_v38  ;;  %v1019_v4 = vpop.f32.mrf.mxu0 }
 0x133   :  { %v6081_v4 = vld [vmem:[#allocation6 + $0xc0] sm:$0xf] }
 0x136   :  { %2326 = vmatpush.bf16.msrb.mxu0 %v7485_v42 }
 0x13a   :  { %2327 = vmatpush.bf16.msrb.mxu0 %v7484_v46 }
 0x13e   :  { %2328 = vmatpush.bf16.msrb.mxu0 %v7483_v59  ;;  %v6102_v59 = vor.u32 %v7548_v50, %v6099_v55  ;;  %v7535_v50 = vld [vmem:[#allocation6 + $0x74] sm:$0xf0]  ;;  %v6043_v55 = vld [vmem:[#allocation6 + $0x78] sm:$0xf0] }
 0x13f   :  { %v6046_v62 = vor.u32 %v7533_v54, %v6043_v55  ;;  %v7646_v54 = vld [vmem:[#allocation7 + $0x2ec] sm:$0xf0] }
 0x140   :  { %2596 = vmatpush.bf16.msra.mxu2 %v6102_v59  ;;  %v6017_v59 = vld [vmem:[#allocation6 + $0x40] sm:$0xf] }
 0x142   :  { %2329 = vmatpush.bf16.msrb.mxu0 %v7482_v63 }
 0x144   :  { %v2216_v26 = vpop.f32.mrf.mxu3 }
 0x145   :  { %v2203_v18 = vpop.f32.mrf.mxu2 }
 0x146   :  { %2330 = vmatpush.bf16.msrb.mxu0 %v7481_v5  ;;  %v7546_v5 = vld [vmem:[#allocation6 + $0xcc] sm:$0xf0] }
 0x14a   :  { %2331 = vmatpush.bf16.msrb.mxu0 %v7480_v6  ;;  %v1069_v11 = vpop.f32.mrf.mxu0  ;;  %v7544_v6 = vld [vmem:[#allocation6 + $0xc4] sm:$0xf] }
 0x14b   :  { %v1136_v12 = vmax.f32 %v1069_v11, 0.0  ;;  %v7547_v11 = vld [vmem:[#allocation6 + $0xd4] sm:$0xf0] }
 0x14c   :  { %v2190_v24 = vpop.f32.mrf.mxu1  ;;  %v2218_v30 = vpop.f32.mrf.mxu3 }
 0x14d   :  { %v1152_v14 = vpack.c.bf16 %v1136_v12, %v1136_v12  ;;  %v2205_v22 = vpop.f32.mrf.mxu2  ;;  %v2204_v25 = vadd.f32 %v2203_v18, %v2190_v24  ;;  %v7542_v18 = vld [vmem:[#allocation6 + $0xac] sm:$0xf0]  ;;  %v6073_v24 = vld [vmem:[#allocation6 + $0xa8] sm:$0xf]  ;;  %v6049_v30 = vld [vmem:[#allocation6 + $0x80] sm:$0xf] }
 0x14e   :  { %2376 = vmatpush.bf16.msra.mxu0 %v7519_v7 }
 0x14f   :  { %2332 = vmatmul.bf16.vlgmr.msrb.gmra.mxu0 %v1152_v14  ;;  %v2217_v27 = vadd.f32 %v2216_v26, %v2204_v25  ;;  %v7543_v25 = vld [vmem:[#allocation6 + $0xb4] sm:$0xf0]  ;;  %v7541_v26 = vld [vmem:[#allocation6 + $0xac] sm:$0xf] }
 0x152   :  { %2377 = vmatpush.bf16.msra.mxu0 %v7518_v8  ;;  %v1071_v51 = vpop.f32.mrf.mxu0  ;;  %v6082_v8 = vor.u32 %v7546_v5, %v6081_v4  ;;  %v7531_v4 = vld [vmem:[#allocation6 + $0x54] sm:$0xf0]  ;;  %v7529_v5 = vld [vmem:[#allocation6 + $0x4c] sm:$0xf] }
 0x153   :  { %v6091_v51 = vld [vmem:[#allocation6 + $0xd8] sm:$0xf0] }
 0x154   :  { %v2192_v28 = vpop.f32.mrf.mxu1  ;;  %2584 = vmatpush.bf16.msra.mxu1 %v6082_v8  ;;  %v6018_v8 = vor.u32 %v7530_v60, %v6017_v59  ;;  %v7574_v59 = vld [vmem:[#allocation7 + $0xac] sm:$0xf0]  ;;  %v6577_v60 = vld [vmem:[#allocation7 + $0x3a0] sm:$0xf] }
 0x155   :  { %v6074_v28 = vor.u32 %v7543_v25, %v6073_v24  ;;  %v5985_v24 = vld [vmem:[#allocation6] sm:$0xf]  ;;  %v7522_v25 = vld [vmem:[#allocation6 + $0xc] sm:$0xf0] }
 0x156   :  { %2378 = vmatpush.bf16.msra.mxu0 %v7517_v9  ;;  %v6083_v9 = vld [vmem:[#allocation6 + $0xd0] sm:$0xf0] }
 0x15a   :  { %2379 = vmatpush.bf16.msra.mxu0 %v7516_v10  ;;  %v6089_v10 = vld [vmem:[#allocation6 + $0xc8] sm:$0xf] }
 0x15b   :  { %v6090_v14 = vor.u32 %v7547_v11, %v6089_v10 }
 0x15c   :  { %v2242_v31 = vpop.f32.mrf.mxu1 }
 0x15d   :  { %2610 = vmatpush.bf16.msra.mxu3 %v6090_v14  ;;  %v7524_v14 = vld [vmem:[#allocation6 + $0x24] sm:$0xf] }
 0x15e   :  { %2380 = vmatpush.bf16.msra.mxu0 %v7515_v13  ;;  %v6086_v13 = vor.u32 %v7544_v6, %v6083_v9  ;;  %v6027_v6 = vld [vmem:[#allocation6 + $0x58] sm:$0xf0] }
 0x15f   :  { %v6030_v11 = vor.u32 %v7529_v5, %v6027_v6  ;;  %v7642_v5 = vld [vmem:[#allocation7 + $0x2cc] sm:$0xf0] }
 0x160   :  { %2597 = vmatpush.bf16.msra.mxu2 %v6086_v13  ;;  %v7526_v13 = vld [vmem:[#allocation6 + $0x2c] sm:$0xf0] }
 0x161   :  { %2611 = vmatpush.bf16.msra.mxu3 %v6074_v28  ;;  %v5987_v28 = vld [vmem:[#allocation6 + $0x10] sm:$0xf0] }
 0x162   :  { %2381 = vmatpush.bf16.msra.mxu0 %v7514_v15  ;;  %v7545_v15 = vld [vmem:[#allocation6 + $0xcc] sm:$0xf] }
 0x164   :  { %v2244_v34 = vpop.f32.mrf.mxu1 }
 0x165   :  { %v2255_v29 = vpop.f32.mrf.mxu2  ;;  %v7536_v34 = vld [vmem:[#allocation6 + $0x84] sm:$0xf] }
 0x166   :  { %2382 = vmatpush.bf16.msra.mxu0 %v7513_v16  ;;  %v2268_v33 = vpop.f32.mrf.mxu3  ;;  %v6065_v16 = vld [vmem:[#allocation6 + $0xa0] sm:$0xf] }
 0x167   :  { %v6066_v22 = vor.u32 %v7542_v18, %v6065_v16  ;;  %v6009_v16 = vld [vmem:[#allocation6 + $0x28] sm:$0xf] }
 0x169   :  { %2585 = vmatpush.bf16.msra.mxu1 %v6066_v22  ;;  %v6011_v22 = vld [vmem:[#allocation6 + $0x38] sm:$0xf0] }
 0x16a   :  { %2383 = vmatpush.bf16.msra.mxu0 %v7512_v17  ;;  %v1121_v19 = vpop.f32.mrf.mxu0  ;;  %v6094_v17 = vor.u32 %v7545_v15, %v6091_v51  ;;  %v6003_v51 = vld [vmem:[#allocation6 + $0x30] sm:$0xf0] }
 0x16b   :  { %v1140_v20 = vmax.f32 %v1121_v19, 0.0  ;;  %v7540_v19 = vld [vmem:[#allocation6 + $0xa4] sm:$0xf]  ;;  %v6006_v18 = vor.u32 %v7524_v14, %v6003_v51  ;;  %v6449_v14 = vld [vmem:[#allocation7 + $0x2a0] sm:$0xf] }
 0x16c   :  { %v7666_v51 = vld [vmem:[#allocation7 + $0x38c] sm:$0xf0] }
 0x16d   :  { %v1156_v21 = vpack.c.bf16 %v1140_v20, %v1140_v20  ;;  %v2257_v32 = vpop.f32.mrf.mxu2  ;;  %v6067_v20 = vld [vmem:[#allocation6 + $0xb0] sm:$0xf0] }
 0x16e   :  { %v2270_v35 = vpop.f32.mrf.mxu3  ;;  %2622 = vmatpush.bf16.msrb.mxu0 %v6110_v2  ;;  %v6019_v2 = vld [vmem:[#allocation6 + $0x50] sm:$0xf0] }
 0x16f   :  { %2384 = vmatmul.bf16.vlgmr.msra.gmra.mxu0 %v1156_v21  ;;  %v6051_v35 = vld [vmem:[#allocation6 + $0x90] sm:$0xf0]  ;;  %v6022_v9 = vor.u32 %v7528_v61, %v6019_v2  ;;  %v7670_v61 = vld [vmem:[#allocation7 + $0x3ac] sm:$0xf0] }
 0x170   :  { %v7610_v2 = vld [vmem:[#allocation7 + $0x1cc] sm:$0xf0] }
 0x172   :  { %v1123_v23 = vpop.f32.mrf.mxu0  ;;  %2623 = vmatpush.bf16.msrb.mxu0 %v6094_v17  ;;  %v7527_v17 = vld [vmem:[#allocation6 + $0x34] sm:$0xf0] }
 0x173   :  { %v6070_v23 = vor.u32 %v7540_v19, %v6067_v20  ;;  %v6010_v19 = vor.u32 %v7527_v17, %v6009_v16  ;;  %v7525_v20 = vld [vmem:[#allocation6 + $0x2c] sm:$0xf]  ;;  %v7638_v16 = vld [vmem:[#allocation7 + $0x2ac] sm:$0xf0] }
 0x175   :  { %2598 = vmatpush.bf16.msra.mxu2 %v6070_v23  ;;  %v6014_v23 = vor.u32 %v7525_v20, %v6011_v22 }
 0x17c   :  { %v2294_v36 = vpop.f32.mrf.mxu1 }
 0x184   :  { %v2296_v42 = vpop.f32.mrf.mxu1 }
 0x185   :  { %v6054_v42 = vor.u32 %v7536_v34, %v6051_v35  ;;  %v7521_v34 = vld [vmem:[#allocation6 + $0xc] sm:$0xf]  ;;  %v5995_v35 = vld [vmem:[#allocation6 + $0x18] sm:$0xf0] }
 0x186   :  { %v2307_v37 = vpop.f32.mrf.mxu2 }
 0x187   :  { %2599 = vmatpush.bf16.msra.mxu2 %v6054_v42  ;;  %v6209_v42 = vld [vmem:[#allocation7 + $0xc0] sm:$0xf] }
 0x18e   :  { %v2309_v44 = vpop.f32.mrf.mxu2 }
 0x18f   :  { %v6033_v44 = vld [vmem:[#allocation6 + $0x60] sm:$0xf] }
 0x190   :  { %v2320_v40 = vpop.f32.mrf.mxu3 }
 0x194   :  { %v2229_v38 = vpop.f32.mrf.mxu0 }
 0x195   :  { %v2230_v39 = vadd.f32 %v2229_v38, %v2217_v27  ;;  %v7539_v38 = vld [vmem:[#allocation6 + $0x94] sm:$0xf0] }
 0x197   :  { %v2243_v41 = vadd.f32 %v2242_v31, %v2230_v39  ;;  %v7538_v31 = vld [vmem:[#allocation6 + $0x8c] sm:$0xf0]  ;;  %v7537_v39 = vld [vmem:[#allocation6 + $0x8c] sm:$0xf] }
 0x198   :  { %v2322_v47 = vpop.f32.mrf.mxu3 }
 0x199   :  { %v2256_v43 = vadd.f32 %v2255_v29, %v2243_v41  ;;  %v6075_v29 = vld [vmem:[#allocation6 + $0xb8] sm:$0xf0] }
 0x19a   :  { %v8100_v53 = vpop.f32.mrf.mxu1 }
 0x19b   :  { %v2269_v45 = vadd.f32 %v2268_v33, %v2256_v43  ;;  %v6078_v33 = vor.u32 %v7541_v26, %v6075_v29  ;;  %v7520_v26 = vld [vmem:[#allocation6 + $0x4] sm:$0xf]  ;;  %v5993_v29 = vld [vmem:[#allocation6 + $0x8] sm:$0xf] }
 0x19c   :  { %v2231_v46 = vpop.f32.mrf.mxu0 }
 0x19d   :  { %v7532_v46 = vld [vmem:[#allocation6 + $0x64] sm:$0xf]  ;;  %2624 = vmatpush.bf16.msrb.mxu0 %v6078_v33 }
 0x19e   :  { %v6038_v57 = vor.u32 %v7532_v46, %v6035_v48  ;;  %v7674_v46 = vld [vmem:[#allocation7 + $0x3cc] sm:$0xf0] }
 0x1a0   :  { %2600 = vmatpush.bf16.msra.mxu2 %v6038_v57 }
 0x1a2   :  { %v2348_v32 = vpop.f32.mrf.mxu1 }
 0x1a3   :  { %v5990_v32 = vor.u32 %v7520_v26, %v5987_v28  ;;  %v7566_v28 = vld [vmem:[#allocation7 + $0x6c] sm:$0xf0] }
 0x1a4   :  { %2601 = vmatpush.bf16.msra.mxu2 %v6022_v9  ;;  %v6177_v9 = vld [vmem:[#allocation7 + $0x80] sm:$0xf] }
 0x1a6   :  { %v8102_v63 = vpop.f32.mrf.mxu2 }
 0x1a8   :  { %2602 = vmatpush.bf16.msra.mxu2 %v6006_v18  ;;  %v6450_v18 = vor.u32 %v7638_v16, %v6449_v14  ;;  %v6227_v14 = vld [vmem:[#allocation7 + $0xf0] sm:$0xf0] }
 0x1ac   :  { %v2281_v52 = vpop.f32.mrf.mxu0  ;;  %2603 = vmatpush.bf16.msra.mxu2 %v5990_v32 }
 0x1ad   :  { %v2282_v58 = vadd.f32 %v2281_v52, %v2269_v45  ;;  %v7534_v45 = vld [vmem:[#allocation6 + $0x6c] sm:$0xf0] }
 0x1ae   :  { %v2361_v41 = vpop.f32.mrf.mxu2  ;;  %v6034_v56 = vor.u32 %v7534_v45, %v6033_v44  ;;  %v6593_v45 = vld [vmem:[#allocation7 + $0x3c0] sm:$0xf] }
 0x1af   :  { %v2295_v3 = vadd.f32 %v2294_v36, %v2282_v58  ;;  %v6057_v36 = vld [vmem:[#allocation6 + $0x88] sm:$0xf]  ;;  %v6042_v58 = vor.u32 %v7535_v50, %v6041_v49  ;;  %v7678_v41 = vld [vmem:[#allocation7 + $0x3ec] sm:$0xf0]  ;;  %v6594_v55 = vor.u32 %v7674_v46, %v6593_v45  ;;  %v6273_v45 = vld [vmem:[#allocation7 + $0x140] sm:$0xf] }
 0x1b0   :  { %v8104_v7 = vpop.f32.mrf.mxu3  ;;  %v6058_v43 = vor.u32 %v7539_v38, %v6057_v36  ;;  %v5998_v36 = vor.u32 %v7521_v34, %v5995_v35  ;;  %v7582_v38 = vld [vmem:[#allocation7 + $0xec] sm:$0xf0]  ;;  %v6289_v34 = vld [vmem:[#allocation7 + $0x160] sm:$0xf] }
 0x1b1   :  { %v2308_v12 = vadd.f32 %v2307_v37, %v2295_v3  ;;  %v6050_v37 = vor.u32 %v7538_v31, %v6049_v30  ;;  %v6025_v3 = vld [vmem:[#allocation6 + $0x48] sm:$0xf]  ;;  %v7523_v30 = vld [vmem:[#allocation6 + $0x14] sm:$0xf0]  ;;  %v7614_v50 = vld [vmem:[#allocation7 + $0x1ec] sm:$0xf0] }
 0x1b2   :  { %2612 = vmatpush.bf16.msra.mxu3 %v6058_v43  ;;  %v6026_v10 = vor.u32 %v7531_v4, %v6025_v3  ;;  %v5994_v33 = vor.u32 %v7523_v30, %v5993_v29  ;;  %v7578_v43 = vld [vmem:[#allocation7 + $0xcc] sm:$0xf0]  ;;  %v6465_v4 = vld [vmem:[#allocation7 + $0x2c0] sm:$0xf] }
 0x1b3   :  { %v8106_v21 = vadd.f32 %v2320_v40, %v2308_v12  ;;  %v6059_v40 = vld [vmem:[#allocation6 + $0x98] sm:$0xf0]  ;;  %2586 = vmatpush.bf16.msra.mxu1 %v6050_v37  ;;  %v6001_v12 = vld [vmem:[#allocation6 + $0x20] sm:$0xf]  ;;  %v6210_v49 = vor.u32 %v7578_v43, %v6209_v42  ;;  %v7662_v30 = vld [vmem:[#allocation7 + $0x36c] sm:$0xf0] }
 0x1b4   :  { %v2283_v27 = vpop.f32.mrf.mxu0  ;;  %v6062_v47 = vor.u32 %v7537_v39, %v6059_v40  ;;  %v6002_v15 = vor.u32 %v7526_v13, %v6001_v12  ;;  %v6225_v37 = vld [vmem:[#allocation7 + $0xe0] sm:$0xf]  ;;  %v7606_v13 = vld [vmem:[#allocation7 + $0x1ac] sm:$0xf0] }
 0x1b5   :  { %v5986_v27 = vor.u32 %v7522_v25, %v5985_v24  ;;  %v6609_v39 = vld [vmem:[#allocation7 + $0x3e0] sm:$0xf]  ;;  %v6226_v40 = vor.u32 %v7582_v38, %v6225_v37  ;;  %v7634_v25 = vld [vmem:[#allocation7 + $0x28c] sm:$0xf0] }
 0x1b6   :  { %2625 = vmatpush.bf16.msrb.mxu0 %v6062_v47  ;;  %2613 = vmatpush.bf16.msra.mxu3 %v6042_v58  ;;  %v6610_v44 = vor.u32 %v7678_v41, %v6609_v39  ;;  %v6353_v47 = vld [vmem:[#allocation7 + $0x1e0] sm:$0xf]  ;;  %v7630_v37 = vld [vmem:[#allocation7 + $0x26c] sm:$0xf0] }
 0x1b7   :  { %2587 = vmatpush.bf16.msra.mxu1 %v6034_v56  ;;  %v6354_v56 = vor.u32 %v7614_v50, %v6353_v47  ;;  %v6193_v58 = vld [vmem:[#allocation7 + $0xa0] sm:$0xf]  ;;  %v7658_v42 = vld [vmem:[#allocation7 + $0x34c] sm:$0xf0] }
 0x1b8   :  { %v2374_v52 = vpop.f32.mrf.mxu3  ;;  %v6194_v6 = vor.u32 %v7574_v59, %v6193_v58  ;;  %v6321_v12 = vld [vmem:[#allocation7 + $0x1a0] sm:$0xf]  ;;  %v7594_v47 = vld [vmem:[#allocation7 + $0x14c] sm:$0xf0] }
 0x1b9   :  { %v6481_v52 = vld [vmem:[#allocation7 + $0x2e0] sm:$0xf]  ;;  %3434 = vmatpush.bf16.msrb.mxu2 %v6354_v56  ;;  %v6322_v17 = vor.u32 %v7606_v13, %v6321_v12  ;;  %v7654_v56 = vld [vmem:[#allocation7 + $0x32c] sm:$0xf0] }
 0x1ba   :  { %2626 = vmatpush.bf16.msrb.mxu0 %v6046_v62  ;;  %2614 = vmatpush.bf16.msra.mxu3 %v6026_v10  ;;  %v6482_v57 = vor.u32 %v7646_v54, %v6481_v52  ;;  %v6337_v62 = vld [vmem:[#allocation7 + $0x1c0] sm:$0xf]  ;;  %v7570_v10 = vld [vmem:[#allocation7 + $0x8c] sm:$0xf0] }
 0x1bb   :  { %2588 = vmatpush.bf16.msra.mxu1 %v6018_v8  ;;  %v6338_v3 = vor.u32 %v7610_v2, %v6337_v62  ;;  %v6466_v8 = vor.u32 %v7642_v5, %v6465_v4  ;;  %v6178_v22 = vor.u32 %v7570_v10, %v6177_v9  ;;  %v6433_v24 = vld [vmem:[#allocation7 + $0x280] sm:$0xf]  ;;  %v7558_v54 = vld [vmem:[#allocation7 + $0x2c] sm:$0xf0] }
 0x1bc   :  { %v6545_v29 = vld [vmem:[#allocation7 + $0x360] sm:$0xf]  ;;  %v7590_v2 = vld [vmem:[#allocation7 + $0x12c] sm:$0xf0] }
 0x1bd   :  { %3435 = vmatpush.bf16.msrb.mxu2 %v6338_v3  ;;  %v6546_v38 = vor.u32 %v7662_v30, %v6545_v29  ;;  %v6145_v39 = vld [vmem:[#allocation7 + $0x40] sm:$0xf]  ;;  %v7622_v4 = vld [vmem:[#allocation7 + $0x22c] sm:$0xf0] }
 0x1be   :  { %2627 = vmatpush.bf16.msrb.mxu0 %v6030_v11  ;;  %2615 = vmatpush.bf16.msra.mxu3 %v6010_v19  ;;  %v6578_v11 = vor.u32 %v7670_v61, %v6577_v60  ;;  %v6305_v19 = vld [vmem:[#allocation7 + $0x180] sm:$0xf]  ;;  %v7554_v10 = vld [vmem:[#allocation7 + $0xc] sm:$0xf0] }
 0x1bf   :  { %2589 = vmatpush.bf16.msra.mxu1 %v6002_v15  ;;  %v6561_v15 = vld [vmem:[#allocation7 + $0x380] sm:$0xf]  ;;  %v7650_v12 = vld [vmem:[#allocation7 + $0x30c] sm:$0xf0] }
 0x1c0   :  { %v6562_v26 = vor.u32 %v7666_v51, %v6561_v15  ;;  %v6529_v41 = vld [vmem:[#allocation7 + $0x340] sm:$0xf]  ;;  %v7676_v15 = vld [vmem:[#allocation7 + $0x3e4] sm:$0xf] }
 0x1c1   :  { %3436 = vmatpush.bf16.msrb.mxu2 %v6322_v17  ;;  %v6530_v50 = vor.u32 %v7658_v42, %v6529_v41  ;;  %v6129_v52 = vld [vmem:[#allocation7 + $0x20] sm:$0xf]  ;;  %v7640_v41 = vld [vmem:[#allocation7 + $0x2c4] sm:$0xf]  ;;  %v6467_v42 = vld [vmem:[#allocation7 + $0x2d0] sm:$0xf0] }
 0x1c2   :  { %2628 = vmatpush.bf16.msrb.mxu0 %v6014_v23  ;;  %2616 = vmatpush.bf16.msra.mxu3 %v5994_v33  ;;  %v7602_v23 = vld [vmem:[#allocation7 + $0x18c] sm:$0xf0]  ;;  %v6434_v33 = vor.u32 %v7634_v25, %v6433_v24  ;;  %v6257_v60 = vld [vmem:[#allocation7 + $0x120] sm:$0xf]  ;;  %v6130_v62 = vor.u32 %v7558_v54, %v6129_v52  ;;  %v7612_v24 = vld [vmem:[#allocation7 + $0x1e4] sm:$0xf] }
 0x1c3   :  { %2590 = vmatpush.bf16.msra.mxu1 %v5986_v27  ;;  %v6161_v27 = vld [vmem:[#allocation7 + $0x60] sm:$0xf]  ;;  %v6306_v32 = vor.u32 %v7602_v23, %v6305_v19  ;;  %v6258_v51 = vor.u32 %v7590_v2, %v6257_v60  ;;  %v7618_v23 = vld [vmem:[#allocation7 + $0x20c] sm:$0xf0]  ;;  %v6323_v52 = vld [vmem:[#allocation7 + $0x1b0] sm:$0xf0] }
 0x1c4   :  { %v6385_v3 = vld [vmem:[#allocation7 + $0x220] sm:$0xf]  ;;  %v7636_v54 = vld [vmem:[#allocation7 + $0x2a4] sm:$0xf]  ;;  %v6563_v60 = vld [vmem:[#allocation7 + $0x390] sm:$0xf0] }
 0x1c5   :  { %3437 = vmatpush.bf16.msrb.mxu2 %v6306_v32  ;;  %v6386_v16 = vor.u32 %v7622_v4, %v6385_v3  ;;  %v6241_v19 = vld [vmem:[#allocation7 + $0x100] sm:$0xf]  ;;  %v7576_v32 = vld [vmem:[#allocation7 + $0xc4] sm:$0xf]  ;;  %v6307_v3 = vld [vmem:[#allocation7 + $0x190] sm:$0xf0] }
 0x1c6   :  { %2629 = vmatpush.bf16.msrb.mxu0 %v5998_v36  ;;  %3447 = vmatpush.bf16.msrb.mxu3 %v6482_v57  ;;  %v6417_v36 = vld [vmem:[#allocation7 + $0x260] sm:$0xf]  ;;  %v7600_v2 = vld [vmem:[#allocation7 + $0x184] sm:$0xf] }
 0x1c7   :  { %3421 = vmatpush.bf16.msrb.mxu1 %v6226_v40  ;;  %v7562_v40 = vld [vmem:[#allocation7 + $0x4c] sm:$0xf0]  ;;  %v7853_v57 = vld [vmem:[%s8245_s1] sm:$0xff] }
 0x1c8   :  { %v146_v58 = vmul.f32 %v7853_v57, %v8098_v0  ;;  %v7632_v4 = vld [vmem:[#allocation7 + $0x284] sm:$0xf] }
 0x1ca   :  { %3460 = vmatpush.bf16.msra.mxu0 %v6610_v44  ;;  %3448 = vmatpush.bf16.msrb.mxu3 %v6466_v8  ;;  %v6418_v44 = vor.u32 %v7630_v37, %v6417_v36  ;;  %v6113_v8 = vld [vmem:[#allocation7] sm:$0xf]  ;;  %v147_v13 = vsel %vm145_vm2, %v146_v58, %v8098_v0  ;;  %v6355_v0 = vld [vmem:[#allocation7 + $0x1f0] sm:$0xf0]  ;;  %v7568_v58 = vld [vmem:[#allocation7 + $0x84] sm:$0xf] }
 0x1cb   :  { %3422 = vmatpush.bf16.msrb.mxu1 %v6210_v49  ;;  %v7626_v49 = vld [vmem:[#allocation7 + $0x24c] sm:$0xf0]  ;;  %v6358_v37 = vor.u32 %v7612_v24, %v6355_v0  ;;  %v7556_v0 = vld [vmem:[#allocation7 + $0x24] sm:$0xf] }
 0x1cc   :  { %v2333_v31 = vpop.f32.mrf.mxu0 }
 0x1cd   :  { %v2334_v20 = vadd.f32 %v2333_v31, %v8106_v21  ;;  %v6162_v21 = vor.u32 %v7566_v28, %v6161_v27  ;;  %v7598_v31 = vld [vmem:[#allocation7 + $0x16c] sm:$0xf0]  ;;  %v7644_v27 = vld [vmem:[#allocation7 + $0x2e4] sm:$0xf]  ;;  %v6483_v28 = vld [vmem:[#allocation7 + $0x2f0] sm:$0xf0] }
 0x1ce   :  { %3461 = vmatpush.bf16.msra.mxu0 %v6594_v55  ;;  %3449 = vmatpush.bf16.msrb.mxu3 %v6450_v18  ;;  %v6290_v43 = vor.u32 %v7598_v31, %v6289_v34  ;;  %v6513_v55 = vld [vmem:[#allocation7 + $0x320] sm:$0xf]  ;;  %v6611_v18 = vld [vmem:[#allocation7 + $0x3f0] sm:$0xf0]  ;;  %v7672_v34 = vld [vmem:[#allocation7 + $0x3c4] sm:$0xf] }
 0x1cf   :  { %3423 = vmatpush.bf16.msrb.mxu1 %v6194_v6  ;;  %v2347_v35 = vadd.f32 %v8100_v53, %v2334_v20  ;;  %v6146_v53 = vor.u32 %v7562_v40, %v6145_v39  ;;  %v6514_v6 = vor.u32 %v7654_v56, %v6513_v55  ;;  %v7586_v20 = vld [vmem:[#allocation7 + $0x10c] sm:$0xf0]  ;;  %v6614_v30 = vor.u32 %v7676_v15, %v6611_v18  ;;  %v7608_v39 = vld [vmem:[#allocation7 + $0x1c4] sm:$0xf]  ;;  %v6339_v40 = vld [vmem:[#allocation7 + $0x1d0] sm:$0xf0] }
 0x1d0   :  { %3438 = vmatpush.bf16.msrb.mxu2 %v6290_v43  ;;  %v6451_v55 = vld [vmem:[#allocation7 + $0x2b0] sm:$0xf0] }
 0x1d1   :  { %v2360_v46 = vadd.f32 %v8102_v63, %v2347_v35  ;;  %v6274_v63 = vor.u32 %v7594_v47, %v6273_v45  ;;  %v6595_v35 = vld [vmem:[#allocation7 + $0x3d0] sm:$0xf0]  ;;  %v7572_v45 = vld [vmem:[#allocation7 + $0xa4] sm:$0xf] }
 0x1d2   :  { %3462 = vmatpush.bf16.msra.mxu0 %v6578_v11  ;;  %3450 = vmatpush.bf16.msrb.mxu3 %v6434_v33  ;;  %v6497_v11 = vld [vmem:[#allocation7 + $0x300] sm:$0xf]  ;;  %v6211_v33 = vld [vmem:[#allocation7 + $0xd0] sm:$0xf0] }
 0x1d3   :  { %3424 = vmatpush.bf16.msrb.mxu1 %v6178_v22  ;;  %v2373_v61 = vadd.f32 %v8104_v7, %v2360_v46  ;;  %v7580_v7 = vld [vmem:[#allocation7 + $0xe4] sm:$0xf]  ;;  %v6369_v22 = vld [vmem:[#allocation7 + $0x200] sm:$0xf]  ;;  %v6498_v1 = vor.u32 %v7650_v12, %v6497_v11  ;;  %v6214_v43 = vor.u32 %v7576_v32, %v6211_v33  ;;  %v6195_v46 = vld [vmem:[#allocation7 + $0xb0] sm:$0xf0] }
 0x1d4   :  { %v2335_v48 = vpop.f32.mrf.mxu0  ;;  %3439 = vmatpush.bf16.msrb.mxu2 %v6274_v63  ;;  %v6230_v29 = vor.u32 %v7580_v7, %v6227_v14  ;;  %v6370_v31 = vor.u32 %v7618_v23, %v6369_v22  ;;  %v6579_v47 = vld [vmem:[#allocation7 + $0x3b0] sm:$0xf0]  ;;  %v6198_v56 = vor.u32 %v7572_v45, %v6195_v46  ;;  %v7660_v11 = vld [vmem:[#allocation7 + $0x364] sm:$0xf] }
 0x1d5   :  { %v6401_v48 = vld [vmem:[#allocation7 + $0x240] sm:$0xf]  ;;  %v6179_v63 = vld [vmem:[#allocation7 + $0x90] sm:$0xf0]  ;;  %v7596_v14 = vld [vmem:[#allocation7 + $0x164] sm:$0xf] }
 0x1d6   :  { %3463 = vmatpush.bf16.msra.mxu0 %v6562_v26  ;;  %3451 = vmatpush.bf16.msrb.mxu3 %v6418_v44  ;;  %v6402_v59 = vor.u32 %v7626_v49, %v6401_v48  ;;  %v6114_v26 = vor.u32 %v7554_v10, %v6113_v8  ;;  %v6598_v44 = vor.u32 %v7672_v34, %v6595_v35  ;;  %v6163_v10 = vld [vmem:[#allocation7 + $0x70] sm:$0xf0]  ;;  %v7656_v22 = vld [vmem:[#allocation7 + $0x344] sm:$0xf] }
 0x1d7   :  { %3425 = vmatpush.bf16.msrb.mxu1 %v6162_v21  ;;  %v6242_v21 = vor.u32 %v7586_v20, %v6241_v19  ;;  %v6342_v48 = vor.u32 %v7608_v39, %v6339_v40  ;;  %v6470_v49 = vor.u32 %v7640_v41, %v6467_v42  ;;  %v6547_v12 = vld [vmem:[#allocation7 + $0x370] sm:$0xf0]  ;;  %v7560_v19 = vld [vmem:[#allocation7 + $0x44] sm:$0xf] }
 0x1d8   :  { %3440 = vmatpush.bf16.msrb.mxu2 %v6258_v51  ;;  %v6291_v15 = vld [vmem:[#allocation7 + $0x170] sm:$0xf0]  ;;  %v7628_v51 = vld [vmem:[#allocation7 + $0x264] sm:$0xf]  ;;  %v6550_v18 = vor.u32 %v7660_v11, %v6547_v12  ;;  %v6361_v11 = vld [vmem:[#allocation7 + $0x1e8] sm:$0xf] }
 0x1d9   :  { %v6147_v20 = vld [vmem:[#allocation7 + $0x50] sm:$0xf0]  ;;  %v6294_v24 = vor.u32 %v7596_v14, %v6291_v15  ;;  %v7592_v33 = vld [vmem:[#allocation7 + $0x144] sm:$0xf]  ;;  %v7615_v12 = vld [vmem:[#allocation7 + $0x1f4] sm:$0xf0] }
 0x1da   :  { %3464 = vmatpush.bf16.msra.mxu0 %v6546_v38  ;;  %3452 = vmatpush.bf16.msrb.mxu3 %v6402_v59  ;;  %v6486_v38 = vor.u32 %v7644_v27, %v6483_v28  ;;  %v7664_v59 = vld [vmem:[#allocation7 + $0x384] sm:$0xf]  ;;  %v6531_v23 = vld [vmem:[#allocation7 + $0x350] sm:$0xf0]  ;;  %v6489_v14 = vld [vmem:[#allocation7 + $0x2e8] sm:$0xf] }
 0x1db   :  { %3426 = vmatpush.bf16.msrb.mxu1 %v6146_v53  ;;  %v7668_v53 = vld [vmem:[#allocation7 + $0x3a4] sm:$0xf]  ;;  %v6566_v8 = vor.u32 %v7664_v59, %v6563_v60  ;;  %v6131_v27 = vld [vmem:[#allocation7 + $0x30] sm:$0xf0]  ;;  %v7679_v59 = vld [vmem:[#allocation7 + $0x3f4] sm:$0xf0] }
 0x1dc   :  { %3441 = vmatpush.bf16.msrb.mxu2 %v6242_v21  ;;  %v6582_v57 = vor.u32 %v7668_v53, %v6579_v47  ;;  %v7652_v28 = vld [vmem:[#allocation7 + $0x324] sm:$0xf]  ;;  %v6275_v34 = vld [vmem:[#allocation7 + $0x150] sm:$0xf0]  ;;  %v7647_v15 = vld [vmem:[#allocation7 + $0x2f4] sm:$0xf0] }
 0x1dd   :  { %v7624_v35 = vld [vmem:[#allocation7 + $0x244] sm:$0xf]  ;;  %v6278_v21 = vor.u32 %v7592_v33, %v6275_v34  ;;  %v6499_v41 = vld [vmem:[#allocation7 + $0x310] sm:$0xf0]  ;;  %v7643_v33 = vld [vmem:[#allocation7 + $0x2d4] sm:$0xf0] }
 0x1de   :  { %3465 = vmatpush.bf16.msra.mxu0 %v6530_v50  ;;  %3453 = vmatpush.bf16.msrb.mxu3 %v6386_v16  ;;  %v7604_v50 = vld [vmem:[#allocation7 + $0x1a4] sm:$0xf]  ;;  %v6419_v16 = vld [vmem:[#allocation7 + $0x270] sm:$0xf0] }
 0x1df   :  { %3427 = vmatpush.bf16.msrb.mxu1 %v6130_v62  ;;  %v6454_v62 = vor.u32 %v7636_v54, %v6451_v55  ;;  %v7648_v39 = vld [vmem:[#allocation7 + $0x304] sm:$0xf]  ;;  %v6387_v53 = vld [vmem:[#allocation7 + $0x230] sm:$0xf0] }
 0x1e0   :  { %v6502_v42 = vor.u32 %v7648_v39, %v6499_v41  ;;  %v7620_v45 = vld [vmem:[#allocation7 + $0x224] sm:$0xf]  ;;  %v6371_v54 = vld [vmem:[#allocation7 + $0x210] sm:$0xf0]  ;;  %v6329_v39 = vld [vmem:[#allocation7 + $0x1a8] sm:$0xf] }
 0x1e1   :  { %v6390_v47 = vor.u32 %v7620_v45, %v6387_v53  ;;  %v6169_v53 = vld [vmem:[#allocation7 + $0x68] sm:$0xf] }
 0x1e2   :  { %3466 = vmatpush.bf16.msra.mxu0 %v6514_v6  ;;  %3454 = vmatpush.bf16.msrb.mxu3 %v6370_v31  ;;  %v6182_v6 = vor.u32 %v7568_v58, %v6179_v63  ;;  %v6403_v31 = vld [vmem:[#allocation7 + $0x250] sm:$0xf0]  ;;  %v6617_v63 = vld [vmem:[#allocation7 + $0x3e8] sm:$0xf] }
 0x1e3   :  { %3428 = vmatpush.bf16.msrb.mxu1 %v6114_v26  ;;  %v6150_v26 = vor.u32 %v7560_v19, %v6147_v20  ;;  %v7575_v19 = vld [vmem:[#allocation7 + $0xb4] sm:$0xf0] }
 0x1e6   :  { %3467 = vmatpush.bf16.msra.mxu0 %v6498_v1  ;;  %v6534_v1 = vor.u32 %v7656_v22, %v6531_v23  ;;  %v6362_v23 = vor.u32 %v7615_v12, %v6361_v11  ;;  %v6425_v12 = vld [vmem:[#allocation7 + $0x268] sm:$0xf] }
 0x1ec   :  { %v2385_v5 = vpop.f32.mrf.mxu0 }
 0x1ed   :  { %v2386_v9 = vadd.f32 %v2385_v5, %v2373_v61  ;;  %v6326_v61 = vor.u32 %v7604_v50, %v6323_v52  ;;  %v6435_v5 = vld [vmem:[#allocation7 + $0x290] sm:$0xf0]  ;;  %v7616_v52 = vld [vmem:[#allocation7 + $0x204] sm:$0xf] }
 0x1ee   :  { %v6438_v7 = vor.u32 %v7632_v4, %v6435_v5  ;;  %v6374_v55 = vor.u32 %v7616_v52, %v6371_v54  ;;  %v6618_v4 = vor.u32 %v7679_v59, %v6617_v63  ;;  %v6217_v5 = vld [vmem:[#allocation7 + $0xc8] sm:$0xf] }
 0x1ef   :  { %v2389_v17 = vadd.f32 %v2386_v9, %v147_v13  ;;  %v7564_v9 = vld [vmem:[#allocation7 + $0x64] sm:$0xf]  ;;  %v6310_v13 = vor.u32 %v7600_v2, %v6307_v3  ;;  %v6313_v54 = vld [vmem:[#allocation7 + $0x188] sm:$0xf] }
 0x1f0   :  { %v6153_v59 = vld [vmem:[#allocation7 + $0x48] sm:$0xf] }
 0x1f1   :  { %v2390_v25 = vpack.c.bf16 %v2389_v17, %v2389_v17  ;;  %v6166_v17 = vor.u32 %v7564_v9, %v6163_v10  ;;  %v6601_v9 = vld [vmem:[#allocation7 + $0x3c8] sm:$0xf]  ;;  %v7675_v10 = vld [vmem:[#allocation7 + $0x3d4] sm:$0xf0] }
 0x1f3   :  { %2591 = vmatmul.bf16.vlgmr.msra.gmra.mxu1 %v2390_v25  ;;  %2604 = vmatmul.bf16.vlgmr.msra.gmra.mxu2 %v2390_v25 }
 0x1f4   :  { %2617 = vmatmul.bf16.vlgmr.msra.gmra.mxu3 %v2390_v25  ;;  %2630 = vmatmul.bf16.vlgmr.msrb.gmra.mxu0 %v2390_v25  ;;  %v2387_v36 = vpop.f32.mrf.mxu0  ;;  %v6422_v25 = vor.u32 %v7628_v51, %v6419_v16 }
 0x1f5   :  { %3473 = vmatpush.bf16.msra.mxu1 %v6230_v29  ;;  %3512 = vmatpush.bf16.msrb.mxu0 %v6614_v30  ;;  %v6134_v29 = vor.u32 %v7556_v0, %v6131_v27  ;;  %v6515_v30 = vld [vmem:[#allocation7 + $0x330] sm:$0xf0]  ;;  %v6406_v36 = vor.u32 %v7624_v35, %v6403_v31  ;;  %v6490_v0 = vor.u32 %v7647_v15, %v6489_v14  ;;  %v6345_v27 = vld [vmem:[#allocation7 + $0x1c8] sm:$0xf]  ;;  %v7559_v15 = vld [vmem:[#allocation7 + $0x34] sm:$0xf0] }
 0x1f6   :  { %3486 = vmatpush.bf16.msra.mxu2 %v6358_v37  ;;  %3499 = vmatpush.bf16.msra.mxu3 %v6486_v38  ;;  %v6518_v32 = vor.u32 %v7652_v28, %v6515_v30  ;;  %v7552_v37 = vld [vmem:[#allocation7 + $0x4] sm:$0xf]  ;;  %v6115_v38 = vld [vmem:[#allocation7 + $0x10] sm:$0xf0]  ;;  %v7611_v28 = vld [vmem:[#allocation7 + $0x1d4] sm:$0xf0] }
 0x1f7   :  { %v6118_v40 = vor.u32 %v7552_v37, %v6115_v38  ;;  %v6185_v35 = vld [vmem:[#allocation7 + $0x88] sm:$0xf]  ;;  %v6346_v31 = vor.u32 %v7611_v28, %v6345_v27  ;;  %v7667_v37 = vld [vmem:[#allocation7 + $0x394] sm:$0xf0] }
 0x1f8   :  { %v6137_v14 = vld [vmem:[#allocation7 + $0x28] sm:$0xf]  ;;  %v7555_v28 = vld [vmem:[#allocation7 + $0x14] sm:$0xf0] }
 0x1f9   :  { %3474 = vmatpush.bf16.msra.mxu1 %v6214_v43  ;;  %3513 = vmatpush.bf16.msrb.mxu0 %v6598_v44  ;;  %v7588_v43 = vld [vmem:[#allocation7 + $0x124] sm:$0xf]  ;;  %v6259_v44 = vld [vmem:[#allocation7 + $0x130] sm:$0xf0] }
 0x1fa   :  { %3487 = vmatpush.bf16.msra.mxu2 %v6342_v48  ;;  %3500 = vmatpush.bf16.msra.mxu3 %v6470_v49  ;;  %v6262_v46 = vor.u32 %v7588_v43, %v6259_v44  ;;  %v7584_v48 = vld [vmem:[#allocation7 + $0x104] sm:$0xf]  ;;  %v6243_v49 = vld [vmem:[#allocation7 + $0x110] sm:$0xf0]  ;;  %v6457_v43 = vld [vmem:[#allocation7 + $0x2a8] sm:$0xf] }
 0x1fb   :  { %v6246_v50 = vor.u32 %v7584_v48, %v6243_v49  ;;  %v7639_v44 = vld [vmem:[#allocation7 + $0x2b4] sm:$0xf0]  ;;  %v6553_v49 = vld [vmem:[#allocation7 + $0x368] sm:$0xf] }
 0x1fc   :  { %v6458_v52 = vor.u32 %v7639_v44, %v6457_v43  ;;  %v7577_v44 = vld [vmem:[#allocation7 + $0xcc] sm:$0xf] }
 0x1fd   :  { %3475 = vmatpush.bf16.msra.mxu1 %v6198_v56  ;;  %3514 = vmatpush.bf16.msrb.mxu0 %v6582_v57  ;;  %v6233_v56 = vld [vmem:[#allocation7 + $0xe8] sm:$0xf]  ;;  %v7583_v57 = vld [vmem:[#allocation7 + $0xf4] sm:$0xf0] }
 0x1fe   :  { %3488 = vmatpush.bf16.msra.mxu2 %v6326_v61  ;;  %3501 = vmatpush.bf16.msra.mxu3 %v6454_v62  ;;  %v6234_v2 = vor.u32 %v7583_v57, %v6233_v56  ;;  %v6441_v57 = vld [vmem:[#allocation7 + $0x288] sm:$0xf] }
 0x201   :  { %3476 = vmatpush.bf16.msra.mxu1 %v6182_v6  ;;  %3515 = vmatpush.bf16.msrb.mxu0 %v6566_v8  ;;  %v7579_v6 = vld [vmem:[#allocation7 + $0xd4] sm:$0xf0] }
 0x202   :  { %3489 = vmatpush.bf16.msra.mxu2 %v6310_v13  ;;  %3502 = vmatpush.bf16.msra.mxu3 %v6438_v7  ;;  %v6218_v7 = vor.u32 %v7579_v6, %v6217_v5  ;;  %v7659_v5 = vld [vmem:[#allocation7 + $0x354] sm:$0xf0] }
 0x205   :  { %3477 = vmatpush.bf16.msra.mxu1 %v6166_v17  ;;  %3516 = vmatpush.bf16.msrb.mxu0 %v6550_v18  ;;  %v6602_v17 = vor.u32 %v7675_v10, %v6601_v9  ;;  %v6201_v18 = vld [vmem:[#allocation7 + $0xa8] sm:$0xf]  ;;  %v7599_v10 = vld [vmem:[#allocation7 + $0x174] sm:$0xf0] }
 0x206   :  { %3490 = vmatpush.bf16.msra.mxu2 %v6294_v24  ;;  %3503 = vmatpush.bf16.msra.mxu3 %v6422_v25  ;;  %v6585_v24 = vld [vmem:[#allocation7 + $0x3a8] sm:$0xf]  ;;  %v7671_v25 = vld [vmem:[#allocation7 + $0x3b4] sm:$0xf0]  ;;  %v6202_v30 = vor.u32 %v7575_v19, %v6201_v18 }
 0x207   :  { %v6586_v34 = vor.u32 %v7671_v25, %v6585_v24  ;;  %v6297_v9 = vld [vmem:[#allocation7 + $0x168] sm:$0xf]  ;;  %v7655_v18 = vld [vmem:[#allocation7 + $0x334] sm:$0xf0]  ;;  %v6138_v24 = vor.u32 %v7559_v15, %v6137_v14  ;;  %v7641_v15 = vld [vmem:[#allocation7 + $0x2cc] sm:$0xf] }
 0x208   :  { %v6409_v25 = vld [vmem:[#allocation7 + $0x248] sm:$0xf] }
 0x209   :  { %3478 = vmatpush.bf16.msra.mxu1 %v6150_v26  ;;  %3517 = vmatpush.bf16.msrb.mxu0 %v6534_v1 }
 0x20a   :  { %3491 = vmatpush.bf16.msra.mxu2 %v6278_v21  ;;  %3504 = vmatpush.bf16.msra.mxu3 %v6406_v36  ;;  %v7571_v21 = vld [vmem:[#allocation7 + $0x94] sm:$0xf0]  ;;  %v6569_v36 = vld [vmem:[#allocation7 + $0x388] sm:$0xf] }
 0x20d   :  { %3479 = vmatpush.bf16.msra.mxu1 %v6134_v29  ;;  %3518 = vmatpush.bf16.msrb.mxu0 %v6518_v32  ;;  %v6473_v32 = vld [vmem:[#allocation7 + $0x2c8] sm:$0xf] }
 0x20e   :  { %3492 = vmatpush.bf16.msra.mxu2 %v6262_v46  ;;  %3505 = vmatpush.bf16.msra.mxu3 %v6390_v47  ;;  %v6474_v38 = vor.u32 %v7643_v33, %v6473_v32  ;;  %v6570_v46 = vor.u32 %v7667_v37, %v6569_v36  ;;  %v7567_v47 = vld [vmem:[#allocation7 + $0x74] sm:$0xf0]  ;;  %v6619_v36 = vld [vmem:[#allocation7 + $0x3f8] sm:$0xf0]  ;;  %v6265_v37 = vld [vmem:[#allocation7 + $0x128] sm:$0xf] }
 0x20f   :  { %v6170_v56 = vor.u32 %v7567_v47, %v6169_v53  ;;  %v7651_v32 = vld [vmem:[#allocation7 + $0x314] sm:$0xf0]  ;;  %v6219_v53 = vld [vmem:[#allocation7 + $0xd8] sm:$0xf0]  ;;  %v7673_v47 = vld [vmem:[#allocation7 + $0x3cc] sm:$0xf] }
 0x211   :  { %3480 = vmatpush.bf16.msra.mxu1 %v6118_v40  ;;  %3519 = vmatpush.bf16.msrb.mxu0 %v6502_v42  ;;  %v7607_v40 = vld [vmem:[#allocation7 + $0x1b4] sm:$0xf0]  ;;  %v6186_v42 = vor.u32 %v7571_v21, %v6185_v35  ;;  %v6235_v35 = vld [vmem:[#allocation7 + $0xf8] sm:$0xf0]  ;;  %v7677_v21 = vld [vmem:[#allocation7 + $0x3ec] sm:$0xf] }
 0x212   :  { %3493 = vmatpush.bf16.msra.mxu2 %v6246_v50  ;;  %3506 = vmatpush.bf16.msra.mxu3 %v6374_v55  ;;  %v6330_v48 = vor.u32 %v7607_v40, %v6329_v39  ;;  %v7663_v50 = vld [vmem:[#allocation7 + $0x374] sm:$0xf0]  ;;  %v6393_v40 = vld [vmem:[#allocation7 + $0x228] sm:$0xf] }
 0x213   :  { %v7603_v55 = vld [vmem:[#allocation7 + $0x194] sm:$0xf0]  ;;  %v6554_v63 = vor.u32 %v7663_v50, %v6553_v49  ;;  %v6249_v50 = vld [vmem:[#allocation7 + $0x108] sm:$0xf] }
 0x270   :  { %v2592_v58 = vpop.f32.mrf.mxu1 }
 0x271   :  { %v8120_v60 = vmax.f32 %v2592_v58, 0.0  ;;  %v2631_v61 = vpop.f32.mrf.mxu0  ;;  %v7635_v58 = vld [vmem:[#allocation7 + $0x294] sm:$0xf0] }
 0x272   :  { %v8122_v62 = vmax.f32 %v2631_v61, 0.0  ;;  %v7563_v61 = vld [vmem:[#allocation7 + $0x54] sm:$0xf0]  ;;  %v6442_v6 = vor.u32 %v7635_v58, %v6441_v57  ;;  %v6363_v57 = vld [vmem:[#allocation7 + $0x1f8] sm:$0xf0]  ;;  %v6222_v58 = vor.u32 %v7577_v44, %v6219_v53 }
 0x273   :  { %v8126_v3 = vpack.c.bf16 %v8120_v60, %v8120_v60  ;;  %v6154_v11 = vor.u32 %v7563_v61, %v6153_v59  ;;  %v6491_v59 = vld [vmem:[#allocation7 + $0x2f8] sm:$0xf0] }
 0x274   :  { %v8130_v8 = vpack.c.bf16 %v8122_v62, %v8122_v62  ;;  %v6155_v44 = vld [vmem:[#allocation7 + $0x58] sm:$0xf0] }
 0x275   :  { %3429 = vmatmul.bf16.vlgmr.msrb.gmra.mxu1 %v8126_v3  ;;  %v6539_v53 = vld [vmem:[#allocation7 + $0x358] sm:$0xf0] }
 0x276   :  { %3468 = vmatmul.bf16.vlgmr.msra.gmra.mxu0 %v8130_v8  ;;  %3525 = vmatpush.bf16.msrb.mxu1 %v6234_v2  ;;  %v2605_v13 = vpop.f32.mrf.mxu2  ;;  %v6314_v2 = vor.u32 %v7603_v55, %v6313_v54  ;;  %v6377_v54 = vld [vmem:[#allocation7 + $0x208] sm:$0xf]  ;;  %v7619_v55 = vld [vmem:[#allocation7 + $0x214] sm:$0xf0] }
 0x277   :  { %3564 = vmatpush.bf16.msra.mxu0 %v6618_v4  ;;  %v8134_v51 = vmax.f32 %v2605_v13, 0.0  ;;  %v2618_v16 = vpop.f32.mrf.mxu3  ;;  %v6537_v4 = vld [vmem:[#allocation7 + $0x348] sm:$0xf]  ;;  %v7631_v13 = vld [vmem:[#allocation7 + $0x274] sm:$0xf0] }
 0x278   :  { %v8136_v20 = vmax.f32 %v2618_v16, 0.0  ;;  %v2594_v22 = vpop.f32.mrf.mxu1  ;;  %v6298_v16 = vor.u32 %v7599_v10, %v6297_v9  ;;  %v6426_v19 = vor.u32 %v7631_v13, %v6425_v12  ;;  %v7669_v10 = vld [vmem:[#allocation7 + $0x3ac] sm:$0xf] }
 0x279   :  { %v8140_v26 = vpack.c.bf16 %v8134_v51, %v8134_v51  ;;  %v2633_v1 = vpop.f32.mrf.mxu0  ;;  %v6281_v22 = vld [vmem:[#allocation7 + $0x148] sm:$0xf]  ;;  %v7609_v13 = vld [vmem:[#allocation7 + $0x1cc] sm:$0xf] }
 0x27a   :  { %v8144_v29 = vpack.c.bf16 %v8136_v20, %v8136_v20  ;;  %3526 = vmatpush.bf16.msrb.mxu1 %v6218_v7  ;;  %v6538_v7 = vor.u32 %v7659_v5, %v6537_v4  ;;  %v7627_v1 = vld [vmem:[#allocation7 + $0x254] sm:$0xf0]  ;;  %v7573_v4 = vld [vmem:[#allocation7 + $0xac] sm:$0xf]  ;;  %v6203_v5 = vld [vmem:[#allocation7 + $0xb8] sm:$0xf0] }
 0x27b   :  { %3565 = vmatpush.bf16.msra.mxu0 %v6602_v17  ;;  %3442 = vmatmul.bf16.vlgmr.msrb.gmra.mxu2 %v8140_v26  ;;  %v6521_v17 = vld [vmem:[#allocation7 + $0x328] sm:$0xf]  ;;  %v6206_v14 = vor.u32 %v7573_v4, %v6203_v5  ;;  %v6283_v4 = vld [vmem:[#allocation7 + $0x158] sm:$0xf0] }
 0x27c   :  { %3455 = vmatmul.bf16.vlgmr.msrb.gmra.mxu3 %v8144_v29  ;;  %3538 = vmatpush.bf16.msrb.mxu2 %v6362_v23  ;;  %v7595_v23 = vld [vmem:[#allocation7 + $0x154] sm:$0xf0]  ;;  %v6522_v27 = vor.u32 %v7655_v18, %v6521_v17  ;;  %v7569_v18 = vld [vmem:[#allocation7 + $0x8c] sm:$0xf] }
 0x27d   :  { %3551 = vmatpush.bf16.msrb.mxu3 %v6490_v0  ;;  %v6121_v0 = vld [vmem:[#allocation7 + $0x8] sm:$0xf]  ;;  %v6282_v33 = vor.u32 %v7595_v23, %v6281_v22  ;;  %v7665_v23 = vld [vmem:[#allocation7 + $0x38c] sm:$0xf] }
 0x27e   :  { %3527 = vmatpush.bf16.msrb.mxu1 %v6202_v30  ;;  %v2607_v41 = vpop.f32.mrf.mxu2  ;;  %v6505_v30 = vld [vmem:[#allocation7 + $0x308] sm:$0xf]  ;;  %v6122_v39 = vor.u32 %v7555_v28, %v6121_v0  ;;  %v6331_v0 = vld [vmem:[#allocation7 + $0x1b8] sm:$0xf0]  ;;  %v7637_v28 = vld [vmem:[#allocation7 + $0x2ac] sm:$0xf] }
 0x27f   :  { %3566 = vmatpush.bf16.msra.mxu0 %v6586_v34  ;;  %v2620_v45 = vpop.f32.mrf.mxu3  ;;  %v7581_v34 = vld [vmem:[#allocation7 + $0xec] sm:$0xf]  ;;  %v7623_v41 = vld [vmem:[#allocation7 + $0x234] sm:$0xf0] }
 0x280   :  { %3539 = vmatpush.bf16.msrb.mxu2 %v6346_v31  ;;  %v6410_v31 = vor.u32 %v7627_v1, %v6409_v25  ;;  %v6238_v43 = vor.u32 %v7581_v34, %v6235_v35  ;;  %v6622_v45 = vor.u32 %v7677_v21, %v6619_v36  ;;  %v6394_v49 = vor.u32 %v7623_v41, %v6393_v40  ;;  %v7605_v1 = vld [vmem:[#allocation7 + $0x1ac] sm:$0xf]  ;;  %v6171_v34 = vld [vmem:[#allocation7 + $0x78] sm:$0xf0] }
 0x281   :  { %3552 = vmatpush.bf16.msrb.mxu3 %v6474_v38  ;;  %v7591_v38 = vld [vmem:[#allocation7 + $0x134] sm:$0xf0]  ;;  %v6334_v35 = vor.u32 %v7605_v1, %v6331_v0  ;;  %v7661_v21 = vld [vmem:[#allocation7 + $0x36c] sm:$0xf]  ;;  %v6443_v41 = vld [vmem:[#allocation7 + $0x298] sm:$0xf0] }
 0x282   :  { %3528 = vmatpush.bf16.msrb.mxu1 %v6186_v42  ;;  %v6506_v42 = vor.u32 %v7651_v32, %v6505_v30  ;;  %v6459_v30 = vld [vmem:[#allocation7 + $0x2b8] sm:$0xf0]  ;;  %v7633_v40 = vld [vmem:[#allocation7 + $0x28c] sm:$0xf] }
 0x283   :  { %3567 = vmatpush.bf16.msra.mxu0 %v6570_v46  ;;  %v6266_v46 = vor.u32 %v7591_v38, %v6265_v37  ;;  %v6462_v36 = vor.u32 %v7637_v28, %v6459_v30  ;;  %v7601_v37 = vld [vmem:[#allocation7 + $0x18c] sm:$0xf]  ;;  %v6315_v38 = vld [vmem:[#allocation7 + $0x198] sm:$0xf0]  ;;  %v7706_v28 = vld [vmem:[#allocation7 + $0x4cc] sm:$0xf0] }
 0x284   :  { %3540 = vmatpush.bf16.msrb.mxu2 %v6330_v48  ;;  %v6603_v48 = vld [vmem:[#allocation7 + $0x3d8] sm:$0xf0] }
 0x285   :  { %3553 = vmatpush.bf16.msrb.mxu3 %v6458_v52  ;;  %3481 = vmatmul.bf16.vlgmr.msra.gmra.mxu1 %v8126_v3  ;;  %v7587_v52 = vld [vmem:[#allocation7 + $0x114] sm:$0xf0]  ;;  %v6606_v61 = vor.u32 %v7673_v47, %v6603_v48  ;;  %v6446_v47 = vor.u32 %v7633_v40, %v6443_v41  ;;  %v7597_v48 = vld [vmem:[#allocation7 + $0x16c] sm:$0xf]  ;;  %v6706_v40 = vld [vmem:[#allocation7 + $0x4a0] sm:$0xf] }
 0x286   :  { %3520 = vmatmul.bf16.vlgmr.msrb.gmra.mxu0 %v8130_v8  ;;  %3529 = vmatpush.bf16.msrb.mxu1 %v6170_v56  ;;  %v7613_v56 = vld [vmem:[#allocation7 + $0x1ec] sm:$0xf]  ;;  %v7702_v41 = vld [vmem:[#allocation7 + $0x4ac] sm:$0xf0] }
 0x287   :  { %3568 = vmatpush.bf16.msra.mxu0 %v6554_v63  ;;  %v7645_v63 = vld [vmem:[#allocation7 + $0x2ec] sm:$0xf]  ;;  %v6366_v9 = vor.u32 %v7613_v56, %v6363_v57  ;;  %v6139_v57 = vld [vmem:[#allocation7 + $0x38] sm:$0xf0] }
 0x288   :  { %3541 = vmatpush.bf16.msrb.mxu2 %v6314_v2  ;;  %v6250_v2 = vor.u32 %v7587_v52, %v6249_v50  ;;  %v6494_v12 = vor.u32 %v7645_v63, %v6491_v59  ;;  %v7629_v52 = vld [vmem:[#allocation7 + $0x26c] sm:$0xf]  ;;  %v6523_v59 = vld [vmem:[#allocation7 + $0x338] sm:$0xf0] }
 0x289   :  { %3554 = vmatpush.bf16.msrb.mxu3 %v6442_v6  ;;  %v6378_v6 = vor.u32 %v7619_v55, %v6377_v54  ;;  %v6427_v54 = vld [vmem:[#allocation7 + $0x278] sm:$0xf0]  ;;  %v7557_v56 = vld [vmem:[#allocation7 + $0x2c] sm:$0xf] }
 0x28a   :  { %3530 = vmatpush.bf16.msrb.mxu1 %v6154_v11  ;;  %v6587_v11 = vld [vmem:[#allocation7 + $0x3b8] sm:$0xf0]  ;;  %v7653_v63 = vld [vmem:[#allocation7 + $0x32c] sm:$0xf]  ;;  %v6142_v5 = vor.u32 %v7557_v56, %v6139_v57  ;;  %v6818_v56 = vld [vmem:[#allocation7 + $0x580] sm:$0xf] }
 0x28b   :  { %3569 = vmatpush.bf16.msra.mxu0 %v6538_v7  ;;  %3494 = vmatmul.bf16.vlgmr.msra.gmra.mxu2 %v8140_v26  ;;  %v6347_v7 = vld [vmem:[#allocation7 + $0x1d8] sm:$0xf0]  ;;  %v6590_v17 = vor.u32 %v7669_v10, %v6587_v11  ;;  %v6526_v10 = vor.u32 %v7653_v63, %v6523_v59  ;;  %v7553_v11 = vld [vmem:[#allocation7 + $0xc] sm:$0xf]  ;;  %v7730_v57 = vld [vmem:[#allocation7 + $0x58c] sm:$0xf0] }
 0x28c   :  { %3507 = vmatmul.bf16.vlgmr.msra.gmra.mxu3 %v8144_v29  ;;  %3542 = vmatpush.bf16.msrb.mxu2 %v6298_v16  ;;  %v6475_v16 = vld [vmem:[#allocation7 + $0x2d8] sm:$0xf0]  ;;  %v6350_v22 = vor.u32 %v7609_v13, %v6347_v7  ;;  %v7649_v13 = vld [vmem:[#allocation7 + $0x30c] sm:$0xf]  ;;  %v6658_v63 = vld [vmem:[#allocation7 + $0x440] sm:$0xf] }
 0x28d   :  { %3555 = vmatpush.bf16.msrb.mxu3 %v6426_v19  ;;  %v6187_v19 = vld [vmem:[#allocation7 + $0x98] sm:$0xf0]  ;;  %v6478_v25 = vor.u32 %v7641_v15, %v6475_v16  ;;  %v6738_v15 = vld [vmem:[#allocation7 + $0x4e0] sm:$0xf]  ;;  %v7710_v16 = vld [vmem:[#allocation7 + $0x4ec] sm:$0xf0] }
 0x28e   :  { %3531 = vmatpush.bf16.msrb.mxu1 %v6138_v24  ;;  %v6571_v24 = vld [vmem:[#allocation7 + $0x398] sm:$0xf0]  ;;  %v6739_v1 = vor.u32 %v7710_v16, %v6738_v15  ;;  %v7690_v59 = vld [vmem:[#allocation7 + $0x44c] sm:$0xf0]  ;;  %v7704_v15 = vld [vmem:[#allocation7 + $0x4c4] sm:$0xf] }
 0x28f   :  { %3570 = vmatpush.bf16.msra.mxu0 %v6522_v27  ;;  %v6190_v27 = vor.u32 %v7569_v18, %v6187_v19  ;;  %v6574_v32 = vor.u32 %v7665_v23, %v6571_v24  ;;  %v7589_v18 = vld [vmem:[#allocation7 + $0x12c] sm:$0xf]  ;;  %v6267_v19 = vld [vmem:[#allocation7 + $0x138] sm:$0xf0]  ;;  %v6724_v16 = vld [vmem:[#allocation7 + $0x4d0] sm:$0xf0] }
 0x290   :  { %3543 = vmatpush.bf16.msrb.mxu2 %v6282_v33  ;;  %v7565_v33 = vld [vmem:[#allocation7 + $0x6c] sm:$0xf]  ;;  %v6395_v24 = vld [vmem:[#allocation7 + $0x238] sm:$0xf0]  ;;  %v6270_v0 = vor.u32 %v7589_v18, %v6267_v19  ;;  %v6786_v18 = vld [vmem:[#allocation7 + $0x540] sm:$0xf] }
 0x291   :  { %3556 = vmatpush.bf16.msrb.mxu3 %v6410_v31  ;;  %v6555_v31 = vld [vmem:[#allocation7 + $0x378] sm:$0xf0]  ;;  %v7621_v23 = vld [vmem:[#allocation7 + $0x22c] sm:$0xf]  ;;  %v7722_v19 = vld [vmem:[#allocation7 + $0x54c] sm:$0xf0] }
 0x292   :  { %3532 = vmatpush.bf16.msrb.mxu1 %v6122_v39  ;;  %v6174_v39 = vor.u32 %v7565_v33, %v6171_v34  ;;  %v6398_v30 = vor.u32 %v7621_v23, %v6395_v24  ;;  %v6251_v33 = vld [vmem:[#allocation7 + $0x118] sm:$0xf0]  ;;  %v7617_v34 = vld [vmem:[#allocation7 + $0x20c] sm:$0xf]  ;;  %v6787_v23 = vor.u32 %v7722_v19, %v6786_v18  ;;  %v7770_v24 = vld [vmem:[#allocation7 + $0x6cc] sm:$0xf0] }
 0x293   :  { %3571 = vmatpush.bf16.msra.mxu0 %v6506_v42  ;;  %v6558_v42 = vor.u32 %v7661_v21, %v6555_v31  ;;  %v6866_v21 = vld [vmem:[#allocation7 + $0x5e0] sm:$0xf]  ;;  %v7742_v31 = vld [vmem:[#allocation7 + $0x5ec] sm:$0xf0] }
 0x294   :  { %3544 = vmatpush.bf16.msrb.mxu2 %v6266_v46  ;;  %v7657_v46 = vld [vmem:[#allocation7 + $0x34c] sm:$0xf]  ;;  %v7806_v19 = vld [vmem:[#allocation7 + $0x7ec] sm:$0xf0] }
 0x295   :  { %3557 = vmatpush.bf16.msrb.mxu3 %v6394_v49  ;;  %3533 = vmatmul.bf16.vlgmr.msrb.gmra.mxu1 %v8126_v3  ;;  %v6299_v49 = vld [vmem:[#allocation7 + $0x178] sm:$0xf0]  ;;  %v6542_v55 = vor.u32 %v7657_v46, %v6539_v53  ;;  %v6707_v53 = vor.u32 %v7702_v41, %v6706_v40  ;;  %v7762_v41 = vld [vmem:[#allocation7 + $0x68c] sm:$0xf0] }
 0x296   :  { %3577 = vmatpush.bf16.msra.mxu1 %v6238_v43  ;;  %3572 = vmatmul.bf16.vlgmr.msra.gmra.mxu0 %v8130_v8  ;;  %v7561_v43 = vld [vmem:[#allocation7 + $0x4c] sm:$0xf] }
 0x297   :  { %3616 = vmatpush.bf16.msrb.mxu0 %v6622_v45  ;;  %v6318_v45 = vor.u32 %v7601_v37, %v6315_v38  ;;  %v6158_v50 = vor.u32 %v7561_v43, %v6155_v44  ;;  %v6994_v37 = vld [vmem:[#allocation7 + $0x6e0] sm:$0xf]  ;;  %v7774_v38 = vld [vmem:[#allocation7 + $0x6ec] sm:$0xf0]  ;;  %v6867_v43 = vor.u32 %v7742_v31, %v6866_v21  ;;  %v7696_v21 = vld [vmem:[#allocation7 + $0x484] sm:$0xf] }
 0x298   :  { %3545 = vmatpush.bf16.msrb.mxu2 %v6250_v2  ;;  %v7593_v2 = vld [vmem:[#allocation7 + $0x14c] sm:$0xf]  ;;  %v6850_v44 = vld [vmem:[#allocation7 + $0x5c0] sm:$0xf]  ;;  %v6995_v46 = vor.u32 %v7774_v38, %v6994_v37  ;;  %v6692_v31 = vld [vmem:[#allocation7 + $0x490] sm:$0xf0] }
 0x299   :  { %3558 = vmatpush.bf16.msrb.mxu3 %v6378_v6  ;;  %v7625_v6 = vld [vmem:[#allocation7 + $0x24c] sm:$0xf]  ;;  %v6286_v7 = vor.u32 %v7593_v2, %v6283_v4  ;;  %v6802_v2 = vld [vmem:[#allocation7 + $0x560] sm:$0xf]  ;;  %v7726_v4 = vld [vmem:[#allocation7 + $0x56c] sm:$0xf0] }
 0x29a   :  { %3578 = vmatpush.bf16.msra.mxu1 %v6222_v58  ;;  %v6302_v58 = vor.u32 %v7597_v48, %v6299_v49  ;;  %v7698_v48 = vld [vmem:[#allocation7 + $0x48c] sm:$0xf0]  ;;  %v6754_v37 = vld [vmem:[#allocation7 + $0x500] sm:$0xf] }
 0x29b   :  { %3617 = vmatpush.bf16.msrb.mxu0 %v6606_v61  ;;  %3546 = vmatmul.bf16.vlgmr.msrb.gmra.mxu2 %v8140_v26  ;;  %v6430_v61 = vor.u32 %v7629_v52, %v6427_v54  ;;  %v7734_v52 = vld [vmem:[#allocation7 + $0x5ac] sm:$0xf0] }
 0x29c   :  { %3590 = vmatpush.bf16.msra.mxu2 %v6366_v9  ;;  %3559 = vmatmul.bf16.vlgmr.msrb.gmra.mxu3 %v8144_v29  ;;  %v6411_v9 = vld [vmem:[#allocation7 + $0x258] sm:$0xf0]  ;;  %v7694_v54 = vld [vmem:[#allocation7 + $0x46c] sm:$0xf0] }
 0x29d   :  { %3603 = vmatpush.bf16.msra.mxu3 %v6494_v12  ;;  %v6123_v12 = vld [vmem:[#allocation7 + $0x18] sm:$0xf0]  ;;  %v7714_v38 = vld [vmem:[#allocation7 + $0x50c] sm:$0xf0] }
 0x29e   :  { %3579 = vmatpush.bf16.msra.mxu1 %v6206_v14  ;;  %v6507_v14 = vld [vmem:[#allocation7 + $0x318] sm:$0xf0]  ;;  %v6755_v40 = vor.u32 %v7714_v38, %v6754_v37  ;;  %v8163_v37 = vld [vmem:[%s8252_s8] ss:$8 sm:$0xf] }
 0x29f   :  { %3618 = vmatpush.bf16.msrb.mxu0 %v6590_v17  ;;  %v6414_v17 = vor.u32 %v7625_v6, %v6411_v9  ;;  %v7686_v6 = vld [vmem:[#allocation7 + $0x42c] sm:$0xf0] }
 0x2a0   :  { %3591 = vmatpush.bf16.msra.mxu2 %v6350_v22  ;;  %v6126_v22 = vor.u32 %v7553_v11, %v6123_v12  ;;  %v7682_v11 = vld [vmem:[#allocation7 + $0x40c] sm:$0xf0]  ;;  %v7708_v12 = vld [vmem:[#allocation7 + $0x4e4] sm:$0xf] }
 0x2a1   :  { %3604 = vmatpush.bf16.msra.mxu3 %v6478_v25  ;;  %v6510_v25 = vor.u32 %v7649_v13, %v6507_v14  ;;  %v6740_v13 = vld [vmem:[#allocation7 + $0x4f0] sm:$0xf0] }
 0x2a2   :  { %3580 = vmatpush.bf16.msra.mxu1 %v6190_v27  ;;  %v6722_v27 = vld [vmem:[#allocation7 + $0x4c0] sm:$0xf]  ;;  %v6743_v14 = vor.u32 %v7708_v12, %v6740_v13  ;;  %v7728_v12 = vld [vmem:[#allocation7 + $0x584] sm:$0xf] }
 0x2a3   :  { %3619 = vmatpush.bf16.msrb.mxu0 %v6574_v32  ;;  %v7585_v32 = vld [vmem:[#allocation7 + $0x10c] sm:$0xf] }
 0x2a4   :  { %3592 = vmatpush.bf16.msra.mxu2 %v6334_v35  ;;  %v6379_v35 = vld [vmem:[#allocation7 + $0x218] sm:$0xf0] }
 0x2a5   :  { %3605 = vmatpush.bf16.msra.mxu3 %v6462_v36  ;;  %v6723_v36 = vor.u32 %v7706_v28, %v6722_v27  ;;  %v6770_v28 = vld [vmem:[#allocation7 + $0x520] sm:$0xf] }
 0x2a6   :  { %3581 = vmatpush.bf16.msra.mxu1 %v6174_v39  ;;  %v6254_v39 = vor.u32 %v7585_v32, %v6251_v33  ;;  %v6962_v32 = vld [vmem:[#allocation7 + $0x6a0] sm:$0xf] }
 0x2a7   :  { %3620 = vmatpush.bf16.msrb.mxu0 %v6558_v42  ;;  %v6382_v42 = vor.u32 %v7617_v34, %v6379_v35  ;;  %v7766_v34 = vld [vmem:[#allocation7 + $0x6ac] sm:$0xf0] }
 0x2a8   :  { %3593 = vmatpush.bf16.msra.mxu2 %v6318_v45  ;;  %v7738_v45 = vld [vmem:[#allocation7 + $0x5cc] sm:$0xf0]  ;;  %v6963_v35 = vor.u32 %v7766_v34, %v6962_v32  ;;  %v6788_v34 = vld [vmem:[#allocation7 + $0x550] sm:$0xf0] }
 0x2a9   :  { %3606 = vmatpush.bf16.msra.mxu3 %v6446_v47  ;;  %v6690_v47 = vld [vmem:[#allocation7 + $0x480] sm:$0xf]  ;;  %v6851_v49 = vor.u32 %v7738_v45, %v6850_v44  ;;  %v6676_v44 = vld [vmem:[#allocation7 + $0x470] sm:$0xf0]  ;;  %v7740_v45 = vld [vmem:[#allocation7 + $0x5e4] sm:$0xf] }
 0x2aa   :  { %3582 = vmatpush.bf16.msra.mxu1 %v6158_v50  ;;  %v6834_v50 = vld [vmem:[#allocation7 + $0x5a0] sm:$0xf] }
 0x2ab   :  { %3621 = vmatpush.bf16.msrb.mxu0 %v6542_v55  ;;  %v6835_v55 = vor.u32 %v7734_v52, %v6834_v50  ;;  %v7688_v52 = vld [vmem:[#allocation7 + $0x444] sm:$0xf] }
 0x2ac   :  { %3594 = vmatpush.bf16.msra.mxu2 %v6302_v58 }
 0x2ad   :  { %3607 = vmatpush.bf16.msra.mxu3 %v6430_v61  ;;  %v6819_v61 = vor.u32 %v7730_v57, %v6818_v56  ;;  %v6914_v57 = vld [vmem:[#allocation7 + $0x640] sm:$0xf] }
 0x2ae   :  { %3583 = vmatpush.bf16.msra.mxu1 %v6142_v5  ;;  %v6642_v5 = vld [vmem:[#allocation7 + $0x420] sm:$0xf] }
 0x2af   :  { %3622 = vmatpush.bf16.msrb.mxu0 %v6526_v10  ;;  %v6643_v9 = vor.u32 %v7686_v6, %v6642_v5  ;;  %v6626_v10 = vld [vmem:[#allocation7 + $0x400] sm:$0xf] }
 0x2b0   :  { %3595 = vmatpush.bf16.msra.mxu2 %v6286_v7  ;;  %v6627_v7 = vor.u32 %v7682_v11, %v6626_v10  ;;  %v6898_v6 = vld [vmem:[#allocation7 + $0x620] sm:$0xf]  ;;  %v7680_v10 = vld [vmem:[#allocation7 + $0x404] sm:$0xf]  ;;  %v6628_v11 = vld [vmem:[#allocation7 + $0x410] sm:$0xf0] }
 0x2b1   :  { %3608 = vmatpush.bf16.msra.mxu3 %v6414_v17  ;;  %v6727_v17 = vor.u32 %v7704_v15, %v6724_v16  ;;  %v6631_v13 = vor.u32 %v7680_v10, %v6628_v11  ;;  %v6882_v15 = vld [vmem:[#allocation7 + $0x600] sm:$0xf]  ;;  %v7746_v16 = vld [vmem:[#allocation7 + $0x60c] sm:$0xf0] }
 0x2b2   :  { %3584 = vmatpush.bf16.msra.mxu1 %v6126_v22  ;;  %v6978_v22 = vld [vmem:[#allocation7 + $0x6c0] sm:$0xf]  ;;  %v6883_v18 = vor.u32 %v7746_v16, %v6882_v15  ;;  %v6916_v15 = vld [vmem:[#allocation7 + $0x650] sm:$0xf0] }
 0x2b3   :  { %3623 = vmatpush.bf16.msrb.mxu0 %v6510_v25  ;;  %v7700_v25 = vld [vmem:[#allocation7 + $0x4a4] sm:$0xf]  ;;  %v7042_v11 = vld [vmem:[#allocation7 + $0x740] sm:$0xf] }
 0x2b4   :  { %3596 = vmatpush.bf16.msra.mxu2 %v6270_v0  ;;  %v6979_v0 = vor.u32 %v7770_v24, %v6978_v22  ;;  %v7724_v22 = vld [vmem:[#allocation7 + $0x564] sm:$0xf] }
 0x2b5   :  { %3609 = vmatpush.bf16.msra.mxu3 %v6398_v30  ;;  %3585 = vmatmul.bf16.vlgmr.msra.gmra.mxu1 %v8126_v3  ;;  %v6691_v3 = vor.u32 %v7698_v48, %v6690_v47  ;;  %v7718_v30 = vld [vmem:[#allocation7 + $0x52c] sm:$0xf0]  ;;  %v6930_v48 = vld [vmem:[#allocation7 + $0x660] sm:$0xf] }
 0x2b6   :  { %4421 = vmatpush.bf16.msrb.mxu1 %v6739_v1  ;;  %3624 = vmatmul.bf16.vlgmr.msrb.gmra.mxu0 %v8130_v8  ;;  %v6674_v8 = vld [vmem:[#allocation7 + $0x460] sm:$0xf]  ;;  %v6708_v1 = vld [vmem:[#allocation7 + $0x4b0] sm:$0xf0]  ;;  %v6771_v33 = vor.u32 %v7718_v30, %v6770_v28  ;;  %v7802_v30 = vld [vmem:[#allocation7 + $0x7cc] sm:$0xf0] }
 0x2b7   :  { %v6675_v58 = vor.u32 %v7694_v54, %v6674_v8  ;;  %v6711_v27 = vor.u32 %v7700_v25, %v6708_v1  ;;  %v7736_v8 = vld [vmem:[#allocation7 + $0x5c4] sm:$0xf]  ;;  %v7106_v28 = vld [vmem:[#allocation7 + $0x7c0] sm:$0xf] }
 0x2b8   :  { %3597 = vmatpush.bf16.msra.mxu2 %v6254_v39  ;;  %v6946_v39 = vld [vmem:[#allocation7 + $0x680] sm:$0xf]  ;;  %v7772_v1 = vld [vmem:[#allocation7 + $0x6e4] sm:$0xf]  ;;  %v7107_v32 = vor.u32 %v7802_v30, %v7106_v28  ;;  %v6900_v28 = vld [vmem:[#allocation7 + $0x630] sm:$0xf0] }
 0x2b9   :  { %3610 = vmatpush.bf16.msra.mxu3 %v6382_v42  ;;  %v6947_v42 = vor.u32 %v7762_v41, %v6946_v39  ;;  %v7798_v41 = vld [vmem:[#allocation7 + $0x7ac] sm:$0xf0] }
 0x2ba   :  { %4422 = vmatpush.bf16.msrb.mxu1 %v6723_v36  ;;  %v6695_v36 = vor.u32 %v7696_v21, %v6692_v31 }
 0x2bb   :  { %3598 = vmatmul.bf16.vlgmr.msra.gmra.mxu2 %v8140_v26  ;;  %v6659_v26 = vor.u32 %v7690_v59, %v6658_v63  ;;  %v7684_v59 = vld [vmem:[#allocation7 + $0x424] sm:$0xf] }
 0x2bc   :  { %4434 = vmatpush.bf16.msrb.mxu2 %v6867_v43  ;;  %3611 = vmatmul.bf16.vlgmr.msra.gmra.mxu3 %v8144_v29  ;;  %v6803_v29 = vor.u32 %v7726_v4, %v6802_v2  ;;  %v7692_v43 = vld [vmem:[#allocation7 + $0x464] sm:$0xf] }
 0x2bd   :  { %4447 = vmatpush.bf16.msrb.mxu3 %v6995_v46  ;;  %v6679_v46 = vor.u32 %v7692_v43, %v6676_v44  ;;  %v7732_v2 = vld [vmem:[#allocation7 + $0x5a4] sm:$0xf]  ;;  %v6772_v44 = vld [vmem:[#allocation7 + $0x530] sm:$0xf0] }
 0x2be   :  { %4423 = vmatpush.bf16.msrb.mxu1 %v6707_v53  ;;  %v6868_v53 = vld [vmem:[#allocation7 + $0x5f0] sm:$0xf0]  ;;  %v7716_v43 = vld [vmem:[#allocation7 + $0x524] sm:$0xf] }
 0x2bf   :  { %v6871_v47 = vor.u32 %v7740_v45, %v6868_v53  ;;  %v7764_v45 = vld [vmem:[#allocation7 + $0x6a4] sm:$0xf]  ;;  %v6964_v53 = vld [vmem:[#allocation7 + $0x6b0] sm:$0xf0] }
 0x2c0   :  { %4435 = vmatpush.bf16.msrb.mxu2 %v6851_v49  ;;  %v7758_v49 = vld [vmem:[#allocation7 + $0x66c] sm:$0xf0] }
 0x2c1   :  { %4448 = vmatpush.bf16.msrb.mxu3 %v6979_v0  ;;  %v6931_v50 = vor.u32 %v7758_v49, %v6930_v48  ;;  %v6996_v0 = vld [vmem:[#allocation7 + $0x6f0] sm:$0xf0]  ;;  %v2773_v48 = vperm.slane %v8163_v37, 0  ;;  %v7074_v49 = vld [vmem:[#allocation7 + $0x780] sm:$0xf] }
 0x2c2   :  { %4424 = vmatpush.bf16.msrb.mxu1 %v6691_v3  ;;  %v6660_v3 = vld [vmem:[#allocation7 + $0x450] sm:$0xf0] }
 0x2c3   :  { %v6663_v54 = vor.u32 %v7688_v52, %v6660_v3  ;;  %v7712_v3 = vld [vmem:[#allocation7 + $0x504] sm:$0xf] }
 0x2c4   :  { %4436 = vmatpush.bf16.msrb.mxu2 %v6835_v55  ;;  %v6852_v55 = vld [vmem:[#allocation7 + $0x5d0] sm:$0xf0] }
 0x2c5   :  { %4449 = vmatpush.bf16.msrb.mxu3 %v6963_v35  ;;  %v6855_v56 = vor.u32 %v7736_v8, %v6852_v55  ;;  %v7768_v35 = vld [vmem:[#allocation7 + $0x6c4] sm:$0xf]  ;;  %v6756_v8 = vld [vmem:[#allocation7 + $0x510] sm:$0xf0] }
 0x2c6   :  { %4425 = vmatpush.bf16.msrb.mxu1 %v6675_v58  ;;  %v7754_v58 = vld [vmem:[#allocation7 + $0x64c] sm:$0xf0] }
 0x2c7   :  { %v6915_v63 = vor.u32 %v7754_v58, %v6914_v57  ;;  %v6948_v57 = vld [vmem:[#allocation7 + $0x690] sm:$0xf0] }
 0x2c8   :  { %4437 = vmatpush.bf16.msrb.mxu2 %v6819_v61  ;;  %v6644_v61 = vld [vmem:[#allocation7 + $0x430] sm:$0xf0] }
 0x2c9   :  { %4450 = vmatpush.bf16.msrb.mxu3 %v6947_v42  ;;  %v6647_v4 = vor.u32 %v7684_v59, %v6644_v61  ;;  %v7058_v59 = vld [vmem:[#allocation7 + $0x760] sm:$0xf]  ;;  %v7790_v61 = vld [vmem:[#allocation7 + $0x76c] sm:$0xf0] }
 0x2ca   :  { %4426 = vmatpush.bf16.msrb.mxu1 %v6659_v26  ;;  %v6836_v26 = vld [vmem:[#allocation7 + $0x5b0] sm:$0xf0] }
 0x2cb   :  { %v6839_v5 = vor.u32 %v7732_v2, %v6836_v26  ;;  %v7756_v26 = vld [vmem:[#allocation7 + $0x664] sm:$0xf] }
 0x2cc   :  { %4438 = vmatpush.bf16.msrb.mxu2 %v6803_v29  ;;  %v7750_v29 = vld [vmem:[#allocation7 + $0x62c] sm:$0xf0] }
 0x2cd   :  { %4451 = vmatpush.bf16.msrb.mxu3 %v6931_v50  ;;  %v7794_v50 = vld [vmem:[#allocation7 + $0x78c] sm:$0xf0] }
 0x2ce   :  { %4427 = vmatpush.bf16.msrb.mxu1 %v6643_v9  ;;  %v6899_v9 = vor.u32 %v7750_v29, %v6898_v6  ;;  %v7075_v52 = vor.u32 %v7794_v50, %v7074_v49  ;;  %v6714_v49 = vld [vmem:[#allocation7 + $0x4a8] sm:$0xf] }
 0x2d0   :  { %4439 = vmatpush.bf16.msrb.mxu2 %v6787_v23  ;;  %v6804_v23 = vld [vmem:[#allocation7 + $0x570] sm:$0xf0] }
 0x2d1   :  { %4452 = vmatpush.bf16.msrb.mxu3 %v6915_v63  ;;  %v6807_v25 = vor.u32 %v7724_v22, %v6804_v23  ;;  %v6746_v22 = vld [vmem:[#allocation7 + $0x4e8] sm:$0xf]  ;;  %v7711_v23 = vld [vmem:[#allocation7 + $0x4f4] sm:$0xf0] }
 0x2d2   :  { %4428 = vmatpush.bf16.msrb.mxu1 %v6627_v7  ;;  %v6820_v7 = vld [vmem:[#allocation7 + $0x590] sm:$0xf0] }
 0x2d4   :  { %4440 = vmatpush.bf16.msrb.mxu2 %v6771_v33  ;;  %v7720_v33 = vld [vmem:[#allocation7 + $0x544] sm:$0xf] }
 0x2d5   :  { %4453 = vmatpush.bf16.msrb.mxu3 %v6899_v9  ;;  %v6791_v31 = vor.u32 %v7720_v33, %v6788_v34  ;;  %v2774_v34 = vperm.slane %v8163_v37, 1 }
 0x2d6   :  { %4473 = vmatpush.bf16.msra.mxu1 %v6743_v14  ;;  %v6823_v14 = vor.u32 %v7728_v12, %v6820_v7  ;;  %v7786_v12 = vld [vmem:[#allocation7 + $0x74c] sm:$0xf0] }
 0x2d7   :  { %v7043_v7 = vor.u32 %v7786_v12, %v7042_v11  ;;  %v7695_v11 = vld [vmem:[#allocation7 + $0x474] sm:$0xf0]  ;;  %v6874_v12 = vld [vmem:[#allocation7 + $0x5e8] sm:$0xf] }
 0x2d8   :  { %4441 = vmatpush.bf16.msrb.mxu2 %v6755_v40  ;;  %v7090_v40 = vld [vmem:[#allocation7 + $0x7a0] sm:$0xf] }
 0x2d9   :  { %4454 = vmatpush.bf16.msrb.mxu3 %v6883_v18  ;;  %v7091_v42 = vor.u32 %v7798_v41, %v7090_v40 }
 0x2da   :  { %4474 = vmatpush.bf16.msra.mxu1 %v6727_v17  ;;  %v7122_v17 = vld [vmem:[#allocation7 + $0x7e0] sm:$0xf] }
 0x2db   :  { %v7123_v24 = vor.u32 %v7806_v19, %v7122_v17 }
 0x2dc   :  { %4486 = vmatpush.bf16.msra.mxu2 %v6871_v47  ;;  %v6967_v47 = vor.u32 %v7764_v45, %v6964_v53 }
 0x2dd   :  { %4460 = vmatpush.bf16.msra.mxu0 %v7123_v24  ;;  %v7026_v24 = vld [vmem:[#allocation7 + $0x720] sm:$0xf] }
 0x2de   :  { %4475 = vmatpush.bf16.msra.mxu1 %v6711_v27  ;;  %v6999_v27 = vor.u32 %v7772_v1, %v6996_v0 }
 0x2e0   :  { %4487 = vmatpush.bf16.msra.mxu2 %v6855_v56  ;;  %4499 = vmatpush.bf16.msra.mxu3 %v6999_v27  ;;  %v6759_v56 = vor.u32 %v7712_v3, %v6756_v8  ;;  %v7748_v27 = vld [vmem:[#allocation7 + $0x624] sm:$0xf]  ;;  %v7108_v8 = vld [vmem:[#allocation7 + $0x7d0] sm:$0xf0] }
 0x2e1   :  { %4461 = vmatpush.bf16.msra.mxu0 %v7107_v32  ;;  %v6903_v32 = vor.u32 %v7748_v27, %v6900_v28  ;;  %v7800_v3 = vld [vmem:[#allocation7 + $0x7c4] sm:$0xf]  ;;  %v7739_v28 = vld [vmem:[#allocation7 + $0x5d4] sm:$0xf0] }
 0x2e2   :  { %4476 = vmatpush.bf16.msra.mxu1 %v6695_v36  ;;  %v6980_v36 = vld [vmem:[#allocation7 + $0x6d0] sm:$0xf0] }
 0x2e3   :  { %v6983_v39 = vor.u32 %v7768_v35, %v6980_v36  ;;  %v7707_v36 = vld [vmem:[#allocation7 + $0x4d4] sm:$0xf0] }
 0x2e4   :  { %4488 = vmatpush.bf16.msra.mxu2 %v6839_v5  ;;  %v6932_v5 = vld [vmem:[#allocation7 + $0x670] sm:$0xf0] }
 0x2e5   :  { %4500 = vmatpush.bf16.msra.mxu3 %v6983_v39  ;;  %4462 = vmatpush.bf16.msra.mxu0 %v7091_v42  ;;  %v6935_v29 = vor.u32 %v7756_v26, %v6932_v5  ;;  %v7778_v39 = vld [vmem:[#allocation7 + $0x70c] sm:$0xf0]  ;;  %v7744_v42 = vld [vmem:[#allocation7 + $0x604] sm:$0xf] }
 0x2e6   :  { %4477 = vmatpush.bf16.msra.mxu1 %v6679_v46  ;;  %v6775_v46 = vor.u32 %v7716_v43, %v6772_v44  ;;  %v6884_v43 = vld [vmem:[#allocation7 + $0x610] sm:$0xf0]  ;;  %v7804_v44 = vld [vmem:[#allocation7 + $0x7e4] sm:$0xf] }
 0x2e7   :  { %v6887_v45 = vor.u32 %v7744_v42, %v6884_v43  ;;  %v7735_v42 = vld [vmem:[#allocation7 + $0x5b4] sm:$0xf0]  ;;  %v7784_v43 = vld [vmem:[#allocation7 + $0x744] sm:$0xf] }
 0x2e8   :  { %4489 = vmatpush.bf16.msra.mxu2 %v6823_v14  ;;  %v7752_v14 = vld [vmem:[#allocation7 + $0x644] sm:$0xf] }
 0x2e9   :  { %4501 = vmatpush.bf16.msra.mxu3 %v6967_v47  ;;  %4463 = vmatpush.bf16.msra.mxu0 %v7075_v52  ;;  %v6919_v17 = vor.u32 %v7752_v14, %v6916_v15  ;;  %v7703_v52 = vld [vmem:[#allocation7 + $0x4b4] sm:$0xf0]  ;;  %v7792_v14 = vld [vmem:[#allocation7 + $0x784] sm:$0xf]  ;;  %v7076_v15 = vld [vmem:[#allocation7 + $0x790] sm:$0xf0] }
 0x2ea   :  { %4478 = vmatpush.bf16.msra.mxu1 %v6663_v54  ;;  %v7760_v54 = vld [vmem:[#allocation7 + $0x684] sm:$0xf] }
 0x2eb   :  { %v6951_v63 = vor.u32 %v7760_v54, %v6948_v57 }
 0x2ec   :  { %4490 = vmatpush.bf16.msra.mxu2 %v6807_v25  ;;  %v7782_v25 = vld [vmem:[#allocation7 + $0x72c] sm:$0xf0] }
 0x2ed   :  { %4502 = vmatpush.bf16.msra.mxu3 %v6951_v63  ;;  %v7027_v0 = vor.u32 %v7782_v25, %v7026_v24  ;;  %v6698_v63 = vld [vmem:[#allocation7 + $0x488] sm:$0xf] }
 0x2ee   :  { %4479 = vmatpush.bf16.msra.mxu1 %v6647_v4  ;;  %v7059_v4 = vor.u32 %v7790_v61, %v7058_v59  ;;  %v7699_v61 = vld [vmem:[#allocation7 + $0x494] sm:$0xf0]  ;;  %v6666_v25 = vld [vmem:[#allocation7 + $0x448] sm:$0xf] }
 0x2f0   :  { %4491 = vmatpush.bf16.msra.mxu2 %v6791_v31  ;;  %4464 = vmatpush.bf16.msra.mxu0 %v7059_v4  ;;  %v6747_v31 = vor.u32 %v7711_v23, %v6746_v22  ;;  %v7092_v4 = vld [vmem:[#allocation7 + $0x7b0] sm:$0xf0]  ;;  %v2775_v22 = vperm.slane %v8163_v37, 2 }
 0x2f1   :  { %4503 = vmatpush.bf16.msra.mxu3 %v6935_v29 }
 0x2f2   :  { %4480 = vmatpush.bf16.msra.mxu1 %v6631_v13  ;;  %v3430_v21 = vpop.f32.mrf.mxu1 }
 0x2f3   :  { %v3469_v38 = vpop.f32.mrf.mxu0  ;;  %v3431_v2 = vadd.f32 %v3430_v21, %v2773_v48  ;;  %v6730_v21 = vld [vmem:[#allocation7 + $0x4c8] sm:$0xf] }
 0x2f4   :  { %4492 = vmatpush.bf16.msra.mxu2 %v6775_v46  ;;  %4465 = vmatpush.bf16.msra.mxu0 %v7043_v7  ;;  %v7124_v46 = vld [vmem:[#allocation7 + $0x7f0] sm:$0xf0]  ;;  %v6731_v48 = vor.u32 %v7707_v36, %v6730_v21  ;;  %v6650_v36 = vld [vmem:[#allocation7 + $0x428] sm:$0xf] }
 0x2f5   :  { %4504 = vmatpush.bf16.msra.mxu3 %v6919_v17  ;;  %v7127_v47 = vor.u32 %v7804_v44, %v7124_v46  ;;  %v7079_v17 = vor.u32 %v7792_v14, %v7076_v15  ;;  %v7044_v44 = vld [vmem:[#allocation7 + $0x750] sm:$0xf0] }
 0x2f8   :  { %4493 = vmatpush.bf16.msra.mxu2 %v6759_v56  ;;  %4466 = vmatpush.bf16.msra.mxu0 %v7027_v0  ;;  %v6858_v0 = vld [vmem:[#allocation7 + $0x5c8] sm:$0xf] }
 0x2f9   :  { %4505 = vmatpush.bf16.msra.mxu3 %v6903_v32  ;;  %v7060_v32 = vld [vmem:[#allocation7 + $0x770] sm:$0xf0] }
 0x2fa   :  { %v3432_v55 = vpop.f32.mrf.mxu1 }
 0x2fb   :  { %v3471_v58 = vpop.f32.mrf.mxu0  ;;  %v7111_v55 = vor.u32 %v7800_v3, %v7108_v8  ;;  %v7731_v8 = vld [vmem:[#allocation7 + $0x594] sm:$0xf0] }
 0x2fc   :  { %v6715_v58 = vor.u32 %v7703_v52, %v6714_v49  ;;  %v6634_v49 = vld [vmem:[#allocation7 + $0x408] sm:$0xf] }
 0x2fd   :  { %4506 = vmatpush.bf16.msra.mxu3 %v6887_v45  ;;  %v7047_v45 = vor.u32 %v7784_v43, %v7044_v44  ;;  %v6826_v52 = vld [vmem:[#allocation7 + $0x588] sm:$0xf] }
 0x2fe   :  { %v3443_v6 = vpop.f32.mrf.mxu2  ;;  %v6762_v44 = vld [vmem:[#allocation7 + $0x508] sm:$0xf] }
 0x2ff   :  { %v3444_v9 = vadd.f32 %v3443_v6, %v3431_v2  ;;  %v3456_v10 = vpop.f32.mrf.mxu3  ;;  %v7796_v2 = vld [vmem:[#allocation7 + $0x7a4] sm:$0xf] }
 0x300   :  { %v7095_v5 = vor.u32 %v7796_v2, %v7092_v4  ;;  %v6810_v2 = vld [vmem:[#allocation7 + $0x568] sm:$0xf]  ;;  %v7727_v4 = vld [vmem:[#allocation7 + $0x574] sm:$0xf0] }
 0x301   :  { %v3457_v13 = vadd.f32 %v3456_v10, %v3444_v9  ;;  %v6682_v9 = vld [vmem:[#allocation7 + $0x468] sm:$0xf]  ;;  %v6699_v10 = vor.u32 %v7699_v61, %v6698_v63  ;;  %v6827_v61 = vor.u32 %v7731_v8, %v6826_v52  ;;  %v2776_v52 = vperm.slane %v8163_v37, 3 }
 0x302   :  { %v3482_v16 = vpop.f32.mrf.mxu1  ;;  %v6683_v23 = vor.u32 %v7695_v11, %v6682_v9  ;;  %v7776_v9 = vld [vmem:[#allocation7 + $0x704] sm:$0xf] }
 0x303   :  { %v3470_v18 = vadd.f32 %v3469_v38, %v3457_v13  ;;  %v3521_v19 = vpop.f32.mrf.mxu0  ;;  %v7010_v38 = vld [vmem:[#allocation7 + $0x700] sm:$0xf]  ;;  %v3483_v50 = vadd.f32 %v3482_v16, %v2774_v34  ;;  %v7743_v13 = vld [vmem:[#allocation7 + $0x5f4] sm:$0xf0] }
 0x304   :  { %v7011_v41 = vor.u32 %v7778_v39, %v7010_v38  ;;  %v6875_v24 = vor.u32 %v7743_v13, %v6874_v12  ;;  %v7687_v38 = vld [vmem:[#allocation7 + $0x434] sm:$0xf0]  ;;  %v6842_v39 = vld [vmem:[#allocation7 + $0x5a8] sm:$0xf]  ;;  %v7705_v13 = vld [vmem:[#allocation7 + $0x4cc] sm:$0xf] }
 0x305   :  { %v3629_v1 = vmax.f32 %v3470_v18, 0.0  ;;  %v7775_v12 = vld [vmem:[#allocation7 + $0x6f4] sm:$0xf0] }
 0x306   :  { %v3445_v30 = vpop.f32.mrf.mxu2  ;;  %4467 = vmatpush.bf16.msra.mxu0 %v7011_v41 }
 0x307   :  { %v8167_v33 = vadd.f32 %v3629_v1, %v8120_v60  ;;  %v3458_v35 = vpop.f32.mrf.mxu3  ;;  %v7691_v1 = vld [vmem:[#allocation7 + $0x454] sm:$0xf0]  ;;  %v7788_v30 = vld [vmem:[#allocation7 + $0x764] sm:$0xf] }
 0x308   :  { %v6667_v21 = vor.u32 %v7691_v1, %v6666_v25  ;;  %v6986_v25 = vld [vmem:[#allocation7 + $0x6c8] sm:$0xf]  ;;  %v7771_v1 = vld [vmem:[#allocation7 + $0x6d4] sm:$0xf0] }
 0x309   :  { %v8172_v40 = vpack.c.bf16 %v8167_v33, %v8167_v33 }
 0x30a   :  { %v3484_v60 = vpop.f32.mrf.mxu1  ;;  %4512 = vmatpush.bf16.msrb.mxu0 %v7127_v47  ;;  %v6651_v47 = vor.u32 %v7687_v38, %v6650_v36  ;;  %v6700_v36 = vld [vmem:[#allocation7 + $0x498] sm:$0xf0] }
 0x30b   :  { %v3523_v53 = vpop.f32.mrf.mxu0  ;;  %4429 = vmatmul.bf16.vlgmr.msrb.gmra.mxu1 %v8172_v40 }
 0x30c   :  { %4525 = vmatpush.bf16.msrb.mxu1 %v6747_v31  ;;  %v6859_v31 = vor.u32 %v7739_v28, %v6858_v0  ;;  %v7701_v0 = vld [vmem:[#allocation7 + $0x4ac] sm:$0xf]  ;;  %v6716_v28 = vld [vmem:[#allocation7 + $0x4b8] sm:$0xf0] }
 0x30e   :  { %v3495_v54 = vpop.f32.mrf.mxu2  ;;  %4513 = vmatpush.bf16.msrb.mxu0 %v7111_v55  ;;  %v7028_v55 = vld [vmem:[#allocation7 + $0x730] sm:$0xf0] }
 0x30f   :  { %v3496_v56 = vadd.f32 %v3495_v54, %v3483_v50  ;;  %v3508_v57 = vpop.f32.mrf.mxu3  ;;  %v7683_v50 = vld [vmem:[#allocation7 + $0x414] sm:$0xf0]  ;;  %v7780_v54 = vld [vmem:[#allocation7 + $0x724] sm:$0xf] }
 0x310   :  { %4526 = vmatpush.bf16.msrb.mxu1 %v6731_v48  ;;  %v6843_v48 = vor.u32 %v7735_v42, %v6842_v39 }
 0x311   :  { %v3509_v59 = vadd.f32 %v3508_v57, %v3496_v56  ;;  %v7709_v56 = vld [vmem:[#allocation7 + $0x4ec] sm:$0xf]  ;;  %v6748_v57 = vld [vmem:[#allocation7 + $0x4f8] sm:$0xf0] }
 0x312   :  { %v3534_v26 = vpop.f32.mrf.mxu1  ;;  %4514 = vmatpush.bf16.msrb.mxu0 %v7095_v5 }
 0x313   :  { %v3522_v6 = vadd.f32 %v3521_v19, %v3509_v59  ;;  %v8175_v29 = vpop.f32.mrf.mxu0  ;;  %v3535_v41 = vadd.f32 %v3534_v26, %v2775_v22  ;;  %v6635_v59 = vor.u32 %v7683_v50, %v6634_v49  ;;  %v7002_v26 = vld [vmem:[#allocation7 + $0x6e8] sm:$0xf]  ;;  %v6876_v49 = vld [vmem:[#allocation7 + $0x5f8] sm:$0xf0] }
 0x314   :  { %4527 = vmatpush.bf16.msrb.mxu1 %v6715_v58  ;;  %v7031_v58 = vor.u32 %v7780_v54, %v7028_v55  ;;  %v7003_v22 = vor.u32 %v7775_v12, %v7002_v26  ;;  %v6938_v54 = vld [vmem:[#allocation7 + $0x668] sm:$0xf] }
 0x315   :  { %v3630_v7 = vmax.f32 %v3522_v6, 0.0  ;;  %v6751_v6 = vor.u32 %v7709_v56, %v6748_v57  ;;  %v7759_v56 = vld [vmem:[#allocation7 + $0x674] sm:$0xf0]  ;;  %v7689_v57 = vld [vmem:[#allocation7 + $0x44c] sm:$0xf] }
 0x316   :  { %v3497_v16 = vpop.f32.mrf.mxu2  ;;  %4515 = vmatpush.bf16.msrb.mxu0 %v7079_v17 }
 0x317   :  { %v8178_v18 = vadd.f32 %v3630_v7, %v8134_v51  ;;  %v3510_v19 = vpop.f32.mrf.mxu3  ;;  %v7063_v51 = vor.u32 %v7788_v30, %v7060_v32  ;;  %v6732_v7 = vld [vmem:[#allocation7 + $0x4d8] sm:$0xf0]  ;;  %v6811_v16 = vor.u32 %v7727_v4, %v6810_v2  ;;  %v6987_v30 = vor.u32 %v7771_v1, %v6986_v25  ;;  %v7751_v25 = vld [vmem:[#allocation7 + $0x634] sm:$0xf0]  ;;  %v7681_v1 = vld [vmem:[#allocation7 + $0x40c] sm:$0xf] }
 0x318   :  { %4528 = vmatpush.bf16.msrb.mxu1 %v6699_v10  ;;  %v7012_v10 = vld [vmem:[#allocation7 + $0x710] sm:$0xf0]  ;;  %v6735_v19 = vor.u32 %v7705_v13, %v6732_v7  ;;  %v6719_v32 = vor.u32 %v7701_v0, %v6716_v28  ;;  %v6939_v4 = vor.u32 %v7759_v56, %v6938_v54  ;;  %v7733_v13 = vld [vmem:[#allocation7 + $0x5ac] sm:$0xf]  ;;  %v6844_v7 = vld [vmem:[#allocation7 + $0x5b8] sm:$0xf0] }
 0x319   :  { %v8183_v27 = vpack.c.bf16 %v8178_v18, %v8178_v18  ;;  %v7015_v14 = vor.u32 %v7776_v9, %v7012_v10  ;;  %v7755_v9 = vld [vmem:[#allocation7 + $0x654] sm:$0xf0]  ;;  %v7685_v10 = vld [vmem:[#allocation7 + $0x42c] sm:$0xf]  ;;  %v6636_v0 = vld [vmem:[#allocation7 + $0x418] sm:$0xf0] }
 0x31a   :  { %v3536_v34 = vpop.f32.mrf.mxu1  ;;  %4516 = vmatpush.bf16.msrb.mxu0 %v7063_v51  ;;  %v7719_v51 = vld [vmem:[#allocation7 + $0x534] sm:$0xf0]  ;;  %v7729_v28 = vld [vmem:[#allocation7 + $0x58c] sm:$0xf] }
 0x31b   :  { %v3575_v35 = vpop.f32.mrf.mxu0  ;;  %4442 = vmatmul.bf16.vlgmr.msrb.gmra.mxu2 %v8183_v27  ;;  %4481 = vmatmul.bf16.vlgmr.msra.gmra.mxu1 %v8172_v40  ;;  %v6778_v34 = vld [vmem:[#allocation7 + $0x528] sm:$0xf]  ;;  %v7769_v54 = vld [vmem:[#allocation7 + $0x6cc] sm:$0xf] }
 0x31c   :  { %4529 = vmatpush.bf16.msrb.mxu1 %v6683_v23  ;;  %4538 = vmatpush.bf16.msrb.mxu2 %v6875_v24  ;;  %v6794_v23 = vld [vmem:[#allocation7 + $0x548] sm:$0xf]  ;;  %v7723_v24 = vld [vmem:[#allocation7 + $0x554] sm:$0xf0] }
 0x31d   :  { %v6970_v35 = vld [vmem:[#allocation7 + $0x6a8] sm:$0xf] }
 0x31e   :  { %v3547_v60 = vpop.f32.mrf.mxu2  ;;  %4517 = vmatpush.bf16.msrb.mxu0 %v7047_v45  ;;  %v6954_v45 = vld [vmem:[#allocation7 + $0x688] sm:$0xf] }
 0x31f   :  { %v3548_v46 = vadd.f32 %v3547_v60, %v3535_v41  ;;  %v3560_v53 = vpop.f32.mrf.mxu3  ;;  %v6779_v41 = vor.u32 %v7719_v51, %v6778_v34  ;;  %v7715_v60 = vld [vmem:[#allocation7 + $0x514] sm:$0xf0]  ;;  %v6639_v34 = vor.u32 %v7681_v1, %v6636_v0  ;;  %v6890_v51 = vld [vmem:[#allocation7 + $0x608] sm:$0xf]  ;;  %v7753_v0 = vld [vmem:[#allocation7 + $0x64c] sm:$0xf] }
 0x320   :  { %4530 = vmatpush.bf16.msrb.mxu1 %v6667_v21  ;;  %4539 = vmatpush.bf16.msrb.mxu2 %v6859_v31  ;;  %v7767_v21 = vld [vmem:[#allocation7 + $0x6b4] sm:$0xf0]  ;;  %v7697_v31 = vld [vmem:[#allocation7 + $0x48c] sm:$0xf]  ;;  %v6763_v50 = vor.u32 %v7715_v60, %v6762_v44  ;;  %v7004_v60 = vld [vmem:[#allocation7 + $0x6f8] sm:$0xf0] }
 0x321   :  { %v3561_v3 = vadd.f32 %v3560_v53, %v3548_v46  ;;  %v6971_v42 = vor.u32 %v7767_v21, %v6970_v35  ;;  %v6703_v43 = vor.u32 %v7697_v31, %v6700_v36  ;;  %v7763_v46 = vld [vmem:[#allocation7 + $0x694] sm:$0xf0]  ;;  %v7693_v53 = vld [vmem:[#allocation7 + $0x46c] sm:$0xf]  ;;  %v7130_v21 = vld [vmem:[#allocation7 + $0x7e8] sm:$0xf] }
 0x322   :  { %4518 = vmatpush.bf16.msrb.mxu0 %v7031_v58  ;;  %v6668_v58 = vld [vmem:[#allocation7 + $0x458] sm:$0xf0]  ;;  %v7747_v35 = vld [vmem:[#allocation7 + $0x614] sm:$0xf0]  ;;  %v7773_v44 = vld [vmem:[#allocation7 + $0x6ec] sm:$0xf] }
 0x323   :  { %v3574_v63 = vadd.f32 %v8175_v29, %v3561_v3  ;;  %v6955_v3 = vor.u32 %v7763_v46, %v6954_v45  ;;  %v6671_v26 = vor.u32 %v7689_v57, %v6668_v58  ;;  %v6891_v46 = vor.u32 %v7747_v35, %v6890_v51  ;;  %v7098_v58 = vld [vmem:[#allocation7 + $0x7a8] sm:$0xf]  ;;  %v7787_v1 = vld [vmem:[#allocation7 + $0x754] sm:$0xf0]  ;;  %v7749_v51 = vld [vmem:[#allocation7 + $0x62c] sm:$0xf] }
 0x324   :  { %4531 = vmatpush.bf16.msrb.mxu1 %v6651_v47  ;;  %4540 = vmatpush.bf16.msrb.mxu2 %v6843_v48  ;;  %v6684_v47 = vld [vmem:[#allocation7 + $0x478] sm:$0xf0]  ;;  %v7741_v48 = vld [vmem:[#allocation7 + $0x5ec] sm:$0xf] }
 0x325   :  { %v3631_v5 = vmax.f32 %v3574_v63, 0.0  ;;  %v6687_v8 = vor.u32 %v7693_v53, %v6684_v47  ;;  %v6879_v55 = vor.u32 %v7741_v48, %v6876_v49  ;;  %v7007_v49 = vor.u32 %v7773_v44, %v7004_v60  ;;  %v6908_v35 = vld [vmem:[#allocation7 + $0x638] sm:$0xf0] }
 0x326   :  { %v3549_v11 = vpop.f32.mrf.mxu2  ;;  %4519 = vmatpush.bf16.msrb.mxu0 %v7015_v14  ;;  %v7132_v44 = vld [vmem:[#allocation7 + $0x7f8] sm:$0xf0] }
 0x327   :  { %v8189_v15 = vadd.f32 %v3631_v5, %v8136_v20  ;;  %v3562_v29 = vpop.f32.mrf.mxu3  ;;  %v6795_v20 = vor.u32 %v7723_v24, %v6794_v23  ;;  %v6922_v5 = vld [vmem:[#allocation7 + $0x648] sm:$0xf]  ;;  %v6652_v11 = vld [vmem:[#allocation7 + $0x438] sm:$0xf0]  ;;  %v6847_v24 = vor.u32 %v7733_v13, %v6844_v7 }
 0x328   :  { %4532 = vmatpush.bf16.msrb.mxu1 %v6635_v59  ;;  %4541 = vmatpush.bf16.msrb.mxu2 %v6827_v61  ;;  %v7737_v59 = vld [vmem:[#allocation7 + $0x5cc] sm:$0xf]  ;;  %v6860_v61 = vld [vmem:[#allocation7 + $0x5d8] sm:$0xf0] }
 0x329   :  { %v8193_v17 = vpack.c.bf16 %v8189_v15, %v8189_v15 }
 0x32b   :  { %4455 = vmatmul.bf16.vlgmr.msrb.gmra.mxu3 %v8193_v17  ;;  %4494 = vmatmul.bf16.vlgmr.msra.gmra.mxu2 %v8183_v27 }
 0x32c   :  { %4577 = vmatpush.bf16.msra.mxu1 %v6751_v6  ;;  %4542 = vmatpush.bf16.msrb.mxu2 %v6811_v16  ;;  %v6863_v6 = vor.u32 %v7737_v59, %v6860_v61  ;;  %v6923_v16 = vor.u32 %v7755_v9, %v6922_v5  ;;  %v7717_v59 = vld [vmem:[#allocation7 + $0x52c] sm:$0xf]  ;;  %v6780_v61 = vld [vmem:[#allocation7 + $0x538] sm:$0xf0] }
 0x32d   :  { %4533 = vmatmul.bf16.vlgmr.msrb.gmra.mxu1 %v8172_v40  ;;  %4551 = vmatpush.bf16.msrb.mxu3 %v7003_v22  ;;  %v6655_v22 = vor.u32 %v7685_v10, %v6652_v11  ;;  %v7713_v9 = vld [vmem:[#allocation7 + $0x50c] sm:$0xf]  ;;  %v6764_v10 = vld [vmem:[#allocation7 + $0x518] sm:$0xf0] }
 0x32e   :  { %v7761_v11 = vld [vmem:[#allocation7 + $0x68c] sm:$0xf]  ;;  %v6767_v7 = vor.u32 %v7713_v9, %v6764_v10 }
 0x32f   :  { %v7813_v9 = vld [vmem:[#allocation9 + $0x28] sm:$0xff] }
 0x330   :  { %4578 = vmatpush.bf16.msra.mxu1 %v6735_v19  ;;  %4543 = vmatpush.bf16.msrb.mxu2 %v6795_v20  ;;  %v6906_v19 = vld [vmem:[#allocation7 + $0x628] sm:$0xf]  ;;  %v6828_v20 = vld [vmem:[#allocation7 + $0x598] sm:$0xf0] }
 0x331   :  { %4552 = vmatpush.bf16.msrb.mxu3 %v6987_v30  ;;  %v6831_v36 = vor.u32 %v7729_v28, %v6828_v20  ;;  %v6924_v28 = vld [vmem:[#allocation7 + $0x658] sm:$0xf0] }
 0x332   :  { %v3586_v38 = vpop.f32.mrf.mxu1 }
 0x333   :  { %v8198_v39 = vpop.f32.mrf.mxu0  ;;  %v3587_v37 = vadd.f32 %v3586_v38, %v2776_v52  ;;  %v7807_v38 = vld [vmem:[#allocation7 + $0x7f4] sm:$0xf0] }
 0x334   :  { %4579 = vmatpush.bf16.msra.mxu1 %v6719_v32  ;;  %4544 = vmatpush.bf16.msrb.mxu2 %v6779_v41  ;;  %v6907_v32 = vor.u32 %v7751_v25, %v6906_v19  ;;  %v7725_v41 = vld [vmem:[#allocation7 + $0x56c] sm:$0xf]  ;;  %v7131_v53 = vor.u32 %v7807_v38, %v7130_v21  ;;  %v7803_v52 = vld [vmem:[#allocation7 + $0x7d4] sm:$0xf0]  ;;  %v6940_v19 = vld [vmem:[#allocation7 + $0x678] sm:$0xf0] }
 0x335   :  { %4553 = vmatpush.bf16.msrb.mxu3 %v6971_v42  ;;  %v7050_v25 = vld [vmem:[#allocation7 + $0x748] sm:$0xf]  ;;  %v7779_v38 = vld [vmem:[#allocation7 + $0x714] sm:$0xf0] }
 0x336   :  { %v7051_v20 = vor.u32 %v7787_v1, %v7050_v25  ;;  %v7820_v25 = vld [vmem:[#allocation9 + $0x60] sm:$0xff] }
 0x338   :  { %4580 = vmatpush.bf16.msra.mxu1 %v6703_v43  ;;  %4545 = vmatpush.bf16.msrb.mxu2 %v6763_v50  ;;  %v6812_v43 = vld [vmem:[#allocation7 + $0x578] sm:$0xf0]  ;;  %v7114_v50 = vld [vmem:[#allocation7 + $0x7c8] sm:$0xf] }
 0x339   :  { %4554 = vmatpush.bf16.msrb.mxu3 %v6955_v3  ;;  %v6815_v48 = vor.u32 %v7725_v41, %v6812_v43  ;;  %v7721_v3 = vld [vmem:[#allocation7 + $0x54c] sm:$0xf] }
 0x33a   :  { %v3588_v63 = vpop.f32.mrf.mxu1  ;;  %v7745_v41 = vld [vmem:[#allocation7 + $0x60c] sm:$0xf] }
 0x33b   :  { %v3627_v2 = vpop.f32.mrf.mxu0  ;;  %4507 = vmatmul.bf16.vlgmr.msra.gmra.mxu3 %v8193_v17  ;;  %4546 = vmatmul.bf16.vlgmr.msrb.gmra.mxu2 %v8183_v27  ;;  %v7799_v63 = vld [vmem:[#allocation7 + $0x7b4] sm:$0xf0]  ;;  %v7805_v43 = vld [vmem:[#allocation7 + $0x7ec] sm:$0xf] }
 0x33c   :  { %4581 = vmatpush.bf16.msra.mxu1 %v6687_v8  ;;  %4590 = vmatpush.bf16.msra.mxu2 %v6879_v55  ;;  %v6796_v8 = vld [vmem:[#allocation7 + $0x558] sm:$0xf0]  ;;  %v7765_v2 = vld [vmem:[#allocation7 + $0x6ac] sm:$0xf] }
 0x33d   :  { %4555 = vmatpush.bf16.msrb.mxu3 %v6939_v4  ;;  %v6988_v55 = vld [vmem:[#allocation7 + $0x6d8] sm:$0xf0]  ;;  %v6799_v56 = vor.u32 %v7721_v3, %v6796_v8  ;;  %v7793_v3 = vld [vmem:[#allocation7 + $0x78c] sm:$0xf] }
 0x33e   :  { %v3599_v12 = vpop.f32.mrf.mxu2  ;;  %v6991_v57 = vor.u32 %v7769_v54, %v6988_v55  ;;  %v6972_v4 = vld [vmem:[#allocation7 + $0x6b8] sm:$0xf0]  ;;  %v7789_v55 = vld [vmem:[#allocation7 + $0x76c] sm:$0xf] }
 0x33f   :  { %v3600_v14 = vadd.f32 %v3599_v12, %v3587_v37  ;;  %v3612_v29 = vpop.f32.mrf.mxu3  ;;  %v6975_v5 = vor.u32 %v7765_v2, %v6972_v4  ;;  %v7082_v37 = vld [vmem:[#allocation7 + $0x788] sm:$0xf]  ;;  %v6956_v12 = vld [vmem:[#allocation7 + $0x698] sm:$0xf0]  ;;  %v7777_v4 = vld [vmem:[#allocation7 + $0x70c] sm:$0xf] }
 0x340   :  { %4582 = vmatpush.bf16.msra.mxu1 %v6671_v26  ;;  %4591 = vmatpush.bf16.msra.mxu2 %v6863_v6  ;;  %v7099_v26 = vor.u32 %v7799_v63, %v7098_v58  ;;  %v7795_v6 = vld [vmem:[#allocation7 + $0x794] sm:$0xf0]  ;;  %v7084_v8 = vld [vmem:[#allocation7 + $0x798] sm:$0xf0] }
 0x341   :  { %v3613_v23 = vadd.f32 %v3612_v29, %v3600_v14  ;;  %4556 = vmatpush.bf16.msrb.mxu3 %v6923_v16  ;;  %v7083_v13 = vor.u32 %v7795_v6, %v7082_v37  ;;  %v6959_v14 = vor.u32 %v7761_v11, %v6956_v12  ;;  %v7066_v29 = vld [vmem:[#allocation7 + $0x768] sm:$0xf]  ;;  %v7791_v16 = vld [vmem:[#allocation7 + $0x774] sm:$0xf0]  ;;  %v7087_v54 = vor.u32 %v7793_v3, %v7084_v8  ;;  %v7052_v58 = vld [vmem:[#allocation7 + $0x758] sm:$0xf0] }
 0x342   :  { %v7814_v6 = vld [vmem:[#allocation9 + $0x30] sm:$0xff]  ;;  %v7812_v11 = vld [vmem:[#allocation9 + $0x20] sm:$0xff]  ;;  %v7825_v8 = vld [vmem:[#allocation9 + $0x88] sm:$0xff] }
 0x343   :  { %v3626_v30 = vadd.f32 %v8198_v39, %v3613_v23  ;;  %v7067_v23 = vor.u32 %v7791_v16, %v7066_v29  ;;  %v7810_v29 = vld [vmem:[#allocation9 + $0x10] sm:$0xff] }
 0x344   :  { %4583 = vmatpush.bf16.msra.mxu1 %v6655_v22  ;;  %4592 = vmatpush.bf16.msra.mxu2 %v6847_v24  ;;  %v7757_v22 = vld [vmem:[#allocation7 + $0x66c] sm:$0xf] }
 0x345   :  { %v3632_v31 = vmax.f32 %v3626_v30, 0.0  ;;  %4557 = vmatpush.bf16.msrb.mxu3 %v6907_v32  ;;  %v6943_v24 = vor.u32 %v7757_v22, %v6940_v19  ;;  %v6927_v30 = vor.u32 %v7753_v0, %v6924_v28  ;;  %v7034_v32 = vld [vmem:[#allocation7 + $0x728] sm:$0xf]  ;;  %v7819_v28 = vld [vmem:[#allocation9 + $0x58] sm:$0xff] }
 0x346   :  { %v3601_v42 = vpop.f32.mrf.mxu2  ;;  %v7809_v22 = vld [vmem:[#allocation9 + $0x8] sm:$0xff] }
 0x347   :  { %v8205_v45 = vadd.f32 %v3632_v31, %v8122_v62  ;;  %v3614_v39 = vpop.f32.mrf.mxu3  ;;  %v7115_v62 = vor.u32 %v7803_v52, %v7114_v50  ;;  %v6911_v31 = vor.u32 %v7749_v51, %v6908_v35  ;;  %v6892_v42 = vld [vmem:[#allocation7 + $0x618] sm:$0xf0]  ;;  %v7821_v19 = vld [vmem:[#allocation9 + $0x68] sm:$0xff] }
 0x348   :  { %4584 = vmatpush.bf16.msra.mxu1 %v6639_v34  ;;  %4593 = vmatpush.bf16.msra.mxu2 %v6831_v36  ;;  %v7783_v34 = vld [vmem:[#allocation7 + $0x734] sm:$0xf0]  ;;  %v7018_v36 = vld [vmem:[#allocation7 + $0x708] sm:$0xf]  ;;  %v7135_v39 = vor.u32 %v7805_v43, %v7132_v44  ;;  %v7100_v50 = vld [vmem:[#allocation7 + $0x7b8] sm:$0xf0] }
 0x349   :  { %v8209_v47 = vpack.c.bf16 %v8205_v45, %v8205_v45  ;;  %4558 = vmatpush.bf16.msrb.mxu3 %v6891_v46  ;;  %v7035_v21 = vor.u32 %v7783_v34, %v7034_v32  ;;  %v7019_v60 = vor.u32 %v7779_v38, %v7018_v36  ;;  %v7801_v46 = vld [vmem:[#allocation7 + $0x7cc] sm:$0xf]  ;;  %v7830_v32 = vld [vmem:[#allocation9 + $0xb0] sm:$0xff]  ;;  %v7816_v38 = vld [vmem:[#allocation9 + $0x40] sm:$0xff] }
 0x34a   :  { %v8226_v36 = vld [vmem:[%s8252_s8 + $0x1] ss:$8 sm:$0xf] }
 0x34b   :  { %4468 = vmatmul.bf16.vlgmr.msra.gmra.mxu0 %v8209_v47  ;;  %4585 = vmatmul.bf16.vlgmr.msra.gmra.mxu1 %v8172_v40  ;;  %v6783_v40 = vor.u32 %v7717_v59, %v6780_v61  ;;  %v7781_v59 = vld [vmem:[#allocation7 + $0x72c] sm:$0xf]  ;;  %v7036_v61 = vld [vmem:[#allocation7 + $0x738] sm:$0xf0] }
 0x34c   :  { %4564 = vmatpush.bf16.msra.mxu0 %v7131_v53  ;;  %4594 = vmatpush.bf16.msra.mxu2 %v6815_v48  ;;  %v7116_v53 = vld [vmem:[#allocation7 + $0x7d8] sm:$0xf0]  ;;  %v7039_v2 = vor.u32 %v7781_v59, %v7036_v61  ;;  %v7838_v61 = vld [vmem:[#allocation9 + $0xf0] sm:$0xff] }
 0x34d   :  { %4603 = vmatpush.bf16.msra.mxu3 %v7007_v49  ;;  %v7119_v48 = vor.u32 %v7801_v46, %v7116_v53  ;;  %v7797_v49 = vld [vmem:[#allocation7 + $0x7ac] sm:$0xf]  ;;  %v7826_v46 = vld [vmem:[#allocation9 + $0x90] sm:$0xff] }
 0x34e   :  { %4559 = vmatmul.bf16.vlgmr.msrb.gmra.mxu3 %v8193_v17  ;;  %v7103_v52 = vor.u32 %v7797_v49, %v7100_v50 }
 0x350   :  { %4565 = vmatpush.bf16.msra.mxu0 %v7115_v62  ;;  %4595 = vmatpush.bf16.msra.mxu2 %v6799_v56  ;;  %v7068_v62 = vld [vmem:[#allocation7 + $0x778] sm:$0xf0] }
 0x351   :  { %4604 = vmatpush.bf16.msra.mxu3 %v6991_v57  ;;  %v7071_v56 = vor.u32 %v7789_v55, %v7068_v62  ;;  %v7785_v57 = vld [vmem:[#allocation7 + $0x74c] sm:$0xf]  ;;  %v7824_v62 = vld [vmem:[#allocation9 + $0x80] sm:$0xff] }
 0x352   :  { %v7055_v63 = vor.u32 %v7785_v57, %v7052_v58  ;;  %v3774_v57 = vperm.slane %v8226_v36, 1 }
 0x354   :  { %4566 = vmatpush.bf16.msra.mxu0 %v7099_v26  ;;  %4596 = vmatpush.bf16.msra.mxu2 %v6783_v40 }
 0x355   :  { %4605 = vmatpush.bf16.msra.mxu3 %v6975_v5  ;;  %v7815_v5 = vld [vmem:[#allocation9 + $0x38] sm:$0xff] }
 0x356   :  { %4898 = vmatpush.bf16.msrb.mxu1 %v7815_v5 }
 0x358   :  { %4567 = vmatpush.bf16.msra.mxu0 %v7083_v13  ;;  %4597 = vmatpush.bf16.msra.mxu2 %v6767_v7  ;;  %v7811_v13 = vld [vmem:[#allocation9 + $0x18] sm:$0xff] }
 0x359   :  { %4606 = vmatpush.bf16.msra.mxu3 %v6959_v14  ;;  %v7823_v7 = vld [vmem:[#allocation9 + $0x78] sm:$0xff] }
 0x35a   :  { %4899 = vmatpush.bf16.msrb.mxu1 %v7814_v6 }
 0x35b   :  { %4520 = vmatmul.bf16.vlgmr.msrb.gmra.mxu0 %v8209_v47  ;;  %4598 = vmatmul.bf16.vlgmr.msra.gmra.mxu2 %v8183_v27  ;;  %v6895_v27 = vor.u32 %v7745_v41, %v6892_v42  ;;  %v7828_v41 = vld [vmem:[#allocation9 + $0xa0] sm:$0xff]  ;;  %v3773_v42 = vperm.slane %v8226_v36, 0 }
 0x35c   :  { %4568 = vmatpush.bf16.msra.mxu0 %v7067_v23  ;;  %4911 = vmatpush.bf16.msrb.mxu2 %v7823_v7 }
 0x35d   :  { %4607 = vmatpush.bf16.msra.mxu3 %v6943_v24  ;;  %v7808_v24 = vld [vmem:[#allocation9] sm:$0xff] }
 0x35e   :  { %4900 = vmatpush.bf16.msrb.mxu1 %v7813_v9 }
 0x360   :  { %4569 = vmatpush.bf16.msra.mxu0 %v7051_v20  ;;  %v7831_v20 = vld [vmem:[#allocation9 + $0xb8] sm:$0xff] }
 0x361   :  { %4608 = vmatpush.bf16.msra.mxu3 %v6927_v30  ;;  %v7818_v30 = vld [vmem:[#allocation9 + $0x50] sm:$0xff] }
 0x362   :  { %4901 = vmatpush.bf16.msrb.mxu1 %v7812_v11  ;;  %v7835_v11 = vld [vmem:[#allocation9 + $0xd8] sm:$0xff] }
 0x364   :  { %4570 = vmatpush.bf16.msra.mxu0 %v7035_v21  ;;  %v7817_v21 = vld [vmem:[#allocation9 + $0x48] sm:$0xff] }
 0x365   :  { %4609 = vmatpush.bf16.msra.mxu3 %v6911_v31  ;;  %v7829_v31 = vld [vmem:[#allocation9 + $0xa8] sm:$0xff] }
 0x366   :  { %4902 = vmatpush.bf16.msrb.mxu1 %v7811_v13  ;;  %v3775_v13 = vperm.slane %v8226_v36, 2 }
 0x368   :  { %4571 = vmatpush.bf16.msra.mxu0 %v7019_v60  ;;  %v7827_v60 = vld [vmem:[#allocation9 + $0x98] sm:$0xff] }
 0x369   :  { %4610 = vmatpush.bf16.msra.mxu3 %v6895_v27 }
 0x36a   :  { %4903 = vmatpush.bf16.msrb.mxu1 %v7810_v29 }
 0x36b   :  { %4572 = vmatmul.bf16.vlgmr.msra.gmra.mxu0 %v8209_v47 }
 0x36c   :  { %4616 = vmatpush.bf16.msrb.mxu0 %v7135_v39  ;;  %4611 = vmatmul.bf16.vlgmr.msra.gmra.mxu3 %v8193_v17  ;;  %v7020_v17 = vld [vmem:[#allocation7 + $0x718] sm:$0xf0] }
 0x36d   :  { %v7023_v26 = vor.u32 %v7777_v4, %v7020_v17  ;;  %4924 = vmatpush.bf16.msrb.mxu3 %v7831_v20 }
 0x36e   :  { %4904 = vmatpush.bf16.msrb.mxu1 %v7809_v22  ;;  %v7833_v22 = vld [vmem:[#allocation9 + $0xc8] sm:$0xff] }
 0x370   :  { %4617 = vmatpush.bf16.msrb.mxu0 %v7119_v48 }
 0x371   :  { %4925 = vmatpush.bf16.msrb.mxu3 %v7830_v32 }
 0x372   :  { %4905 = vmatpush.bf16.msrb.mxu1 %v7808_v24 }
 0x374   :  { %4618 = vmatpush.bf16.msrb.mxu0 %v7103_v52 }
 0x375   :  { %4926 = vmatpush.bf16.msrb.mxu3 %v7829_v31 }
 0x378   :  { %4619 = vmatpush.bf16.msrb.mxu0 %v7087_v54 }
 0x379   :  { %4927 = vmatpush.bf16.msrb.mxu3 %v7828_v41 }
 0x37c   :  { %4620 = vmatpush.bf16.msrb.mxu0 %v7071_v56  ;;  %v7839_v56 = vld [vmem:[#allocation9 + $0xf8] sm:$0xff] }
 0x37d   :  { %4928 = vmatpush.bf16.msrb.mxu3 %v7827_v60 }
 0x380   :  { %4621 = vmatpush.bf16.msrb.mxu0 %v7055_v63 }
 0x381   :  { %4929 = vmatpush.bf16.msrb.mxu3 %v7826_v46 }
 0x384   :  { %4622 = vmatpush.bf16.msrb.mxu0 %v7039_v2 }
 0x385   :  { %4930 = vmatpush.bf16.msrb.mxu3 %v7825_v8 }
 0x388   :  { %4623 = vmatpush.bf16.msrb.mxu0 %v7023_v26  ;;  %v4430_v40 = vpop.f32.mrf.mxu1  ;;  %v7837_v26 = vld [vmem:[#allocation9 + $0xe8] sm:$0xff] }
 0x389   :  { %v4431_v27 = vadd.f32 %v4430_v40, %v3773_v42  ;;  %4931 = vmatpush.bf16.msrb.mxu3 %v7824_v62 }
 0x38b   :  { %4624 = vmatmul.bf16.vlgmr.msrb.gmra.mxu0 %v8209_v47  ;;  %v7822_v47 = vld [vmem:[#allocation9 + $0x70] sm:$0xff] }
 0x38c   :  { %4912 = vmatpush.bf16.msrb.mxu2 %v7822_v47  ;;  %4937 = vmatpush.bf16.msra.mxu0 %v7839_v56 }
 0x390   :  { %v4432_v37 = vpop.f32.mrf.mxu1  ;;  %4913 = vmatpush.bf16.msrb.mxu2 %v7821_v19  ;;  %4938 = vmatpush.bf16.msra.mxu0 %v7838_v61 }
 0x394   :  { %4914 = vmatpush.bf16.msrb.mxu2 %v7820_v25  ;;  %4939 = vmatpush.bf16.msra.mxu0 %v7837_v26 }
 0x398   :  { %v8219_v10 = vpop.f32.mrf.mxu1  ;;  %4915 = vmatpush.bf16.msrb.mxu2 %v7819_v28 }
 0x399   :  { %v4483_v4 = vadd.f32 %v8219_v10, %v3774_v57  ;;  %v7834_v10 = vld [vmem:[#allocation9 + $0xd0] sm:$0xff] }
 0x39c   :  { %4916 = vmatpush.bf16.msrb.mxu2 %v7818_v30 }
 0x39e   :  { %v4443_v12 = vpop.f32.mrf.mxu2 }
 0x39f   :  { %v4444_v39 = vadd.f32 %v4443_v12, %v4431_v27 }
 0x3a0   :  { %v4484_v14 = vpop.f32.mrf.mxu1  ;;  %4917 = vmatpush.bf16.msrb.mxu2 %v7817_v21 }
 0x3a4   :  { %4918 = vmatpush.bf16.msrb.mxu2 %v7816_v38 }
 0x3a6   :  { %v4445_v16 = vpop.f32.mrf.mxu2 }
 0x3aa   :  { %v8221_v23 = vpop.f32.mrf.mxu1 }
 0x3ab   :  { %v4535_v47 = vadd.f32 %v8221_v23, %v3775_v13  ;;  %v3776_v23 = vperm.slane %v8226_v36, 3  ;;  %v4705_v36 = vld [vmem:[%s8252_s8 + $0x2] ss:$0 sm:$0xff] }
 0x3ae   :  { %v4456_v1 = vpop.f32.mrf.mxu3  ;;  %v4495_v0 = vpop.f32.mrf.mxu2 }
 0x3af   :  { %v4457_v53 = vadd.f32 %v4456_v1, %v4444_v39  ;;  %v4496_v17 = vadd.f32 %v4495_v0, %v4483_v4  ;;  %v7832_v0 = vld [vmem:[#allocation9 + $0xc0] sm:$0xff] }
 0x3b2   :  { %v4536_v34 = vpop.f32.mrf.mxu1 }
 0x3b6   :  { %v4458_v51 = vpop.f32.mrf.mxu3  ;;  %v4497_v35 = vpop.f32.mrf.mxu2 }
 0x3be   :  { %v4508_v43 = vpop.f32.mrf.mxu3  ;;  %v4547_v44 = vpop.f32.mrf.mxu2 }
 0x3bf   :  { %v4509_v40 = vadd.f32 %v4508_v43, %v4496_v17  ;;  %v4548_v16 = vadd.f32 %v4547_v44, %v4535_v47 }
 0x3c6   :  { %v4510_v52 = vpop.f32.mrf.mxu3  ;;  %v4549_v3 = vpop.f32.mrf.mxu2 }
 0x3c8   :  { %v4469_v48 = vpop.f32.mrf.mxu0  ;;  %v4586_v49 = vpop.f32.mrf.mxu1 }
 0x3c9   :  { %v4470_v50 = vadd.f32 %v4469_v48, %v4457_v53  ;;  %v4587_v51 = vadd.f32 %v4586_v49, %v3776_v23 }
 0x3cb   :  { %v4629_v54 = vmax.f32 %v4470_v50, 0.0 }
 0x3cd   :  { %v4633_v55 = vadd.f32 %v4629_v54, %v8167_v33  ;;  %v7836_v33 = vld [vmem:[#allocation9 + $0xe0] sm:$0xff] }
 0x3ce   :  { %4940 = vmatpush.bf16.msra.mxu0 %v7836_v33 }
 0x3cf   :  { %v4637_v58 = vpack.c.bf16 %v4633_v55, %v4633_v55 }
 0x3d0   :  { %v4471_v63 = vpop.f32.mrf.mxu0  ;;  %v4588_v59 = vpop.f32.mrf.mxu1 }
 0x3d1   :  { %4906 = vmatmul.bf16.vlgmr.msrb.gmra.mxu1 %v4637_v58  ;;  %v4560_v2 = vpop.f32.mrf.mxu3 }
 0x3d2   :  { %4941 = vmatpush.bf16.msra.mxu0 %v7835_v11  ;;  %v4561_v19 = vadd.f32 %v4560_v2, %v4548_v16 }
 0x3d6   :  { %4942 = vmatpush.bf16.msra.mxu0 %v7834_v10 }
 0x3d8   :  { %v4521_v5 = vpop.f32.mrf.mxu0 }
 0x3d9   :  { %v4522_v37 = vadd.f32 %v4521_v5, %v4509_v40  ;;  %v4562_v6 = vpop.f32.mrf.mxu3 }
 0x3da   :  { %4943 = vmatpush.bf16.msra.mxu0 %v7833_v22 }
 0x3db   :  { %v4630_v9 = vmax.f32 %v4522_v37, 0.0 }
 0x3dd   :  { %v4634_v12 = vadd.f32 %v4630_v9, %v8178_v18 }
 0x3de   :  { %v4599_v14 = vpop.f32.mrf.mxu2  ;;  %4944 = vmatpush.bf16.msra.mxu0 %v7832_v0 }
 0x3df   :  { %v4638_v7 = vpack.c.bf16 %v4634_v12, %v4634_v12  ;;  %v4600_v35 = vadd.f32 %v4599_v14, %v4587_v51 }
 0x3e0   :  { %v4523_v29 = vpop.f32.mrf.mxu0 }
 0x3e1   :  { %4919 = vmatmul.bf16.vlgmr.msrb.gmra.mxu2 %v4638_v7 }
 0x3e6   :  { %v4601_v24 = vpop.f32.mrf.mxu2 }
 0x3e8   :  { %v4573_v25 = vpop.f32.mrf.mxu0 }
 0x3e9   :  { %v4574_v1 = vadd.f32 %v4573_v25, %v4561_v19 }
 0x3eb   :  { %v4631_v18 = vmax.f32 %v4574_v1, 0.0 }
 0x3ed   :  { %v4635_v28 = vadd.f32 %v4631_v18, %v8189_v15 }
 0x3ef   :  { %v4639_v20 = vpack.c.bf16 %v4635_v28, %v4635_v28  ;;  %v4612_v30 = vpop.f32.mrf.mxu3 }
 0x3f0   :  { %v4575_v32 = vpop.f32.mrf.mxu0  ;;  %v4613_v21 = vadd.f32 %v4612_v30, %v4600_v35 }
 0x3f1   :  { %4932 = vmatmul.bf16.vlgmr.msrb.gmra.mxu3 %v4639_v20 }
 0x3f7   :  { %v4614_v34 = vpop.f32.mrf.mxu3 }
 0x408   :  { %v4625_v31 = vpop.f32.mrf.mxu0 }
 0x409   :  { %v4626_v38 = vadd.f32 %v4625_v31, %v4613_v21 }
 0x40b   :  { %v4632_v41 = vmax.f32 %v4626_v38, 0.0 }
 0x40d   :  { %v4636_v42 = vadd.f32 %v4632_v41, %v8205_v45 }
 0x40f   :  { %v4640_v43 = vpack.c.bf16 %v4636_v42, %v4636_v42 }
 0x410   :  { %v4627_v44 = vpop.f32.mrf.mxu0 }
 0x411   :  { %4945 = vmatmul.bf16.vlgmr.msra.gmra.mxu0 %v4640_v43 }
 0x44e   :  { %v4907_v60 = vpop.f32.mrf.mxu1 }
 0x44f   :  { %v4908_v48 = vadd.f32 %v4907_v60, %v4705_v36 }
 0x456   :  { %v4909_v15 = vpop.f32.mrf.mxu1 }
 0x464   :  { %v4920_v27 = vpop.f32.mrf.mxu2 }
 0x465   :  { %v4921_v49 = vadd.f32 %v4920_v27, %v4908_v48 }
 0x46c   :  { %v4922_v39 = vpop.f32.mrf.mxu2 }
 0x474   :  { %v4933_v46 = vpop.f32.mrf.mxu3 }
 0x475   :  { %v4934_v50 = vadd.f32 %v4933_v46, %v4921_v49 }
 0x47c   :  { %v4935_v53 = vpop.f32.mrf.mxu3 }
 0x48e   :  { %v4946_v52 = vpop.f32.mrf.mxu0 }
 0x48f   :  { %v4947_v3 = vadd.f32 %v4946_v52, %v4934_v50 }
 0x491   :  { %4950 = vst [vmem:[%s8253_s9] sm:$0xff] %v4947_v3 }
 0x496   :  { %v4948_v45 = vpop.f32.mrf.mxu0 }
 0x497   :  { %4955 = vsyncpa [#allocation3], 1 }
 0x498   :  { %4956 = vsyncpa [#allocation5], 1 }
 0x499   :  { %4957 = vsyncpa [#allocation8], 1 }

</bundles_post_ra>
